<compile_context>
chip_gen: v7x
topology: tpu7x:2x2x1
jax: 0.10.0
libtpu: 0.0.40
codegen_flags: <defaults>
</compile_context>

<pallas_src>
import jax
import jax.numpy as jnp
from jax import lax
from jax.experimental import pallas as pl
from jax.experimental.pallas import tpu as pltpu

# ----------------------------- configuration ------------------------------ #
B = 2                      # batch
EMBED = 32                 # cfg.embed_size (small test size)
NUM_HEADS = 4
HEAD_DIM = EMBED // NUM_HEADS
FF = 4 * EMBED
NUM_ENC_LAYERS = 2         # cfg.num_layer
NUM_DEC_LAYERS = 1
N_POINTS = 64              # points per cloud
NUM_PCD_TOKENS = 4         # cfg.point_tokenizer.num_tokens
NUM_VISION_TOKENS = 2 * NUM_PCD_TOKENS        # use_gpcd=True
NUM_QUERY_TOKENS = 4       # decoder.num_query_tokens (== num_agg_tokens)
ACTION_SIZE = 20           # cfg.action_size
POINT_HIDDEN = 64
POSE_DIM = 9               # vision pose predictor output (pos + 6d rot)
POSE_HIDDEN = 128
AGG_HIDDEN = 128
GROUP = N_POINTS // NUM_PCD_TOKENS

STATE_KEYS = ("abs_goal", "hand_state", "robot_state", "previous_action")
STATE_SHAPES = {"abs_goal": 7, "hand_state": 9,
                "robot_state": 14, "previous_action": 20}
NUM_STATE = len(STATE_KEYS)
STATE_TOTAL = sum(STATE_SHAPES[k] for k in STATE_KEYS)
STATE_PAD = 64             # lane-padded stacked-state width (>= STATE_TOTAL)
SLAB_LANES = 128           # all weights live in one (rows, 128) f32 slab


# ------------------------- weight-slab layout ------------------------------ #
def _build_layout():
    """Static (name -> (row, nrows, ncols)) layout; every item 8-row aligned."""
    layout = {}
    pos = [0]

    def add(name, nrows, ncols):
        layout[name] = (pos[0], nrows, ncols)
        pos[0] += ((nrows + 7) // 8) * 8

    add("tok_w", STATE_PAD, EMBED)
    add("tok_b", NUM_STATE * B, EMBED)
    add("pn_w1", 8, POINT_HIDDEN)
    add("pn_b1", 1, POINT_HIDDEN)
    add("pn_w2", POINT_HIDDEN, EMBED)
    add("pn_b2", 1, EMBED)
    add("pos_embed", NUM_VISION_TOKENS * B, EMBED)
    for l in range(NUM_ENC_LAYERS):
        pre = f"enc{l}_"
        add(pre + "qkv_w", EMBED, 3 * EMBED)
        add(pre + "qkv_b", 1, 3 * EMBED)
        add(pre + "o_w", EMBED, EMBED)
        add(pre + "o_b", 1, EMBED)
        add(pre + "ln1_g", 1, EMBED)
        add(pre + "ln1_b", 1, EMBED)
        add(pre + "ff1_w", EMBED, FF)
        add(pre + "ff1_b", 1, FF)
        add(pre + "ff2_w", FF, EMBED)
        add(pre + "ff2_b", 1, EMBED)
        add(pre + "ln2_g", 1, EMBED)
        add(pre + "ln2_b", 1, EMBED)
    add("pose_w1", NUM_VISION_TOKENS * EMBED, POSE_HIDDEN)
    add("pose_b1", 1, POSE_HIDDEN)
    add("pose_w2", POSE_HIDDEN, POSE_DIM)
    add("pose_b2", 1, POSE_DIM)
    add("query", NUM_QUERY_TOKENS * B, EMBED)
    for l in range(NUM_DEC_LAYERS):
        pre = f"dec{l}_"
        add(pre + "q_w", EMBED, EMBED)
        add(pre + "q_b", 1, EMBED)
        add(pre + "kv_w", EMBED, 2 * EMBED)
        add(pre + "kv_b", 1, 2 * EMBED)
        add(pre + "o_w", EMBED, EMBED)
        add(pre + "o_b", 1, EMBED)
        add(pre + "ln1_g", 1, EMBED)
        add(pre + "ln1_b", 1, EMBED)
        add(pre + "ff1_w", EMBED, FF)
        add(pre + "ff1_b", 1, FF)
        add(pre + "ff2_w", FF, EMBED)
        add(pre + "ff2_b", 1, EMBED)
        add(pre + "ln2_g", 1, EMBED)
        add(pre + "ln2_b", 1, EMBED)
    add("agg_w1", NUM_QUERY_TOKENS * EMBED, AGG_HIDDEN)
    add("agg_b1", 1, AGG_HIDDEN)
    add("agg_w2", AGG_HIDDEN, 2 * ACTION_SIZE)
    add("agg_b2", 1, 2 * ACTION_SIZE)
    return layout, pos[0]


_LAYOUT, _SLAB_ROWS = _build_layout()


# ------------------------------ fused kernel ------------------------------- #
def _fused_forward_kernel(state_x_ref, pts_ref, slab_ref, out_ref, pose_ref):
    """One kernel for the whole StudentAgentRMA forward.

    Inputs:
      state_x_ref : (NUM_STATE*B, STATE_PAD)  token-major stacked state vectors
      pts_ref     : (GROUP*NUM_VISION_TOKENS*B, 8) group-major padded xyz
      slab_ref    : (_SLAB_ROWS, 128) packed weight slab (see _build_layout)
    Outputs:
      out_ref  : (B, 2*ACTION_SIZE)
      pose_ref : (B, POSE_DIM)
    Token layout everywhere is token-major: row = token*B + batch.
    """
    E, H, Dh = EMBED, NUM_HEADS, HEAD_DIM
    T, NQ, NS, Bsz = NUM_VISION_TOKENS, NUM_QUERY_TOKENS, NUM_STATE, B
    TB = T * Bsz
    scale = 1.0 / float(Dh) ** 0.5

    def W(name):
        r, nr, nc = _LAYOUT[name]
        return slab_ref[r:r + nr, :nc]

    def lin(x, w, b, act=None):
        y = jnp.dot(x, w, preferred_element_type=jnp.float32) + b
        if act == "relu":
            y = jnp.maximum(y, 0.0)
        elif act == "gelu":
            y = jax.nn.gelu(y, approximate=True)
        return y

    def layer_norm(x, g, b):
        m = jnp.mean(x, axis=-1, keepdims=True)
        v = jnp.mean((x - m) ** 2, axis=-1, keepdims=True)
        return (x - m) * lax.rsqrt(v + 1e-5) * g + b

    def batch_mask(nr, nc):
        # rows/cols belong to batch (index % B); off-batch pairs get -1e9.
        r = lax.broadcasted_iota(jnp.int32, (nr, nc), 0)
        c = lax.broadcasted_iota(jnp.int32, (nr, nc), 1)
        return jnp.where((r % Bsz) == (c % Bsz),
                         jnp.float32(0.0), jnp.float32(-1e9))

    def attend(q, k, v, o_w, o_b, mask):
        # All batches at once (masked); heads lane-concatenated, single fused
        # output projection.
        heads = []
        for h in range(H):
            cs = slice(h * Dh, (h + 1) * Dh)
            s = lax.dot_general(q[:, cs], k[:, cs], (((1,), (1,)), ((), ())),
                                preferred_element_type=jnp.float32)
            s = s * scale + mask
            s = s - jnp.max(s, axis=-1, keepdims=True)
            p = jnp.exp(s)
            p = p * pl.reciprocal(jnp.sum(p, axis=-1, keepdims=True),
                                  approx=True)
            heads.append(jnp.dot(p, v[:, cs],
                                 preferred_element_type=jnp.float32))
        hv = jnp.concatenate(heads, axis=-1)          # (rows, E) in one vreg
        return jnp.dot(hv, o_w, preferred_element_type=jnp.float32) + o_b

    def flat_linear(tokens, w, b, n_tok):
        # == per-batch flatten(tokens) @ w + b; token-major layout makes every
        # token block a contiguous (B, E) slice -> n_tok matmuls with M=B.
        acc = None
        for t in range(n_tok):
            c = jnp.dot(tokens[t * Bsz:(t + 1) * Bsz, :],
                        w[t * E:(t + 1) * E, :],
                        preferred_element_type=jnp.float32)
            acc = c if acc is None else acc + c
        return acc + b

    # 1) state tokenizers: one block-stacked matmul with per-row bias
    ctx = lin(state_x_ref[...], W("tok_w"), W("tok_b"))       # (NS*B, E)

    # 2) point encoder on [partial|goal] clouds: chunked per-point MLP +
    #    group max-pool (group-major point layout -> contiguous VPU maxima).
    # TODO(synk): exact PointEncoder grouping / norm layers are not public;
    # consecutive grouping into NUM_PCD_TOKENS groups is used (PointNet-style).
    pn_w1, pn_b1 = W("pn_w1"), W("pn_b1")
    pn_w2, pn_b2 = W("pn_w2"), W("pn_b2")
    n_chunks = 4
    gpc = GROUP // n_chunks                  # group-positions per chunk
    vis = None
    for c in range(n_chunks):
        pc = pts_ref[c * gpc * TB:(c + 1) * gpc * TB, :]       # (gpc*TB, 8)
        f = lin(lin(pc, pn_w1, pn_b1, act="relu"), pn_w2, pn_b2)
        m = None
        for g in range(gpc):
            blk = f[g * TB:(g + 1) * TB, :]
            m = blk if m is None else jnp.maximum(m, blk)
        vis = m if vis is None else jnp.maximum(vis, m)        # (T*B, E)

    # 3) TokenEncoder: pos-embed + self-attention layers (post-LN),
    #    batched over B with an additive batch mask.
    enc_mask = batch_mask(TB, TB)
    x = vis + W("pos_embed")
    for l in range(NUM_ENC_LAYERS):
        pre = f"enc{l}_"
        qkv = lin(x, W(pre + "qkv_w"), W(pre + "qkv_b"))       # (T*B, 3E)
        a = attend(qkv[:, :E], qkv[:, E:2 * E], qkv[:, 2 * E:],
                   W(pre + "o_w"), W(pre + "o_b"), enc_mask)
        x = layer_norm(x + a, W(pre + "ln1_g"), W(pre + "ln1_b"))
        hmid = lin(x, W(pre + "ff1_w"), W(pre + "ff1_b"), act="gelu")
        hmid = lin(hmid, W(pre + "ff2_w"), W(pre + "ff2_b"))
        x = layer_norm(x + hmid, W(pre + "ln2_g"), W(pre + "ln2_b"))
    embed = x                                                  # (T*B, E)

    # 4) vision pose predictor on pre-encoder vision tokens
    # TODO(synk): the pose loss against obs targets is training-only; only the
    # prediction head is reproduced here.
    ph = jnp.maximum(flat_linear(vis, W("pose_w1"), W("pose_b1"), T), 0.0)
    pose = jnp.dot(ph, W("pose_w2"),
                   preferred_element_type=jnp.float32) + W("pose_b2")

    # 5) TokenDecoder: queries cross-attend to [ctx ++ embed], batched over B.
    mem = jnp.concatenate([ctx, embed], axis=0)                # ((NS+T)*B, E)
    dec_mask = batch_mask(NQ * Bsz, (NS + T) * Bsz)
    qtok = W("query")                                          # (NQ*B, E)
    for l in range(NUM_DEC_LAYERS):
        pre = f"dec{l}_"
        qp = lin(qtok, W(pre + "q_w"), W(pre + "q_b"))
        kv = lin(mem, W(pre + "kv_w"), W(pre + "kv_b"))        # fused K/V
        a = attend(qp, kv[:, :E], kv[:, E:],
                   W(pre + "o_w"), W(pre + "o_b"), dec_mask)
        xq = layer_norm(qtok + a, W(pre + "ln1_g"), W(pre + "ln1_b"))
        hm = lin(xq, W(pre + "ff1_w"), W(pre + "ff1_b"), act="gelu")
        hm = lin(hm, W(pre + "ff2_w"), W(pre + "ff2_b"))
        qtok = layer_norm(xq + hm, W(pre + "ln2_g"), W(pre + "ln2_b"))

    # 6) Aggregator (flattened decoded tokens -> MLP)
    # TODO(synk): the Aggregator's recurrent memory is zero at reset time;
    # recurrence across steps is not modelled here.
    ah = jnp.maximum(flat_linear(qtok, W("agg_w1"), W("agg_b1"), NQ), 0.0)
    out = jnp.dot(ah, W("agg_w2"),
                  preferred_element_type=jnp.float32) + W("agg_b2")

    out_ref[...] = out.astype(out_ref.dtype)
    pose_ref[...] = pose.astype(pose_ref.dtype)


# --------------------- one-time parameter preparation ---------------------- #
def prepare_params(params):
    """Pack ALL weights into a single (rows, 128) f32 slab.  Call once."""
    entries = []
    tok_w = jnp.concatenate([params["tok"][k]["w"] for k in STATE_KEYS],
                            axis=0)                              # (50, E)
    tok_b = jnp.repeat(
        jnp.concatenate([params["tok"][k]["b"] for k in STATE_KEYS], axis=0),
        B, axis=0)                                               # (NS*B, E)
    entries += [
        ("tok_w", tok_w), ("tok_b", tok_b),
        ("pn_w1", params["pointnet"]["w1"]["w"]),
        ("pn_b1", params["pointnet"]["w1"]["b"]),
        ("pn_w2", params["pointnet"]["w2"]["w"]),
        ("pn_b2", params["pointnet"]["w2"]["b"]),
        ("pos_embed", jnp.repeat(
            params["pos_embed"].reshape(NUM_VISION_TOKENS, EMBED), B, axis=0)),
    ]
    for l, lp in enumerate(params["encoder"]):
        a = lp["attn"]
        pre = f"enc{l}_"
        entries += [
            (pre + "qkv_w",
             jnp.concatenate([a["q"]["w"], a["k"]["w"], a["v"]["w"]], axis=1)),
            (pre + "qkv_b",
             jnp.concatenate([a["q"]["b"], a["k"]["b"], a["v"]["b"]], axis=1)),
            (pre + "o_w", a["o"]["w"]), (pre + "o_b", a["o"]["b"]),
            (pre + "ln1_g", lp["ln1"]["g"]), (pre + "ln1_b", lp["ln1"]["b"]),
            (pre + "ff1_w", lp["ff1"]["w"]), (pre + "ff1_b", lp["ff1"]["b"]),
            (pre + "ff2_w", lp["ff2"]["w"]), (pre + "ff2_b", lp["ff2"]["b"]),
            (pre + "ln2_g", lp["ln2"]["g"]), (pre + "ln2_b", lp["ln2"]["b"]),
        ]
    entries += [
        ("pose_w1", params["pose"]["w1"]["w"]),
        ("pose_b1", params["pose"]["w1"]["b"]),
        ("pose_w2", params["pose"]["w2"]["w"]),
        ("pose_b2", params["pose"]["w2"]["b"]),
        ("query", jnp.repeat(
            params["decoder"]["query"].reshape(NUM_QUERY_TOKENS, EMBED),
            B, axis=0)),
    ]
    for l, lp in enumerate(params["decoder"]["layers"]):
        a = lp["attn"]
        pre = f"dec{l}_"
        entries += [
            (pre + "q_w", a["q"]["w"]), (pre + "q_b", a["q"]["b"]),
            (pre + "kv_w", jnp.concatenate([a["k"]["w"], a["v"]["w"]], axis=1)),
            (pre + "kv_b", jnp.concatenate([a["k"]["b"], a["v"]["b"]], axis=1)),
            (pre + "o_w", a["o"]["w"]), (pre + "o_b", a["o"]["b"]),
            (pre + "ln1_g", lp["ln1"]["g"]), (pre + "ln1_b", lp["ln1"]["b"]),
            (pre + "ff1_w", lp["ff1"]["w"]), (pre + "ff1_b", lp["ff1"]["b"]),
            (pre + "ff2_w", lp["ff2"]["w"]), (pre + "ff2_b", lp["ff2"]["b"]),
            (pre + "ln2_g", lp["ln2"]["g"]), (pre + "ln2_b", lp["ln2"]["b"]),
        ]
    entries += [
        ("agg_w1", params["agg"]["w1"]["w"]),
        ("agg_b1", params["agg"]["w1"]["b"]),
        ("agg_w2", params["agg"]["w2"]["w"]),
        ("agg_b2", params["agg"]["w2"]["b"]),
    ]

    slab = jnp.zeros((_SLAB_ROWS, SLAB_LANES), jnp.float32)
    for name, val in entries:
        r, nr, nc = _LAYOUT[name]
        v = jnp.asarray(val, jnp.float32)
        if v.ndim == 1:
            v = v.reshape(1, -1)
        assert v.shape[0] <= nr and v.shape[1] == nc, (name, v.shape, (nr, nc))
        slab = slab.at[r:r + v.shape[0], :nc].set(v)
    return slab


# ------------------------------ per-call packing ---------------------------- #
def _pack_obs(obs):
    """Pack only the obs-dependent inputs (token-major / group-major)."""
    f32 = jnp.float32
    rows, off = [], 0
    for k in STATE_KEYS:
        d = STATE_SHAPES[k]
        rows.append(jnp.pad(obs[k].astype(f32),
                            ((0, 0), (off, STATE_PAD - off - d))))
        off += d
    # (NS, B, STATE_PAD) -> token-major rows (key*B + batch)
    state_x = jnp.stack(rows, axis=0).reshape(NUM_STATE * B, STATE_PAD)

    pc = obs["partial_cloud"].astype(f32).reshape(B, NUM_PCD_TOKENS, GROUP, 3)
    gc = obs["goal_cloud"].astype(f32).reshape(B, NUM_PCD_TOKENS, GROUP, 3)
    both = jnp.concatenate([pc, gc], axis=1)          # (B, T, GROUP, 3)
    both = jnp.transpose(both, (2, 1, 0, 3))           # (GROUP, T, B, 3)
    pts = both.reshape(GROUP * NUM_VISION_TOKENS * B, 3)
    pts = jnp.pad(pts, ((0, 0), (0, 8 - 3)))           # (GROUP*T*B, 8)
    return state_x, pts


def student_agent_rma_forward(packed_weights, obs):
    """Single-launch Pallas implementation of StudentAgentRMA._forward_impl.

    `packed_weights` must come from prepare_params() (one-time packing).
    """
    Bsz = obs[STATE_KEYS[0]].shape[0]
    assert Bsz == B, "weight slab was prepared for batch size B"
    state_x, pts = _pack_obs(obs)
    vmem = pltpu.MemorySpace.VMEM
    out, pose = pl.pallas_call(
        _fused_forward_kernel,
        out_shape=(jax.ShapeDtypeStruct((B, 2 * ACTION_SIZE), jnp.float32),
                   jax.ShapeDtypeStruct((B, POSE_DIM), jnp.float32)),
        in_specs=[pl.BlockSpec(memory_space=vmem)] * 3,
        out_specs=(pl.BlockSpec(memory_space=vmem),
                   pl.BlockSpec(memory_space=vmem)),
    )(state_x, pts, packed_weights)
    # TODO(synk): at B=2 a second-TensorCore split (v7x) would only add fixed
    # overhead; revisit a "parallel" batch grid axis once B is large.
    return out.reshape(B, 2, ACTION_SIZE), {"pose_pred": pose}


# ------------------------------- init helpers ------------------------------ #
def _dense_init(key, fan_in, fan_out):
    w = jax.random.normal(key, (fan_in, fan_out), jnp.float32) / jnp.sqrt(
        jnp.float32(fan_in))
    b = jnp.zeros((1, fan_out), jnp.float32)
    return {"w": w, "b": b}


def _ln_init():
    return {"g": jnp.ones((1, EMBED), jnp.float32),
            "b": jnp.zeros((1, EMBED), jnp.float32)}


def _attn_init(key):
    ks = jax.random.split(key, 4)
    return {"q": _dense_init(ks[0], EMBED, EMBED),
            "k": _dense_init(ks[1], EMBED, EMBED),
            "v": _dense_init(ks[2], EMBED, EMBED),
            "o": _dense_init(ks[3], EMBED, EMBED)}


def _layer_init(key):
    ks = jax.random.split(key, 3)
    return {"attn": _attn_init(ks[0]),
            "ln1": _ln_init(),
            "ff1": _dense_init(ks[1], EMBED, FF),
            "ff2": _dense_init(ks[2], FF, EMBED),
            "ln2": _ln_init()}


def init_params(key):
    keys = jax.random.split(key, 16)
    params = {}
    tok_keys = jax.random.split(keys[0], len(STATE_KEYS))
    params["tok"] = {k: _dense_init(tok_keys[i], STATE_SHAPES[k], EMBED)
                     for i, k in enumerate(STATE_KEYS)}
    pk = jax.random.split(keys[1], 2)
    params["pointnet"] = {"w1": _dense_init(pk[0], 8, POINT_HIDDEN),
                          "w2": _dense_init(pk[1], POINT_HIDDEN, EMBED)}
    params["pos_embed"] = 0.02 * jax.random.normal(
        keys[2], (1, NUM_VISION_TOKENS, EMBED), jnp.float32)
    enc_keys = jax.random.split(keys[3], NUM_ENC_LAYERS)
    params["encoder"] = [_layer_init(k) for k in enc_keys]
    vk = jax.random.split(keys[4], 2)
    params["pose"] = {"w1": _dense_init(vk[0], NUM_VISION_TOKENS * EMBED,
                                        POSE_HIDDEN),
                      "w2": _dense_init(vk[1], POSE_HIDDEN, POSE_DIM)}
    dec_keys = jax.random.split(keys[5], NUM_DEC_LAYERS)
    params["decoder"] = {
        "query": 0.02 * jax.random.normal(
            keys[6], (1, NUM_QUERY_TOKENS, EMBED), jnp.float32),
        "layers": [_layer_init(k) for k in dec_keys],
    }
    ak = jax.random.split(keys[7], 2)
    params["agg"] = {"w1": _dense_init(ak[0], NUM_QUERY_TOKENS * EMBED,
                                       AGG_HIDDEN),
                     "w2": _dense_init(ak[1], AGG_HIDDEN, 2 * ACTION_SIZE)}
    return params


# ----------------------------------- main ---------------------------------- #
if __name__ == "__main__":
    params = init_params(jax.random.PRNGKey(42))
    wslab = prepare_params(params)          # one-time, param-only packing

    key = jax.random.PRNGKey(0)
    keys = jax.random.split(key, 2 + len(STATE_KEYS))
    obs = {
        "partial_cloud": jax.random.normal(keys[0], (B, N_POINTS, 3),
                                           jnp.float32),
        "goal_cloud": jax.random.normal(keys[1], (B, N_POINTS, 3),
                                        jnp.float32),
    }
    for i, k in enumerate(STATE_KEYS):
        obs[k] = jax.random.normal(keys[2 + i], (B, STATE_SHAPES[k]),
                                   jnp.float32)

    fwd = jax.jit(student_agent_rma_forward)
    out, aux = fwd(wslab, obs)
    jax.block_until_ready(out)
    jax.block_until_ready(aux["pose_pred"])

    assert out.shape == (B, 2, ACTION_SIZE), out.shape
    assert aux["pose_pred"].shape == (B, POSE_DIM), aux["pose_pred"].shape
    assert jnp.all(jnp.isfinite(out))
    assert jnp.all(jnp.isfinite(aux["pose_pred"]))
    print("KERNEL_OK")
</pallas_src>

<mosaic_0001>
module attributes {stable_mosaic.version = 11 : i64} {
  func.func @_fused_forward_kernel(%arg0: memref<8x64xf32, #tpu.memory_space<vmem>>, %arg1: memref<256x8xf32, #tpu.memory_space<vmem>>, %arg2: memref<1760x128xf32, #tpu.memory_space<vmem>>, %arg3: memref<2x40xf32, #tpu.memory_space<vmem>>, %arg4: memref<2x9xf32, #tpu.memory_space<vmem>>) attributes {dimension_semantics = [], scalar_prefetch = 0 : i64, scratch_operands = 0 : i64, tpu.core_type = #tpu.core_type<tc>} {
    %c0 = arith.constant 0 : index
    %c0_0 = arith.constant 0 : index
    %0 = vector.load %arg0[%c0, %c0_0] : memref<8x64xf32, #tpu.memory_space<vmem>>, vector<8x64xf32>
    %c0_1 = arith.constant 0 : index
    %c0_2 = arith.constant 0 : index
    %1 = vector.load %arg2[%c0_1, %c0_2] : memref<1760x128xf32, #tpu.memory_space<vmem>>, vector<64x32xf32>
    %c64 = arith.constant 64 : index
    %c0_3 = arith.constant 0 : index
    %2 = vector.load %arg2[%c64, %c0_3] : memref<1760x128xf32, #tpu.memory_space<vmem>>, vector<8x32xf32>
    %cst = arith.constant dense<0.000000e+00> : vector<8x32xf32>
    %3 = tpu.matmul %0, %1, %cst {dimension_numbers = #tpu.dot_dimension_numbers<[1], [0], [0], [1], [0, 0, 1, 1], [], []>} : vector<8x64xf32>, vector<64x32xf32>, vector<8x32xf32> -> vector<8x32xf32>
    %4 = arith.addf %3, %2 : vector<8x32xf32>
    %c72 = arith.constant 72 : index
    %c0_4 = arith.constant 0 : index
    %5 = vector.load %arg2[%c72, %c0_4] : memref<1760x128xf32, #tpu.memory_space<vmem>>, vector<8x64xf32>
    %c80 = arith.constant 80 : index
    %c0_5 = arith.constant 0 : index
    %6 = vector.load %arg2[%c80, %c0_5] : memref<1760x128xf32, #tpu.memory_space<vmem>>, vector<1x64xf32>
    %c88 = arith.constant 88 : index
    %c0_6 = arith.constant 0 : index
    %7 = vector.load %arg2[%c88, %c0_6] : memref<1760x128xf32, #tpu.memory_space<vmem>>, vector<64x32xf32>
    %c152 = arith.constant 152 : index
    %c0_7 = arith.constant 0 : index
    %8 = vector.load %arg2[%c152, %c0_7] : memref<1760x128xf32, #tpu.memory_space<vmem>>, vector<1x32xf32>
    %c0_8 = arith.constant 0 : index
    %c0_9 = arith.constant 0 : index
    %9 = vector.load %arg1[%c0_8, %c0_9] : memref<256x8xf32, #tpu.memory_space<vmem>>, vector<64x8xf32>
    %cst_10 = arith.constant dense<0.000000e+00> : vector<64x64xf32>
    %10 = tpu.matmul %9, %5, %cst_10 {dimension_numbers = #tpu.dot_dimension_numbers<[1], [0], [0], [1], [0, 0, 1, 1], [], []>} : vector<64x8xf32>, vector<8x64xf32>, vector<64x64xf32> -> vector<64x64xf32>
    %11 = vector.broadcast %6 : vector<1x64xf32> to vector<64x64xf32>
    %12 = arith.addf %10, %11 : vector<64x64xf32>
    %cst_11 = arith.constant 0.000000e+00 : f32
    %13 = vector.broadcast %cst_11 : f32 to vector<64x64xf32>
    %14 = arith.maximumf %12, %13 : vector<64x64xf32>
    %cst_12 = arith.constant dense<0.000000e+00> : vector<64x32xf32>
    %15 = tpu.matmul %14, %7, %cst_12 {dimension_numbers = #tpu.dot_dimension_numbers<[1], [0], [0], [1], [0, 0, 1, 1], [], []>} : vector<64x64xf32>, vector<64x32xf32>, vector<64x32xf32> -> vector<64x32xf32>
    %16 = vector.broadcast %8 : vector<1x32xf32> to vector<64x32xf32>
    %17 = arith.addf %15, %16 : vector<64x32xf32>
    %18 = vector.extract_strided_slice %17 {offsets = [0, 0], sizes = [16, 32], strides = [1, 1]} : vector<64x32xf32> to vector<16x32xf32>
    %19 = vector.extract_strided_slice %17 {offsets = [16, 0], sizes = [16, 32], strides = [1, 1]} : vector<64x32xf32> to vector<16x32xf32>
    %20 = arith.maximumf %18, %19 : vector<16x32xf32>
    %21 = vector.extract_strided_slice %17 {offsets = [32, 0], sizes = [16, 32], strides = [1, 1]} : vector<64x32xf32> to vector<16x32xf32>
    %22 = arith.maximumf %20, %21 : vector<16x32xf32>
    %23 = vector.extract_strided_slice %17 {offsets = [48, 0], sizes = [16, 32], strides = [1, 1]} : vector<64x32xf32> to vector<16x32xf32>
    %24 = arith.maximumf %22, %23 : vector<16x32xf32>
    %c64_13 = arith.constant 64 : index
    %c0_14 = arith.constant 0 : index
    %25 = vector.load %arg1[%c64_13, %c0_14] : memref<256x8xf32, #tpu.memory_space<vmem>>, vector<64x8xf32>
    %cst_15 = arith.constant dense<0.000000e+00> : vector<64x64xf32>
    %26 = tpu.matmul %25, %5, %cst_15 {dimension_numbers = #tpu.dot_dimension_numbers<[1], [0], [0], [1], [0, 0, 1, 1], [], []>} : vector<64x8xf32>, vector<8x64xf32>, vector<64x64xf32> -> vector<64x64xf32>
    %27 = vector.broadcast %6 : vector<1x64xf32> to vector<64x64xf32>
    %28 = arith.addf %26, %27 : vector<64x64xf32>
    %cst_16 = arith.constant 0.000000e+00 : f32
    %29 = vector.broadcast %cst_16 : f32 to vector<64x64xf32>
    %30 = arith.maximumf %28, %29 : vector<64x64xf32>
    %cst_17 = arith.constant dense<0.000000e+00> : vector<64x32xf32>
    %31 = tpu.matmul %30, %7, %cst_17 {dimension_numbers = #tpu.dot_dimension_numbers<[1], [0], [0], [1], [0, 0, 1, 1], [], []>} : vector<64x64xf32>, vector<64x32xf32>, vector<64x32xf32> -> vector<64x32xf32>
    %32 = vector.broadcast %8 : vector<1x32xf32> to vector<64x32xf32>
    %33 = arith.addf %31, %32 : vector<64x32xf32>
    %34 = vector.extract_strided_slice %33 {offsets = [0, 0], sizes = [16, 32], strides = [1, 1]} : vector<64x32xf32> to vector<16x32xf32>
    %35 = vector.extract_strided_slice %33 {offsets = [16, 0], sizes = [16, 32], strides = [1, 1]} : vector<64x32xf32> to vector<16x32xf32>
    %36 = arith.maximumf %34, %35 : vector<16x32xf32>
    %37 = vector.extract_strided_slice %33 {offsets = [32, 0], sizes = [16, 32], strides = [1, 1]} : vector<64x32xf32> to vector<16x32xf32>
    %38 = arith.maximumf %36, %37 : vector<16x32xf32>
    %39 = vector.extract_strided_slice %33 {offsets = [48, 0], sizes = [16, 32], strides = [1, 1]} : vector<64x32xf32> to vector<16x32xf32>
    %40 = arith.maximumf %38, %39 : vector<16x32xf32>
    %41 = arith.maximumf %24, %40 : vector<16x32xf32>
    %c128 = arith.constant 128 : index
    %c0_18 = arith.constant 0 : index
    %42 = vector.load %arg1[%c128, %c0_18] : memref<256x8xf32, #tpu.memory_space<vmem>>, vector<64x8xf32>
    %cst_19 = arith.constant dense<0.000000e+00> : vector<64x64xf32>
    %43 = tpu.matmul %42, %5, %cst_19 {dimension_numbers = #tpu.dot_dimension_numbers<[1], [0], [0], [1], [0, 0, 1, 1], [], []>} : vector<64x8xf32>, vector<8x64xf32>, vector<64x64xf32> -> vector<64x64xf32>
    %44 = vector.broadcast %6 : vector<1x64xf32> to vector<64x64xf32>
    %45 = arith.addf %43, %44 : vector<64x64xf32>
    %cst_20 = arith.constant 0.000000e+00 : f32
    %46 = vector.broadcast %cst_20 : f32 to vector<64x64xf32>
    %47 = arith.maximumf %45, %46 : vector<64x64xf32>
    %cst_21 = arith.constant dense<0.000000e+00> : vector<64x32xf32>
    %48 = tpu.matmul %47, %7, %cst_21 {dimension_numbers = #tpu.dot_dimension_numbers<[1], [0], [0], [1], [0, 0, 1, 1], [], []>} : vector<64x64xf32>, vector<64x32xf32>, vector<64x32xf32> -> vector<64x32xf32>
    %49 = vector.broadcast %8 : vector<1x32xf32> to vector<64x32xf32>
    %50 = arith.addf %48, %49 : vector<64x32xf32>
    %51 = vector.extract_strided_slice %50 {offsets = [0, 0], sizes = [16, 32], strides = [1, 1]} : vector<64x32xf32> to vector<16x32xf32>
    %52 = vector.extract_strided_slice %50 {offsets = [16, 0], sizes = [16, 32], strides = [1, 1]} : vector<64x32xf32> to vector<16x32xf32>
    %53 = arith.maximumf %51, %52 : vector<16x32xf32>
    %54 = vector.extract_strided_slice %50 {offsets = [32, 0], sizes = [16, 32], strides = [1, 1]} : vector<64x32xf32> to vector<16x32xf32>
    %55 = arith.maximumf %53, %54 : vector<16x32xf32>
    %56 = vector.extract_strided_slice %50 {offsets = [48, 0], sizes = [16, 32], strides = [1, 1]} : vector<64x32xf32> to vector<16x32xf32>
    %57 = arith.maximumf %55, %56 : vector<16x32xf32>
    %58 = arith.maximumf %41, %57 : vector<16x32xf32>
    %c192 = arith.constant 192 : index
    %c0_22 = arith.constant 0 : index
    %59 = vector.load %arg1[%c192, %c0_22] : memref<256x8xf32, #tpu.memory_space<vmem>>, vector<64x8xf32>
    %cst_23 = arith.constant dense<0.000000e+00> : vector<64x64xf32>
    %60 = tpu.matmul %59, %5, %cst_23 {dimension_numbers = #tpu.dot_dimension_numbers<[1], [0], [0], [1], [0, 0, 1, 1], [], []>} : vector<64x8xf32>, vector<8x64xf32>, vector<64x64xf32> -> vector<64x64xf32>
    %61 = vector.broadcast %6 : vector<1x64xf32> to vector<64x64xf32>
    %62 = arith.addf %60, %61 : vector<64x64xf32>
    %cst_24 = arith.constant 0.000000e+00 : f32
    %63 = vector.broadcast %cst_24 : f32 to vector<64x64xf32>
    %64 = arith.maximumf %62, %63 : vector<64x64xf32>
    %cst_25 = arith.constant dense<0.000000e+00> : vector<64x32xf32>
    %65 = tpu.matmul %64, %7, %cst_25 {dimension_numbers = #tpu.dot_dimension_numbers<[1], [0], [0], [1], [0, 0, 1, 1], [], []>} : vector<64x64xf32>, vector<64x32xf32>, vector<64x32xf32> -> vector<64x32xf32>
    %66 = vector.broadcast %8 : vector<1x32xf32> to vector<64x32xf32>
    %67 = arith.addf %65, %66 : vector<64x32xf32>
    %68 = vector.extract_strided_slice %67 {offsets = [0, 0], sizes = [16, 32], strides = [1, 1]} : vector<64x32xf32> to vector<16x32xf32>
    %69 = vector.extract_strided_slice %67 {offsets = [16, 0], sizes = [16, 32], strides = [1, 1]} : vector<64x32xf32> to vector<16x32xf32>
    %70 = arith.maximumf %68, %69 : vector<16x32xf32>
    %71 = vector.extract_strided_slice %67 {offsets = [32, 0], sizes = [16, 32], strides = [1, 1]} : vector<64x32xf32> to vector<16x32xf32>
    %72 = arith.maximumf %70, %71 : vector<16x32xf32>
    %73 = vector.extract_strided_slice %67 {offsets = [48, 0], sizes = [16, 32], strides = [1, 1]} : vector<64x32xf32> to vector<16x32xf32>
    %74 = arith.maximumf %72, %73 : vector<16x32xf32>
    %75 = arith.maximumf %58, %74 : vector<16x32xf32>
    %76 = tpu.iota {dimensions = array<i32: 0>} : vector<16x16xi32>
    %77 = tpu.iota {dimensions = array<i32: 1>} : vector<16x16xi32>
    %c2_i32 = arith.constant 2 : i32
    %c0_i32 = arith.constant 0 : i32
    %78 = arith.cmpi eq, %c2_i32, %c0_i32 : i32
    %c1_i32 = arith.constant 1 : i32
    %79 = arith.select %78, %c1_i32, %c2_i32 : i32
    %80 = vector.broadcast %79 : i32 to vector<16x16xi32>
    %81 = arith.remsi %76, %80 : vector<16x16xi32>
    %c0_i32_26 = arith.constant 0 : i32
    %82 = vector.broadcast %c0_i32_26 : i32 to vector<16x16xi32>
    %83 = arith.cmpi ne, %81, %82 : vector<16x16xi32>
    %c0_i32_27 = arith.constant 0 : i32
    %84 = vector.broadcast %c0_i32_27 : i32 to vector<16x16xi32>
    %85 = arith.cmpi slt, %81, %84 : vector<16x16xi32>
    %c0_i32_28 = arith.constant 0 : i32
    %86 = arith.cmpi slt, %79, %c0_i32_28 : i32
    %87 = vector.broadcast %86 : i1 to vector<16x16xi1>
    %88 = vector.broadcast %87 : vector<16x16xi1> to vector<16x16xi1>
    %89 = arith.xori %85, %88 : vector<16x16xi1>
    %90 = arith.andi %89, %83 : vector<16x16xi1>
    %91 = vector.broadcast %79 : i32 to vector<16x16xi32>
    %92 = arith.addi %81, %91 : vector<16x16xi32>
    %93 = arith.select %90, %92, %81 : vector<16x16xi1>, vector<16x16xi32>
    %c2_i32_29 = arith.constant 2 : i32
    %c0_i32_30 = arith.constant 0 : i32
    %94 = arith.cmpi eq, %c2_i32_29, %c0_i32_30 : i32
    %c1_i32_31 = arith.constant 1 : i32
    %95 = arith.select %94, %c1_i32_31, %c2_i32_29 : i32
    %96 = vector.broadcast %95 : i32 to vector<16x16xi32>
    %97 = arith.remsi %77, %96 : vector<16x16xi32>
    %c0_i32_32 = arith.constant 0 : i32
    %98 = vector.broadcast %c0_i32_32 : i32 to vector<16x16xi32>
    %99 = arith.cmpi ne, %97, %98 : vector<16x16xi32>
    %c0_i32_33 = arith.constant 0 : i32
    %100 = vector.broadcast %c0_i32_33 : i32 to vector<16x16xi32>
    %101 = arith.cmpi slt, %97, %100 : vector<16x16xi32>
    %c0_i32_34 = arith.constant 0 : i32
    %102 = arith.cmpi slt, %95, %c0_i32_34 : i32
    %103 = vector.broadcast %102 : i1 to vector<16x16xi1>
    %104 = vector.broadcast %103 : vector<16x16xi1> to vector<16x16xi1>
    %105 = arith.xori %101, %104 : vector<16x16xi1>
    %106 = arith.andi %105, %99 : vector<16x16xi1>
    %107 = vector.broadcast %95 : i32 to vector<16x16xi32>
    %108 = arith.addi %97, %107 : vector<16x16xi32>
    %109 = arith.select %106, %108, %97 : vector<16x16xi1>, vector<16x16xi32>
    %110 = arith.cmpi eq, %93, %109 : vector<16x16xi32>
    %cst_35 = arith.constant 0.000000e+00 : f32
    %cst_36 = arith.constant -1.000000e+09 : f32
    %111 = vector.broadcast %cst_35 : f32 to vector<16x16xf32>
    %112 = vector.broadcast %cst_36 : f32 to vector<16x16xf32>
    %113 = arith.select %110, %111, %112 : vector<16x16xi1>, vector<16x16xf32>
    %c160 = arith.constant 160 : index
    %c0_37 = arith.constant 0 : index
    %114 = vector.load %arg2[%c160, %c0_37] : memref<1760x128xf32, #tpu.memory_space<vmem>>, vector<16x32xf32>
    %115 = arith.addf %75, %114 : vector<16x32xf32>
    %c176 = arith.constant 176 : index
    %c0_38 = arith.constant 0 : index
    %116 = vector.load %arg2[%c176, %c0_38] : memref<1760x128xf32, #tpu.memory_space<vmem>>, vector<32x96xf32>
    %c208 = arith.constant 208 : index
    %c0_39 = arith.constant 0 : index
    %117 = vector.load %arg2[%c208, %c0_39] : memref<1760x128xf32, #tpu.memory_space<vmem>>, vector<1x96xf32>
    %cst_40 = arith.constant dense<0.000000e+00> : vector<16x96xf32>
    %118 = tpu.matmul %115, %116, %cst_40 {dimension_numbers = #tpu.dot_dimension_numbers<[1], [0], [0], [1], [0, 0, 1, 1], [], []>} : vector<16x32xf32>, vector<32x96xf32>, vector<16x96xf32> -> vector<16x96xf32>
    %119 = vector.broadcast %117 : vector<1x96xf32> to vector<16x96xf32>
    %120 = arith.addf %118, %119 : vector<16x96xf32>
    %121 = vector.extract_strided_slice %120 {offsets = [0, 0], sizes = [16, 32], strides = [1, 1]} : vector<16x96xf32> to vector<16x32xf32>
    %122 = vector.extract_strided_slice %120 {offsets = [0, 32], sizes = [16, 32], strides = [1, 1]} : vector<16x96xf32> to vector<16x32xf32>
    %123 = vector.extract_strided_slice %120 {offsets = [0, 64], sizes = [16, 32], strides = [1, 1]} : vector<16x96xf32> to vector<16x32xf32>
    %c216 = arith.constant 216 : index
    %c0_41 = arith.constant 0 : index
    %124 = vector.load %arg2[%c216, %c0_41] : memref<1760x128xf32, #tpu.memory_space<vmem>>, vector<32x32xf32>
    %c248 = arith.constant 248 : index
    %c0_42 = arith.constant 0 : index
    %125 = vector.load %arg2[%c248, %c0_42] : memref<1760x128xf32, #tpu.memory_space<vmem>>, vector<1x32xf32>
    %126 = vector.extract_strided_slice %121 {offsets = [0, 0], sizes = [16, 8], strides = [1, 1]} : vector<16x32xf32> to vector<16x8xf32>
    %127 = vector.extract_strided_slice %122 {offsets = [0, 0], sizes = [16, 8], strides = [1, 1]} : vector<16x32xf32> to vector<16x8xf32>
    %cst_43 = arith.constant dense<0.000000e+00> : vector<16x16xf32>
    %128 = tpu.matmul %126, %127, %cst_43 {dimension_numbers = #tpu.dot_dimension_numbers<[1], [1], [0], [0], [0, 0, 1, 0], [], []>} : vector<16x8xf32>, vector<16x8xf32>, vector<16x16xf32> -> vector<16x16xf32>
    %cst_44 = arith.constant 0.353553385 : f32
    %129 = vector.broadcast %cst_44 : f32 to vector<16x16xf32>
    %130 = arith.mulf %128, %129 : vector<16x16xf32>
    %131 = arith.addf %130, %113 : vector<16x16xf32>
    %cst_45 = arith.constant dense<0xFF800000> : vector<16xf32>
    %132 = vector.multi_reduction <maximumf>, %131, %cst_45 [1] : vector<16x16xf32> to vector<16xf32>
    %133 = vector.shape_cast %132 : vector<16xf32> to vector<16x1xf32>
    %134 = vector.broadcast %133 : vector<16x1xf32> to vector<16x16xf32>
    %135 = arith.subf %131, %134 : vector<16x16xf32>
    %136 = math.exp %135 : vector<16x16xf32>
    %cst_46 = arith.constant dense<0.000000e+00> : vector<16xf32>
    %137 = vector.multi_reduction <add>, %136, %cst_46 [1] : vector<16x16xf32> to vector<16xf32>
    %138 = vector.shape_cast %137 : vector<16xf32> to vector<16x1xf32>
    %139 = tpu.reciprocal %138 {approx = true} : vector<16x1xf32> -> vector<16x1xf32>
    %140 = vector.broadcast %139 : vector<16x1xf32> to vector<16x16xf32>
    %141 = arith.mulf %136, %140 : vector<16x16xf32>
    %142 = vector.extract_strided_slice %123 {offsets = [0, 0], sizes = [16, 8], strides = [1, 1]} : vector<16x32xf32> to vector<16x8xf32>
    %cst_47 = arith.constant dense<0.000000e+00> : vector<16x8xf32>
    %143 = tpu.matmul %141, %142, %cst_47 {dimension_numbers = #tpu.dot_dimension_numbers<[1], [0], [0], [1], [0, 0, 1, 1], [], []>} : vector<16x16xf32>, vector<16x8xf32>, vector<16x8xf32> -> vector<16x8xf32>
    %144 = vector.extract_strided_slice %121 {offsets = [0, 8], sizes = [16, 8], strides = [1, 1]} : vector<16x32xf32> to vector<16x8xf32>
    %145 = vector.extract_strided_slice %122 {offsets = [0, 8], sizes = [16, 8], strides = [1, 1]} : vector<16x32xf32> to vector<16x8xf32>
    %cst_48 = arith.constant dense<0.000000e+00> : vector<16x16xf32>
    %146 = tpu.matmul %144, %145, %cst_48 {dimension_numbers = #tpu.dot_dimension_numbers<[1], [1], [0], [0], [0, 0, 1, 0], [], []>} : vector<16x8xf32>, vector<16x8xf32>, vector<16x16xf32> -> vector<16x16xf32>
    %cst_49 = arith.constant 0.353553385 : f32
    %147 = vector.broadcast %cst_49 : f32 to vector<16x16xf32>
    %148 = arith.mulf %146, %147 : vector<16x16xf32>
    %149 = arith.addf %148, %113 : vector<16x16xf32>
    %cst_50 = arith.constant dense<0xFF800000> : vector<16xf32>
    %150 = vector.multi_reduction <maximumf>, %149, %cst_50 [1] : vector<16x16xf32> to vector<16xf32>
    %151 = vector.shape_cast %150 : vector<16xf32> to vector<16x1xf32>
    %152 = vector.broadcast %151 : vector<16x1xf32> to vector<16x16xf32>
    %153 = arith.subf %149, %152 : vector<16x16xf32>
    %154 = math.exp %153 : vector<16x16xf32>
    %cst_51 = arith.constant dense<0.000000e+00> : vector<16xf32>
    %155 = vector.multi_reduction <add>, %154, %cst_51 [1] : vector<16x16xf32> to vector<16xf32>
    %156 = vector.shape_cast %155 : vector<16xf32> to vector<16x1xf32>
    %157 = tpu.reciprocal %156 {approx = true} : vector<16x1xf32> -> vector<16x1xf32>
    %158 = vector.broadcast %157 : vector<16x1xf32> to vector<16x16xf32>
    %159 = arith.mulf %154, %158 : vector<16x16xf32>
    %160 = vector.extract_strided_slice %123 {offsets = [0, 8], sizes = [16, 8], strides = [1, 1]} : vector<16x32xf32> to vector<16x8xf32>
    %cst_52 = arith.constant dense<0.000000e+00> : vector<16x8xf32>
    %161 = tpu.matmul %159, %160, %cst_52 {dimension_numbers = #tpu.dot_dimension_numbers<[1], [0], [0], [1], [0, 0, 1, 1], [], []>} : vector<16x16xf32>, vector<16x8xf32>, vector<16x8xf32> -> vector<16x8xf32>
    %162 = vector.extract_strided_slice %121 {offsets = [0, 16], sizes = [16, 8], strides = [1, 1]} : vector<16x32xf32> to vector<16x8xf32>
    %163 = vector.extract_strided_slice %122 {offsets = [0, 16], sizes = [16, 8], strides = [1, 1]} : vector<16x32xf32> to vector<16x8xf32>
    %cst_53 = arith.constant dense<0.000000e+00> : vector<16x16xf32>
    %164 = tpu.matmul %162, %163, %cst_53 {dimension_numbers = #tpu.dot_dimension_numbers<[1], [1], [0], [0], [0, 0, 1, 0], [], []>} : vector<16x8xf32>, vector<16x8xf32>, vector<16x16xf32> -> vector<16x16xf32>
    %cst_54 = arith.constant 0.353553385 : f32
    %165 = vector.broadcast %cst_54 : f32 to vector<16x16xf32>
    %166 = arith.mulf %164, %165 : vector<16x16xf32>
    %167 = arith.addf %166, %113 : vector<16x16xf32>
    %cst_55 = arith.constant dense<0xFF800000> : vector<16xf32>
    %168 = vector.multi_reduction <maximumf>, %167, %cst_55 [1] : vector<16x16xf32> to vector<16xf32>
    %169 = vector.shape_cast %168 : vector<16xf32> to vector<16x1xf32>
    %170 = vector.broadcast %169 : vector<16x1xf32> to vector<16x16xf32>
    %171 = arith.subf %167, %170 : vector<16x16xf32>
    %172 = math.exp %171 : vector<16x16xf32>
    %cst_56 = arith.constant dense<0.000000e+00> : vector<16xf32>
    %173 = vector.multi_reduction <add>, %172, %cst_56 [1] : vector<16x16xf32> to vector<16xf32>
    %174 = vector.shape_cast %173 : vector<16xf32> to vector<16x1xf32>
    %175 = tpu.reciprocal %174 {approx = true} : vector<16x1xf32> -> vector<16x1xf32>
    %176 = vector.broadcast %175 : vector<16x1xf32> to vector<16x16xf32>
    %177 = arith.mulf %172, %176 : vector<16x16xf32>
    %178 = vector.extract_strided_slice %123 {offsets = [0, 16], sizes = [16, 8], strides = [1, 1]} : vector<16x32xf32> to vector<16x8xf32>
    %cst_57 = arith.constant dense<0.000000e+00> : vector<16x8xf32>
    %179 = tpu.matmul %177, %178, %cst_57 {dimension_numbers = #tpu.dot_dimension_numbers<[1], [0], [0], [1], [0, 0, 1, 1], [], []>} : vector<16x16xf32>, vector<16x8xf32>, vector<16x8xf32> -> vector<16x8xf32>
    %180 = vector.extract_strided_slice %121 {offsets = [0, 24], sizes = [16, 8], strides = [1, 1]} : vector<16x32xf32> to vector<16x8xf32>
    %181 = vector.extract_strided_slice %122 {offsets = [0, 24], sizes = [16, 8], strides = [1, 1]} : vector<16x32xf32> to vector<16x8xf32>
    %cst_58 = arith.constant dense<0.000000e+00> : vector<16x16xf32>
    %182 = tpu.matmul %180, %181, %cst_58 {dimension_numbers = #tpu.dot_dimension_numbers<[1], [1], [0], [0], [0, 0, 1, 0], [], []>} : vector<16x8xf32>, vector<16x8xf32>, vector<16x16xf32> -> vector<16x16xf32>
    %cst_59 = arith.constant 0.353553385 : f32
    %183 = vector.broadcast %cst_59 : f32 to vector<16x16xf32>
    %184 = arith.mulf %182, %183 : vector<16x16xf32>
    %185 = arith.addf %184, %113 : vector<16x16xf32>
    %cst_60 = arith.constant dense<0xFF800000> : vector<16xf32>
    %186 = vector.multi_reduction <maximumf>, %185, %cst_60 [1] : vector<16x16xf32> to vector<16xf32>
    %187 = vector.shape_cast %186 : vector<16xf32> to vector<16x1xf32>
    %188 = vector.broadcast %187 : vector<16x1xf32> to vector<16x16xf32>
    %189 = arith.subf %185, %188 : vector<16x16xf32>
    %190 = math.exp %189 : vector<16x16xf32>
    %cst_61 = arith.constant dense<0.000000e+00> : vector<16xf32>
    %191 = vector.multi_reduction <add>, %190, %cst_61 [1] : vector<16x16xf32> to vector<16xf32>
    %192 = vector.shape_cast %191 : vector<16xf32> to vector<16x1xf32>
    %193 = tpu.reciprocal %192 {approx = true} : vector<16x1xf32> -> vector<16x1xf32>
    %194 = vector.broadcast %193 : vector<16x1xf32> to vector<16x16xf32>
    %195 = arith.mulf %190, %194 : vector<16x16xf32>
    %196 = vector.extract_strided_slice %123 {offsets = [0, 24], sizes = [16, 8], strides = [1, 1]} : vector<16x32xf32> to vector<16x8xf32>
    %cst_62 = arith.constant dense<0.000000e+00> : vector<16x8xf32>
    %197 = tpu.matmul %195, %196, %cst_62 {dimension_numbers = #tpu.dot_dimension_numbers<[1], [0], [0], [1], [0, 0, 1, 1], [], []>} : vector<16x16xf32>, vector<16x8xf32>, vector<16x8xf32> -> vector<16x8xf32>
    %198 = tpu.concatenate %143, %161, %179, %197 in 1 : vector<16x8xf32>, vector<16x8xf32>, vector<16x8xf32>, vector<16x8xf32> -> vector<16x32xf32>
    %cst_63 = arith.constant dense<0.000000e+00> : vector<16x32xf32>
    %199 = tpu.matmul %198, %124, %cst_63 {dimension_numbers = #tpu.dot_dimension_numbers<[1], [0], [0], [1], [0, 0, 1, 1], [], []>} : vector<16x32xf32>, vector<32x32xf32>, vector<16x32xf32> -> vector<16x32xf32>
    %200 = vector.broadcast %125 : vector<1x32xf32> to vector<16x32xf32>
    %201 = arith.addf %199, %200 : vector<16x32xf32>
    %202 = arith.addf %115, %201 : vector<16x32xf32>
    %c256 = arith.constant 256 : index
    %c0_64 = arith.constant 0 : index
    %203 = vector.load %arg2[%c256, %c0_64] : memref<1760x128xf32, #tpu.memory_space<vmem>>, vector<1x32xf32>
    %c264 = arith.constant 264 : index
    %c0_65 = arith.constant 0 : index
    %204 = vector.load %arg2[%c264, %c0_65] : memref<1760x128xf32, #tpu.memory_space<vmem>>, vector<1x32xf32>
    %cst_66 = arith.constant dense<0.000000e+00> : vector<16xf32>
    %205 = vector.multi_reduction <add>, %202, %cst_66 [1] : vector<16x32xf32> to vector<16xf32>
    %206 = vector.shape_cast %205 : vector<16xf32> to vector<16x1xf32>
    %cst_67 = arith.constant 3.200000e+01 : f32
    %207 = vector.broadcast %cst_67 : f32 to vector<16x1xf32>
    %208 = arith.divf %206, %207 : vector<16x1xf32>
    %209 = vector.broadcast %208 : vector<16x1xf32> to vector<16x32xf32>
    %210 = arith.subf %202, %209 : vector<16x32xf32>
    %211 = arith.mulf %210, %210 : vector<16x32xf32>
    %cst_68 = arith.constant dense<0.000000e+00> : vector<16xf32>
    %212 = vector.multi_reduction <add>, %211, %cst_68 [1] : vector<16x32xf32> to vector<16xf32>
    %213 = vector.shape_cast %212 : vector<16xf32> to vector<16x1xf32>
    %cst_69 = arith.constant 3.200000e+01 : f32
    %214 = vector.broadcast %cst_69 : f32 to vector<16x1xf32>
    %215 = arith.divf %213, %214 : vector<16x1xf32>
    %216 = vector.broadcast %208 : vector<16x1xf32> to vector<16x32xf32>
    %217 = arith.subf %202, %216 : vector<16x32xf32>
    %cst_70 = arith.constant 9.99999974E-6 : f32
    %218 = vector.broadcast %cst_70 : f32 to vector<16x1xf32>
    %219 = arith.addf %215, %218 : vector<16x1xf32>
    %220 = math.rsqrt %219 : vector<16x1xf32>
    %221 = vector.broadcast %220 : vector<16x1xf32> to vector<16x32xf32>
    %222 = arith.mulf %217, %221 : vector<16x32xf32>
    %223 = vector.broadcast %203 : vector<1x32xf32> to vector<16x32xf32>
    %224 = arith.mulf %222, %223 : vector<16x32xf32>
    %225 = vector.broadcast %204 : vector<1x32xf32> to vector<16x32xf32>
    %226 = arith.addf %224, %225 : vector<16x32xf32>
    %c272 = arith.constant 272 : index
    %c0_71 = arith.constant 0 : index
    %227 = vector.load %arg2[%c272, %c0_71] : memref<1760x128xf32, #tpu.memory_space<vmem>>, vector<32x128xf32>
    %c304 = arith.constant 304 : index
    %c0_72 = arith.constant 0 : index
    %228 = vector.load %arg2[%c304, %c0_72] : memref<1760x128xf32, #tpu.memory_space<vmem>>, vector<1x128xf32>
    %cst_73 = arith.constant dense<0.000000e+00> : vector<16x128xf32>
    %229 = tpu.matmul %226, %227, %cst_73 {dimension_numbers = #tpu.dot_dimension_numbers<[1], [0], [0], [1], [0, 0, 1, 1], [], []>} : vector<16x32xf32>, vector<32x128xf32>, vector<16x128xf32> -> vector<16x128xf32>
    %230 = vector.broadcast %228 : vector<1x128xf32> to vector<16x128xf32>
    %231 = arith.addf %229, %230 : vector<16x128xf32>
    %232 = arith.mulf %231, %231 : vector<16x128xf32>
    %233 = arith.mulf %231, %232 : vector<16x128xf32>
    %cst_74 = arith.constant 4.471500e-02 : f32
    %234 = vector.broadcast %cst_74 : f32 to vector<16x128xf32>
    %235 = arith.mulf %234, %233 : vector<16x128xf32>
    %236 = arith.addf %231, %235 : vector<16x128xf32>
    %cst_75 = arith.constant 0.797884583 : f32
    %237 = vector.broadcast %cst_75 : f32 to vector<16x128xf32>
    %238 = arith.mulf %237, %236 : vector<16x128xf32>
    %239 = math.tanh %238 : vector<16x128xf32>
    %cst_76 = arith.constant 1.000000e+00 : f32
    %240 = vector.broadcast %cst_76 : f32 to vector<16x128xf32>
    %241 = arith.addf %240, %239 : vector<16x128xf32>
    %cst_77 = arith.constant 5.000000e-01 : f32
    %242 = vector.broadcast %cst_77 : f32 to vector<16x128xf32>
    %243 = arith.mulf %242, %241 : vector<16x128xf32>
    %244 = arith.mulf %231, %243 : vector<16x128xf32>
    %c312 = arith.constant 312 : index
    %c0_78 = arith.constant 0 : index
    %245 = vector.load %arg2[%c312, %c0_78] : memref<1760x128xf32, #tpu.memory_space<vmem>>, vector<128x32xf32>
    %c440 = arith.constant 440 : index
    %c0_79 = arith.constant 0 : index
    %246 = vector.load %arg2[%c440, %c0_79] : memref<1760x128xf32, #tpu.memory_space<vmem>>, vector<1x32xf32>
    %cst_80 = arith.constant dense<0.000000e+00> : vector<16x32xf32>
    %247 = tpu.matmul %244, %245, %cst_80 {dimension_numbers = #tpu.dot_dimension_numbers<[1], [0], [0], [1], [0, 0, 1, 1], [], []>} : vector<16x128xf32>, vector<128x32xf32>, vector<16x32xf32> -> vector<16x32xf32>
    %248 = vector.broadcast %246 : vector<1x32xf32> to vector<16x32xf32>
    %249 = arith.addf %247, %248 : vector<16x32xf32>
    %250 = arith.addf %226, %249 : vector<16x32xf32>
    %c448 = arith.constant 448 : index
    %c0_81 = arith.constant 0 : index
    %251 = vector.load %arg2[%c448, %c0_81] : memref<1760x128xf32, #tpu.memory_space<vmem>>, vector<1x32xf32>
    %c456 = arith.constant 456 : index
    %c0_82 = arith.constant 0 : index
    %252 = vector.load %arg2[%c456, %c0_82] : memref<1760x128xf32, #tpu.memory_space<vmem>>, vector<1x32xf32>
    %cst_83 = arith.constant dense<0.000000e+00> : vector<16xf32>
    %253 = vector.multi_reduction <add>, %250, %cst_83 [1] : vector<16x32xf32> to vector<16xf32>
    %254 = vector.shape_cast %253 : vector<16xf32> to vector<16x1xf32>
    %cst_84 = arith.constant 3.200000e+01 : f32
    %255 = vector.broadcast %cst_84 : f32 to vector<16x1xf32>
    %256 = arith.divf %254, %255 : vector<16x1xf32>
    %257 = vector.broadcast %256 : vector<16x1xf32> to vector<16x32xf32>
    %258 = arith.subf %250, %257 : vector<16x32xf32>
    %259 = arith.mulf %258, %258 : vector<16x32xf32>
    %cst_85 = arith.constant dense<0.000000e+00> : vector<16xf32>
    %260 = vector.multi_reduction <add>, %259, %cst_85 [1] : vector<16x32xf32> to vector<16xf32>
    %261 = vector.shape_cast %260 : vector<16xf32> to vector<16x1xf32>
    %cst_86 = arith.constant 3.200000e+01 : f32
    %262 = vector.broadcast %cst_86 : f32 to vector<16x1xf32>
    %263 = arith.divf %261, %262 : vector<16x1xf32>
    %264 = vector.broadcast %256 : vector<16x1xf32> to vector<16x32xf32>
    %265 = arith.subf %250, %264 : vector<16x32xf32>
    %cst_87 = arith.constant 9.99999974E-6 : f32
    %266 = vector.broadcast %cst_87 : f32 to vector<16x1xf32>
    %267 = arith.addf %263, %266 : vector<16x1xf32>
    %268 = math.rsqrt %267 : vector<16x1xf32>
    %269 = vector.broadcast %268 : vector<16x1xf32> to vector<16x32xf32>
    %270 = arith.mulf %265, %269 : vector<16x32xf32>
    %271 = vector.broadcast %251 : vector<1x32xf32> to vector<16x32xf32>
    %272 = arith.mulf %270, %271 : vector<16x32xf32>
    %273 = vector.broadcast %252 : vector<1x32xf32> to vector<16x32xf32>
    %274 = arith.addf %272, %273 : vector<16x32xf32>
    %c464 = arith.constant 464 : index
    %c0_88 = arith.constant 0 : index
    %275 = vector.load %arg2[%c464, %c0_88] : memref<1760x128xf32, #tpu.memory_space<vmem>>, vector<32x96xf32>
    %c496 = arith.constant 496 : index
    %c0_89 = arith.constant 0 : index
    %276 = vector.load %arg2[%c496, %c0_89] : memref<1760x128xf32, #tpu.memory_space<vmem>>, vector<1x96xf32>
    %cst_90 = arith.constant dense<0.000000e+00> : vector<16x96xf32>
    %277 = tpu.matmul %274, %275, %cst_90 {dimension_numbers = #tpu.dot_dimension_numbers<[1], [0], [0], [1], [0, 0, 1, 1], [], []>} : vector<16x32xf32>, vector<32x96xf32>, vector<16x96xf32> -> vector<16x96xf32>
    %278 = vector.broadcast %276 : vector<1x96xf32> to vector<16x96xf32>
    %279 = arith.addf %277, %278 : vector<16x96xf32>
    %280 = vector.extract_strided_slice %279 {offsets = [0, 0], sizes = [16, 32], strides = [1, 1]} : vector<16x96xf32> to vector<16x32xf32>
    %281 = vector.extract_strided_slice %279 {offsets = [0, 32], sizes = [16, 32], strides = [1, 1]} : vector<16x96xf32> to vector<16x32xf32>
    %282 = vector.extract_strided_slice %279 {offsets = [0, 64], sizes = [16, 32], strides = [1, 1]} : vector<16x96xf32> to vector<16x32xf32>
    %c504 = arith.constant 504 : index
    %c0_91 = arith.constant 0 : index
    %283 = vector.load %arg2[%c504, %c0_91] : memref<1760x128xf32, #tpu.memory_space<vmem>>, vector<32x32xf32>
    %c536 = arith.constant 536 : index
    %c0_92 = arith.constant 0 : index
    %284 = vector.load %arg2[%c536, %c0_92] : memref<1760x128xf32, #tpu.memory_space<vmem>>, vector<1x32xf32>
    %285 = vector.extract_strided_slice %280 {offsets = [0, 0], sizes = [16, 8], strides = [1, 1]} : vector<16x32xf32> to vector<16x8xf32>
    %286 = vector.extract_strided_slice %281 {offsets = [0, 0], sizes = [16, 8], strides = [1, 1]} : vector<16x32xf32> to vector<16x8xf32>
    %cst_93 = arith.constant dense<0.000000e+00> : vector<16x16xf32>
    %287 = tpu.matmul %285, %286, %cst_93 {dimension_numbers = #tpu.dot_dimension_numbers<[1], [1], [0], [0], [0, 0, 1, 0], [], []>} : vector<16x8xf32>, vector<16x8xf32>, vector<16x16xf32> -> vector<16x16xf32>
    %cst_94 = arith.constant 0.353553385 : f32
    %288 = vector.broadcast %cst_94 : f32 to vector<16x16xf32>
    %289 = arith.mulf %287, %288 : vector<16x16xf32>
    %290 = arith.addf %289, %113 : vector<16x16xf32>
    %cst_95 = arith.constant dense<0xFF800000> : vector<16xf32>
    %291 = vector.multi_reduction <maximumf>, %290, %cst_95 [1] : vector<16x16xf32> to vector<16xf32>
    %292 = vector.shape_cast %291 : vector<16xf32> to vector<16x1xf32>
    %293 = vector.broadcast %292 : vector<16x1xf32> to vector<16x16xf32>
    %294 = arith.subf %290, %293 : vector<16x16xf32>
    %295 = math.exp %294 : vector<16x16xf32>
    %cst_96 = arith.constant dense<0.000000e+00> : vector<16xf32>
    %296 = vector.multi_reduction <add>, %295, %cst_96 [1] : vector<16x16xf32> to vector<16xf32>
    %297 = vector.shape_cast %296 : vector<16xf32> to vector<16x1xf32>
    %298 = tpu.reciprocal %297 {approx = true} : vector<16x1xf32> -> vector<16x1xf32>
    %299 = vector.broadcast %298 : vector<16x1xf32> to vector<16x16xf32>
    %300 = arith.mulf %295, %299 : vector<16x16xf32>
    %301 = vector.extract_strided_slice %282 {offsets = [0, 0], sizes = [16, 8], strides = [1, 1]} : vector<16x32xf32> to vector<16x8xf32>
    %cst_97 = arith.constant dense<0.000000e+00> : vector<16x8xf32>
    %302 = tpu.matmul %300, %301, %cst_97 {dimension_numbers = #tpu.dot_dimension_numbers<[1], [0], [0], [1], [0, 0, 1, 1], [], []>} : vector<16x16xf32>, vector<16x8xf32>, vector<16x8xf32> -> vector<16x8xf32>
    %303 = vector.extract_strided_slice %280 {offsets = [0, 8], sizes = [16, 8], strides = [1, 1]} : vector<16x32xf32> to vector<16x8xf32>
    %304 = vector.extract_strided_slice %281 {offsets = [0, 8], sizes = [16, 8], strides = [1, 1]} : vector<16x32xf32> to vector<16x8xf32>
    %cst_98 = arith.constant dense<0.000000e+00> : vector<16x16xf32>
    %305 = tpu.matmul %303, %304, %cst_98 {dimension_numbers = #tpu.dot_dimension_numbers<[1], [1], [0], [0], [0, 0, 1, 0], [], []>} : vector<16x8xf32>, vector<16x8xf32>, vector<16x16xf32> -> vector<16x16xf32>
    %cst_99 = arith.constant 0.353553385 : f32
    %306 = vector.broadcast %cst_99 : f32 to vector<16x16xf32>
    %307 = arith.mulf %305, %306 : vector<16x16xf32>
    %308 = arith.addf %307, %113 : vector<16x16xf32>
    %cst_100 = arith.constant dense<0xFF800000> : vector<16xf32>
    %309 = vector.multi_reduction <maximumf>, %308, %cst_100 [1] : vector<16x16xf32> to vector<16xf32>
    %310 = vector.shape_cast %309 : vector<16xf32> to vector<16x1xf32>
    %311 = vector.broadcast %310 : vector<16x1xf32> to vector<16x16xf32>
    %312 = arith.subf %308, %311 : vector<16x16xf32>
    %313 = math.exp %312 : vector<16x16xf32>
    %cst_101 = arith.constant dense<0.000000e+00> : vector<16xf32>
    %314 = vector.multi_reduction <add>, %313, %cst_101 [1] : vector<16x16xf32> to vector<16xf32>
    %315 = vector.shape_cast %314 : vector<16xf32> to vector<16x1xf32>
    %316 = tpu.reciprocal %315 {approx = true} : vector<16x1xf32> -> vector<16x1xf32>
    %317 = vector.broadcast %316 : vector<16x1xf32> to vector<16x16xf32>
    %318 = arith.mulf %313, %317 : vector<16x16xf32>
    %319 = vector.extract_strided_slice %282 {offsets = [0, 8], sizes = [16, 8], strides = [1, 1]} : vector<16x32xf32> to vector<16x8xf32>
    %cst_102 = arith.constant dense<0.000000e+00> : vector<16x8xf32>
    %320 = tpu.matmul %318, %319, %cst_102 {dimension_numbers = #tpu.dot_dimension_numbers<[1], [0], [0], [1], [0, 0, 1, 1], [], []>} : vector<16x16xf32>, vector<16x8xf32>, vector<16x8xf32> -> vector<16x8xf32>
    %321 = vector.extract_strided_slice %280 {offsets = [0, 16], sizes = [16, 8], strides = [1, 1]} : vector<16x32xf32> to vector<16x8xf32>
    %322 = vector.extract_strided_slice %281 {offsets = [0, 16], sizes = [16, 8], strides = [1, 1]} : vector<16x32xf32> to vector<16x8xf32>
    %cst_103 = arith.constant dense<0.000000e+00> : vector<16x16xf32>
    %323 = tpu.matmul %321, %322, %cst_103 {dimension_numbers = #tpu.dot_dimension_numbers<[1], [1], [0], [0], [0, 0, 1, 0], [], []>} : vector<16x8xf32>, vector<16x8xf32>, vector<16x16xf32> -> vector<16x16xf32>
    %cst_104 = arith.constant 0.353553385 : f32
    %324 = vector.broadcast %cst_104 : f32 to vector<16x16xf32>
    %325 = arith.mulf %323, %324 : vector<16x16xf32>
    %326 = arith.addf %325, %113 : vector<16x16xf32>
    %cst_105 = arith.constant dense<0xFF800000> : vector<16xf32>
    %327 = vector.multi_reduction <maximumf>, %326, %cst_105 [1] : vector<16x16xf32> to vector<16xf32>
    %328 = vector.shape_cast %327 : vector<16xf32> to vector<16x1xf32>
    %329 = vector.broadcast %328 : vector<16x1xf32> to vector<16x16xf32>
    %330 = arith.subf %326, %329 : vector<16x16xf32>
    %331 = math.exp %330 : vector<16x16xf32>
    %cst_106 = arith.constant dense<0.000000e+00> : vector<16xf32>
    %332 = vector.multi_reduction <add>, %331, %cst_106 [1] : vector<16x16xf32> to vector<16xf32>
    %333 = vector.shape_cast %332 : vector<16xf32> to vector<16x1xf32>
    %334 = tpu.reciprocal %333 {approx = true} : vector<16x1xf32> -> vector<16x1xf32>
    %335 = vector.broadcast %334 : vector<16x1xf32> to vector<16x16xf32>
    %336 = arith.mulf %331, %335 : vector<16x16xf32>
    %337 = vector.extract_strided_slice %282 {offsets = [0, 16], sizes = [16, 8], strides = [1, 1]} : vector<16x32xf32> to vector<16x8xf32>
    %cst_107 = arith.constant dense<0.000000e+00> : vector<16x8xf32>
    %338 = tpu.matmul %336, %337, %cst_107 {dimension_numbers = #tpu.dot_dimension_numbers<[1], [0], [0], [1], [0, 0, 1, 1], [], []>} : vector<16x16xf32>, vector<16x8xf32>, vector<16x8xf32> -> vector<16x8xf32>
    %339 = vector.extract_strided_slice %280 {offsets = [0, 24], sizes = [16, 8], strides = [1, 1]} : vector<16x32xf32> to vector<16x8xf32>
    %340 = vector.extract_strided_slice %281 {offsets = [0, 24], sizes = [16, 8], strides = [1, 1]} : vector<16x32xf32> to vector<16x8xf32>
    %cst_108 = arith.constant dense<0.000000e+00> : vector<16x16xf32>
    %341 = tpu.matmul %339, %340, %cst_108 {dimension_numbers = #tpu.dot_dimension_numbers<[1], [1], [0], [0], [0, 0, 1, 0], [], []>} : vector<16x8xf32>, vector<16x8xf32>, vector<16x16xf32> -> vector<16x16xf32>
    %cst_109 = arith.constant 0.353553385 : f32
    %342 = vector.broadcast %cst_109 : f32 to vector<16x16xf32>
    %343 = arith.mulf %341, %342 : vector<16x16xf32>
    %344 = arith.addf %343, %113 : vector<16x16xf32>
    %cst_110 = arith.constant dense<0xFF800000> : vector<16xf32>
    %345 = vector.multi_reduction <maximumf>, %344, %cst_110 [1] : vector<16x16xf32> to vector<16xf32>
    %346 = vector.shape_cast %345 : vector<16xf32> to vector<16x1xf32>
    %347 = vector.broadcast %346 : vector<16x1xf32> to vector<16x16xf32>
    %348 = arith.subf %344, %347 : vector<16x16xf32>
    %349 = math.exp %348 : vector<16x16xf32>
    %cst_111 = arith.constant dense<0.000000e+00> : vector<16xf32>
    %350 = vector.multi_reduction <add>, %349, %cst_111 [1] : vector<16x16xf32> to vector<16xf32>
    %351 = vector.shape_cast %350 : vector<16xf32> to vector<16x1xf32>
    %352 = tpu.reciprocal %351 {approx = true} : vector<16x1xf32> -> vector<16x1xf32>
    %353 = vector.broadcast %352 : vector<16x1xf32> to vector<16x16xf32>
    %354 = arith.mulf %349, %353 : vector<16x16xf32>
    %355 = vector.extract_strided_slice %282 {offsets = [0, 24], sizes = [16, 8], strides = [1, 1]} : vector<16x32xf32> to vector<16x8xf32>
    %cst_112 = arith.constant dense<0.000000e+00> : vector<16x8xf32>
    %356 = tpu.matmul %354, %355, %cst_112 {dimension_numbers = #tpu.dot_dimension_numbers<[1], [0], [0], [1], [0, 0, 1, 1], [], []>} : vector<16x16xf32>, vector<16x8xf32>, vector<16x8xf32> -> vector<16x8xf32>
    %357 = tpu.concatenate %302, %320, %338, %356 in 1 : vector<16x8xf32>, vector<16x8xf32>, vector<16x8xf32>, vector<16x8xf32> -> vector<16x32xf32>
    %cst_113 = arith.constant dense<0.000000e+00> : vector<16x32xf32>
    %358 = tpu.matmul %357, %283, %cst_113 {dimension_numbers = #tpu.dot_dimension_numbers<[1], [0], [0], [1], [0, 0, 1, 1], [], []>} : vector<16x32xf32>, vector<32x32xf32>, vector<16x32xf32> -> vector<16x32xf32>
    %359 = vector.broadcast %284 : vector<1x32xf32> to vector<16x32xf32>
    %360 = arith.addf %358, %359 : vector<16x32xf32>
    %361 = arith.addf %274, %360 : vector<16x32xf32>
    %c544 = arith.constant 544 : index
    %c0_114 = arith.constant 0 : index
    %362 = vector.load %arg2[%c544, %c0_114] : memref<1760x128xf32, #tpu.memory_space<vmem>>, vector<1x32xf32>
    %c552 = arith.constant 552 : index
    %c0_115 = arith.constant 0 : index
    %363 = vector.load %arg2[%c552, %c0_115] : memref<1760x128xf32, #tpu.memory_space<vmem>>, vector<1x32xf32>
    %cst_116 = arith.constant dense<0.000000e+00> : vector<16xf32>
    %364 = vector.multi_reduction <add>, %361, %cst_116 [1] : vector<16x32xf32> to vector<16xf32>
    %365 = vector.shape_cast %364 : vector<16xf32> to vector<16x1xf32>
    %cst_117 = arith.constant 3.200000e+01 : f32
    %366 = vector.broadcast %cst_117 : f32 to vector<16x1xf32>
    %367 = arith.divf %365, %366 : vector<16x1xf32>
    %368 = vector.broadcast %367 : vector<16x1xf32> to vector<16x32xf32>
    %369 = arith.subf %361, %368 : vector<16x32xf32>
    %370 = arith.mulf %369, %369 : vector<16x32xf32>
    %cst_118 = arith.constant dense<0.000000e+00> : vector<16xf32>
    %371 = vector.multi_reduction <add>, %370, %cst_118 [1] : vector<16x32xf32> to vector<16xf32>
    %372 = vector.shape_cast %371 : vector<16xf32> to vector<16x1xf32>
    %cst_119 = arith.constant 3.200000e+01 : f32
    %373 = vector.broadcast %cst_119 : f32 to vector<16x1xf32>
    %374 = arith.divf %372, %373 : vector<16x1xf32>
    %375 = vector.broadcast %367 : vector<16x1xf32> to vector<16x32xf32>
    %376 = arith.subf %361, %375 : vector<16x32xf32>
    %cst_120 = arith.constant 9.99999974E-6 : f32
    %377 = vector.broadcast %cst_120 : f32 to vector<16x1xf32>
    %378 = arith.addf %374, %377 : vector<16x1xf32>
    %379 = math.rsqrt %378 : vector<16x1xf32>
    %380 = vector.broadcast %379 : vector<16x1xf32> to vector<16x32xf32>
    %381 = arith.mulf %376, %380 : vector<16x32xf32>
    %382 = vector.broadcast %362 : vector<1x32xf32> to vector<16x32xf32>
    %383 = arith.mulf %381, %382 : vector<16x32xf32>
    %384 = vector.broadcast %363 : vector<1x32xf32> to vector<16x32xf32>
    %385 = arith.addf %383, %384 : vector<16x32xf32>
    %c560 = arith.constant 560 : index
    %c0_121 = arith.constant 0 : index
    %386 = vector.load %arg2[%c560, %c0_121] : memref<1760x128xf32, #tpu.memory_space<vmem>>, vector<32x128xf32>
    %c592 = arith.constant 592 : index
    %c0_122 = arith.constant 0 : index
    %387 = vector.load %arg2[%c592, %c0_122] : memref<1760x128xf32, #tpu.memory_space<vmem>>, vector<1x128xf32>
    %cst_123 = arith.constant dense<0.000000e+00> : vector<16x128xf32>
    %388 = tpu.matmul %385, %386, %cst_123 {dimension_numbers = #tpu.dot_dimension_numbers<[1], [0], [0], [1], [0, 0, 1, 1], [], []>} : vector<16x32xf32>, vector<32x128xf32>, vector<16x128xf32> -> vector<16x128xf32>
    %389 = vector.broadcast %387 : vector<1x128xf32> to vector<16x128xf32>
    %390 = arith.addf %388, %389 : vector<16x128xf32>
    %391 = arith.mulf %390, %390 : vector<16x128xf32>
    %392 = arith.mulf %390, %391 : vector<16x128xf32>
    %cst_124 = arith.constant 4.471500e-02 : f32
    %393 = vector.broadcast %cst_124 : f32 to vector<16x128xf32>
    %394 = arith.mulf %393, %392 : vector<16x128xf32>
    %395 = arith.addf %390, %394 : vector<16x128xf32>
    %cst_125 = arith.constant 0.797884583 : f32
    %396 = vector.broadcast %cst_125 : f32 to vector<16x128xf32>
    %397 = arith.mulf %396, %395 : vector<16x128xf32>
    %398 = math.tanh %397 : vector<16x128xf32>
    %cst_126 = arith.constant 1.000000e+00 : f32
    %399 = vector.broadcast %cst_126 : f32 to vector<16x128xf32>
    %400 = arith.addf %399, %398 : vector<16x128xf32>
    %cst_127 = arith.constant 5.000000e-01 : f32
    %401 = vector.broadcast %cst_127 : f32 to vector<16x128xf32>
    %402 = arith.mulf %401, %400 : vector<16x128xf32>
    %403 = arith.mulf %390, %402 : vector<16x128xf32>
    %c600 = arith.constant 600 : index
    %c0_128 = arith.constant 0 : index
    %404 = vector.load %arg2[%c600, %c0_128] : memref<1760x128xf32, #tpu.memory_space<vmem>>, vector<128x32xf32>
    %c728 = arith.constant 728 : index
    %c0_129 = arith.constant 0 : index
    %405 = vector.load %arg2[%c728, %c0_129] : memref<1760x128xf32, #tpu.memory_space<vmem>>, vector<1x32xf32>
    %cst_130 = arith.constant dense<0.000000e+00> : vector<16x32xf32>
    %406 = tpu.matmul %403, %404, %cst_130 {dimension_numbers = #tpu.dot_dimension_numbers<[1], [0], [0], [1], [0, 0, 1, 1], [], []>} : vector<16x128xf32>, vector<128x32xf32>, vector<16x32xf32> -> vector<16x32xf32>
    %407 = vector.broadcast %405 : vector<1x32xf32> to vector<16x32xf32>
    %408 = arith.addf %406, %407 : vector<16x32xf32>
    %409 = arith.addf %385, %408 : vector<16x32xf32>
    %c736 = arith.constant 736 : index
    %c0_131 = arith.constant 0 : index
    %410 = vector.load %arg2[%c736, %c0_131] : memref<1760x128xf32, #tpu.memory_space<vmem>>, vector<1x32xf32>
    %c744 = arith.constant 744 : index
    %c0_132 = arith.constant 0 : index
    %411 = vector.load %arg2[%c744, %c0_132] : memref<1760x128xf32, #tpu.memory_space<vmem>>, vector<1x32xf32>
    %cst_133 = arith.constant dense<0.000000e+00> : vector<16xf32>
    %412 = vector.multi_reduction <add>, %409, %cst_133 [1] : vector<16x32xf32> to vector<16xf32>
    %413 = vector.shape_cast %412 : vector<16xf32> to vector<16x1xf32>
    %cst_134 = arith.constant 3.200000e+01 : f32
    %414 = vector.broadcast %cst_134 : f32 to vector<16x1xf32>
    %415 = arith.divf %413, %414 : vector<16x1xf32>
    %416 = vector.broadcast %415 : vector<16x1xf32> to vector<16x32xf32>
    %417 = arith.subf %409, %416 : vector<16x32xf32>
    %418 = arith.mulf %417, %417 : vector<16x32xf32>
    %cst_135 = arith.constant dense<0.000000e+00> : vector<16xf32>
    %419 = vector.multi_reduction <add>, %418, %cst_135 [1] : vector<16x32xf32> to vector<16xf32>
    %420 = vector.shape_cast %419 : vector<16xf32> to vector<16x1xf32>
    %cst_136 = arith.constant 3.200000e+01 : f32
    %421 = vector.broadcast %cst_136 : f32 to vector<16x1xf32>
    %422 = arith.divf %420, %421 : vector<16x1xf32>
    %423 = vector.broadcast %415 : vector<16x1xf32> to vector<16x32xf32>
    %424 = arith.subf %409, %423 : vector<16x32xf32>
    %cst_137 = arith.constant 9.99999974E-6 : f32
    %425 = vector.broadcast %cst_137 : f32 to vector<16x1xf32>
    %426 = arith.addf %422, %425 : vector<16x1xf32>
    %427 = math.rsqrt %426 : vector<16x1xf32>
    %428 = vector.broadcast %427 : vector<16x1xf32> to vector<16x32xf32>
    %429 = arith.mulf %424, %428 : vector<16x32xf32>
    %430 = vector.broadcast %410 : vector<1x32xf32> to vector<16x32xf32>
    %431 = arith.mulf %429, %430 : vector<16x32xf32>
    %432 = vector.broadcast %411 : vector<1x32xf32> to vector<16x32xf32>
    %433 = arith.addf %431, %432 : vector<16x32xf32>
    %c752 = arith.constant 752 : index
    %c0_138 = arith.constant 0 : index
    %434 = vector.load %arg2[%c752, %c0_138] : memref<1760x128xf32, #tpu.memory_space<vmem>>, vector<256x128xf32>
    %c1008 = arith.constant 1008 : index
    %c0_139 = arith.constant 0 : index
    %435 = vector.load %arg2[%c1008, %c0_139] : memref<1760x128xf32, #tpu.memory_space<vmem>>, vector<1x128xf32>
    %436 = vector.extract_strided_slice %75 {offsets = [0, 0], sizes = [2, 32], strides = [1, 1]} : vector<16x32xf32> to vector<2x32xf32>
    %437 = vector.extract_strided_slice %434 {offsets = [0, 0], sizes = [32, 128], strides = [1, 1]} : vector<256x128xf32> to vector<32x128xf32>
    %cst_140 = arith.constant dense<0.000000e+00> : vector<2x128xf32>
    %438 = tpu.matmul %436, %437, %cst_140 {dimension_numbers = #tpu.dot_dimension_numbers<[1], [0], [0], [1], [0, 0, 1, 1], [], []>} : vector<2x32xf32>, vector<32x128xf32>, vector<2x128xf32> -> vector<2x128xf32>
    %439 = vector.extract_strided_slice %75 {offsets = [2, 0], sizes = [2, 32], strides = [1, 1]} : vector<16x32xf32> to vector<2x32xf32>
    %440 = vector.extract_strided_slice %434 {offsets = [32, 0], sizes = [32, 128], strides = [1, 1]} : vector<256x128xf32> to vector<32x128xf32>
    %cst_141 = arith.constant dense<0.000000e+00> : vector<2x128xf32>
    %441 = tpu.matmul %439, %440, %cst_141 {dimension_numbers = #tpu.dot_dimension_numbers<[1], [0], [0], [1], [0, 0, 1, 1], [], []>} : vector<2x32xf32>, vector<32x128xf32>, vector<2x128xf32> -> vector<2x128xf32>
    %442 = arith.addf %438, %441 : vector<2x128xf32>
    %443 = vector.extract_strided_slice %75 {offsets = [4, 0], sizes = [2, 32], strides = [1, 1]} : vector<16x32xf32> to vector<2x32xf32>
    %444 = vector.extract_strided_slice %434 {offsets = [64, 0], sizes = [32, 128], strides = [1, 1]} : vector<256x128xf32> to vector<32x128xf32>
    %cst_142 = arith.constant dense<0.000000e+00> : vector<2x128xf32>
    %445 = tpu.matmul %443, %444, %cst_142 {dimension_numbers = #tpu.dot_dimension_numbers<[1], [0], [0], [1], [0, 0, 1, 1], [], []>} : vector<2x32xf32>, vector<32x128xf32>, vector<2x128xf32> -> vector<2x128xf32>
    %446 = arith.addf %442, %445 : vector<2x128xf32>
    %447 = vector.extract_strided_slice %75 {offsets = [6, 0], sizes = [2, 32], strides = [1, 1]} : vector<16x32xf32> to vector<2x32xf32>
    %448 = vector.extract_strided_slice %434 {offsets = [96, 0], sizes = [32, 128], strides = [1, 1]} : vector<256x128xf32> to vector<32x128xf32>
    %cst_143 = arith.constant dense<0.000000e+00> : vector<2x128xf32>
    %449 = tpu.matmul %447, %448, %cst_143 {dimension_numbers = #tpu.dot_dimension_numbers<[1], [0], [0], [1], [0, 0, 1, 1], [], []>} : vector<2x32xf32>, vector<32x128xf32>, vector<2x128xf32> -> vector<2x128xf32>
    %450 = arith.addf %446, %449 : vector<2x128xf32>
    %451 = vector.extract_strided_slice %75 {offsets = [8, 0], sizes = [2, 32], strides = [1, 1]} : vector<16x32xf32> to vector<2x32xf32>
    %452 = vector.extract_strided_slice %434 {offsets = [128, 0], sizes = [32, 128], strides = [1, 1]} : vector<256x128xf32> to vector<32x128xf32>
    %cst_144 = arith.constant dense<0.000000e+00> : vector<2x128xf32>
    %453 = tpu.matmul %451, %452, %cst_144 {dimension_numbers = #tpu.dot_dimension_numbers<[1], [0], [0], [1], [0, 0, 1, 1], [], []>} : vector<2x32xf32>, vector<32x128xf32>, vector<2x128xf32> -> vector<2x128xf32>
    %454 = arith.addf %450, %453 : vector<2x128xf32>
    %455 = vector.extract_strided_slice %75 {offsets = [10, 0], sizes = [2, 32], strides = [1, 1]} : vector<16x32xf32> to vector<2x32xf32>
    %456 = vector.extract_strided_slice %434 {offsets = [160, 0], sizes = [32, 128], strides = [1, 1]} : vector<256x128xf32> to vector<32x128xf32>
    %cst_145 = arith.constant dense<0.000000e+00> : vector<2x128xf32>
    %457 = tpu.matmul %455, %456, %cst_145 {dimension_numbers = #tpu.dot_dimension_numbers<[1], [0], [0], [1], [0, 0, 1, 1], [], []>} : vector<2x32xf32>, vector<32x128xf32>, vector<2x128xf32> -> vector<2x128xf32>
    %458 = arith.addf %454, %457 : vector<2x128xf32>
    %459 = vector.extract_strided_slice %75 {offsets = [12, 0], sizes = [2, 32], strides = [1, 1]} : vector<16x32xf32> to vector<2x32xf32>
    %460 = vector.extract_strided_slice %434 {offsets = [192, 0], sizes = [32, 128], strides = [1, 1]} : vector<256x128xf32> to vector<32x128xf32>
    %cst_146 = arith.constant dense<0.000000e+00> : vector<2x128xf32>
    %461 = tpu.matmul %459, %460, %cst_146 {dimension_numbers = #tpu.dot_dimension_numbers<[1], [0], [0], [1], [0, 0, 1, 1], [], []>} : vector<2x32xf32>, vector<32x128xf32>, vector<2x128xf32> -> vector<2x128xf32>
    %462 = arith.addf %458, %461 : vector<2x128xf32>
    %463 = vector.extract_strided_slice %75 {offsets = [14, 0], sizes = [2, 32], strides = [1, 1]} : vector<16x32xf32> to vector<2x32xf32>
    %464 = vector.extract_strided_slice %434 {offsets = [224, 0], sizes = [32, 128], strides = [1, 1]} : vector<256x128xf32> to vector<32x128xf32>
    %cst_147 = arith.constant dense<0.000000e+00> : vector<2x128xf32>
    %465 = tpu.matmul %463, %464, %cst_147 {dimension_numbers = #tpu.dot_dimension_numbers<[1], [0], [0], [1], [0, 0, 1, 1], [], []>} : vector<2x32xf32>, vector<32x128xf32>, vector<2x128xf32> -> vector<2x128xf32>
    %466 = arith.addf %462, %465 : vector<2x128xf32>
    %467 = vector.broadcast %435 : vector<1x128xf32> to vector<2x128xf32>
    %468 = arith.addf %466, %467 : vector<2x128xf32>
    %cst_148 = arith.constant 0.000000e+00 : f32
    %469 = vector.broadcast %cst_148 : f32 to vector<2x128xf32>
    %470 = arith.maximumf %468, %469 : vector<2x128xf32>
    %c1016 = arith.constant 1016 : index
    %c0_149 = arith.constant 0 : index
    %471 = vector.load %arg2[%c1016, %c0_149] : memref<1760x128xf32, #tpu.memory_space<vmem>>, vector<128x9xf32>
    %cst_150 = arith.constant dense<0.000000e+00> : vector<2x9xf32>
    %472 = tpu.matmul %470, %471, %cst_150 {dimension_numbers = #tpu.dot_dimension_numbers<[1], [0], [0], [1], [0, 0, 1, 1], [], []>} : vector<2x128xf32>, vector<128x9xf32>, vector<2x9xf32> -> vector<2x9xf32>
    %c1144 = arith.constant 1144 : index
    %c0_151 = arith.constant 0 : index
    %473 = vector.load %arg2[%c1144, %c0_151] : memref<1760x128xf32, #tpu.memory_space<vmem>>, vector<1x9xf32>
    %474 = vector.broadcast %473 : vector<1x9xf32> to vector<2x9xf32>
    %475 = arith.addf %472, %474 : vector<2x9xf32>
    %476 = tpu.concatenate %4, %433 in 0 : vector<8x32xf32>, vector<16x32xf32> -> vector<24x32xf32>
    %477 = tpu.iota {dimensions = array<i32: 0>} : vector<8x24xi32>
    %478 = tpu.iota {dimensions = array<i32: 1>} : vector<8x24xi32>
    %c2_i32_152 = arith.constant 2 : i32
    %c0_i32_153 = arith.constant 0 : i32
    %479 = arith.cmpi eq, %c2_i32_152, %c0_i32_153 : i32
    %c1_i32_154 = arith.constant 1 : i32
    %480 = arith.select %479, %c1_i32_154, %c2_i32_152 : i32
    %481 = vector.broadcast %480 : i32 to vector<8x24xi32>
    %482 = arith.remsi %477, %481 : vector<8x24xi32>
    %c0_i32_155 = arith.constant 0 : i32
    %483 = vector.broadcast %c0_i32_155 : i32 to vector<8x24xi32>
    %484 = arith.cmpi ne, %482, %483 : vector<8x24xi32>
    %c0_i32_156 = arith.constant 0 : i32
    %485 = vector.broadcast %c0_i32_156 : i32 to vector<8x24xi32>
    %486 = arith.cmpi slt, %482, %485 : vector<8x24xi32>
    %c0_i32_157 = arith.constant 0 : i32
    %487 = arith.cmpi slt, %480, %c0_i32_157 : i32
    %488 = vector.broadcast %487 : i1 to vector<8x24xi1>
    %489 = vector.broadcast %488 : vector<8x24xi1> to vector<8x24xi1>
    %490 = arith.xori %486, %489 : vector<8x24xi1>
    %491 = arith.andi %490, %484 : vector<8x24xi1>
    %492 = vector.broadcast %480 : i32 to vector<8x24xi32>
    %493 = arith.addi %482, %492 : vector<8x24xi32>
    %494 = arith.select %491, %493, %482 : vector<8x24xi1>, vector<8x24xi32>
    %c2_i32_158 = arith.constant 2 : i32
    %c0_i32_159 = arith.constant 0 : i32
    %495 = arith.cmpi eq, %c2_i32_158, %c0_i32_159 : i32
    %c1_i32_160 = arith.constant 1 : i32
    %496 = arith.select %495, %c1_i32_160, %c2_i32_158 : i32
    %497 = vector.broadcast %496 : i32 to vector<8x24xi32>
    %498 = arith.remsi %478, %497 : vector<8x24xi32>
    %c0_i32_161 = arith.constant 0 : i32
    %499 = vector.broadcast %c0_i32_161 : i32 to vector<8x24xi32>
    %500 = arith.cmpi ne, %498, %499 : vector<8x24xi32>
    %c0_i32_162 = arith.constant 0 : i32
    %501 = vector.broadcast %c0_i32_162 : i32 to vector<8x24xi32>
    %502 = arith.cmpi slt, %498, %501 : vector<8x24xi32>
    %c0_i32_163 = arith.constant 0 : i32
    %503 = arith.cmpi slt, %496, %c0_i32_163 : i32
    %504 = vector.broadcast %503 : i1 to vector<8x24xi1>
    %505 = vector.broadcast %504 : vector<8x24xi1> to vector<8x24xi1>
    %506 = arith.xori %502, %505 : vector<8x24xi1>
    %507 = arith.andi %506, %500 : vector<8x24xi1>
    %508 = vector.broadcast %496 : i32 to vector<8x24xi32>
    %509 = arith.addi %498, %508 : vector<8x24xi32>
    %510 = arith.select %507, %509, %498 : vector<8x24xi1>, vector<8x24xi32>
    %511 = arith.cmpi eq, %494, %510 : vector<8x24xi32>
    %cst_164 = arith.constant 0.000000e+00 : f32
    %cst_165 = arith.constant -1.000000e+09 : f32
    %512 = vector.broadcast %cst_164 : f32 to vector<8x24xf32>
    %513 = vector.broadcast %cst_165 : f32 to vector<8x24xf32>
    %514 = arith.select %511, %512, %513 : vector<8x24xi1>, vector<8x24xf32>
    %c1152 = arith.constant 1152 : index
    %c0_166 = arith.constant 0 : index
    %515 = vector.load %arg2[%c1152, %c0_166] : memref<1760x128xf32, #tpu.memory_space<vmem>>, vector<8x32xf32>
    %c1160 = arith.constant 1160 : index
    %c0_167 = arith.constant 0 : index
    %516 = vector.load %arg2[%c1160, %c0_167] : memref<1760x128xf32, #tpu.memory_space<vmem>>, vector<32x32xf32>
    %c1192 = arith.constant 1192 : index
    %c0_168 = arith.constant 0 : index
    %517 = vector.load %arg2[%c1192, %c0_168] : memref<1760x128xf32, #tpu.memory_space<vmem>>, vector<1x32xf32>
    %cst_169 = arith.constant dense<0.000000e+00> : vector<8x32xf32>
    %518 = tpu.matmul %515, %516, %cst_169 {dimension_numbers = #tpu.dot_dimension_numbers<[1], [0], [0], [1], [0, 0, 1, 1], [], []>} : vector<8x32xf32>, vector<32x32xf32>, vector<8x32xf32> -> vector<8x32xf32>
    %519 = vector.broadcast %517 : vector<1x32xf32> to vector<8x32xf32>
    %520 = arith.addf %518, %519 : vector<8x32xf32>
    %c1200 = arith.constant 1200 : index
    %c0_170 = arith.constant 0 : index
    %521 = vector.load %arg2[%c1200, %c0_170] : memref<1760x128xf32, #tpu.memory_space<vmem>>, vector<32x64xf32>
    %c1232 = arith.constant 1232 : index
    %c0_171 = arith.constant 0 : index
    %522 = vector.load %arg2[%c1232, %c0_171] : memref<1760x128xf32, #tpu.memory_space<vmem>>, vector<1x64xf32>
    %cst_172 = arith.constant dense<0.000000e+00> : vector<24x64xf32>
    %523 = tpu.matmul %476, %521, %cst_172 {dimension_numbers = #tpu.dot_dimension_numbers<[1], [0], [0], [1], [0, 0, 1, 1], [], []>} : vector<24x32xf32>, vector<32x64xf32>, vector<24x64xf32> -> vector<24x64xf32>
    %524 = vector.broadcast %522 : vector<1x64xf32> to vector<24x64xf32>
    %525 = arith.addf %523, %524 : vector<24x64xf32>
    %526 = vector.extract_strided_slice %525 {offsets = [0, 0], sizes = [24, 32], strides = [1, 1]} : vector<24x64xf32> to vector<24x32xf32>
    %527 = vector.extract_strided_slice %525 {offsets = [0, 32], sizes = [24, 32], strides = [1, 1]} : vector<24x64xf32> to vector<24x32xf32>
    %c1240 = arith.constant 1240 : index
    %c0_173 = arith.constant 0 : index
    %528 = vector.load %arg2[%c1240, %c0_173] : memref<1760x128xf32, #tpu.memory_space<vmem>>, vector<32x32xf32>
    %c1272 = arith.constant 1272 : index
    %c0_174 = arith.constant 0 : index
    %529 = vector.load %arg2[%c1272, %c0_174] : memref<1760x128xf32, #tpu.memory_space<vmem>>, vector<1x32xf32>
    %530 = vector.extract_strided_slice %520 {offsets = [0, 0], sizes = [8, 8], strides = [1, 1]} : vector<8x32xf32> to vector<8x8xf32>
    %531 = vector.extract_strided_slice %526 {offsets = [0, 0], sizes = [24, 8], strides = [1, 1]} : vector<24x32xf32> to vector<24x8xf32>
    %cst_175 = arith.constant dense<0.000000e+00> : vector<8x24xf32>
    %532 = tpu.matmul %530, %531, %cst_175 {dimension_numbers = #tpu.dot_dimension_numbers<[1], [1], [0], [0], [0, 0, 1, 0], [], []>} : vector<8x8xf32>, vector<24x8xf32>, vector<8x24xf32> -> vector<8x24xf32>
    %cst_176 = arith.constant 0.353553385 : f32
    %533 = vector.broadcast %cst_176 : f32 to vector<8x24xf32>
    %534 = arith.mulf %532, %533 : vector<8x24xf32>
    %535 = arith.addf %534, %514 : vector<8x24xf32>
    %cst_177 = arith.constant dense<0xFF800000> : vector<8xf32>
    %536 = vector.multi_reduction <maximumf>, %535, %cst_177 [1] : vector<8x24xf32> to vector<8xf32>
    %537 = vector.shape_cast %536 : vector<8xf32> to vector<8x1xf32>
    %538 = vector.broadcast %537 : vector<8x1xf32> to vector<8x24xf32>
    %539 = arith.subf %535, %538 : vector<8x24xf32>
    %540 = math.exp %539 : vector<8x24xf32>
    %cst_178 = arith.constant dense<0.000000e+00> : vector<8xf32>
    %541 = vector.multi_reduction <add>, %540, %cst_178 [1] : vector<8x24xf32> to vector<8xf32>
    %542 = vector.shape_cast %541 : vector<8xf32> to vector<8x1xf32>
    %543 = tpu.reciprocal %542 {approx = true} : vector<8x1xf32> -> vector<8x1xf32>
    %544 = vector.broadcast %543 : vector<8x1xf32> to vector<8x24xf32>
    %545 = arith.mulf %540, %544 : vector<8x24xf32>
    %546 = vector.extract_strided_slice %527 {offsets = [0, 0], sizes = [24, 8], strides = [1, 1]} : vector<24x32xf32> to vector<24x8xf32>
    %cst_179 = arith.constant dense<0.000000e+00> : vector<8x8xf32>
    %547 = tpu.matmul %545, %546, %cst_179 {dimension_numbers = #tpu.dot_dimension_numbers<[1], [0], [0], [1], [0, 0, 1, 1], [], []>} : vector<8x24xf32>, vector<24x8xf32>, vector<8x8xf32> -> vector<8x8xf32>
    %548 = vector.extract_strided_slice %520 {offsets = [0, 8], sizes = [8, 8], strides = [1, 1]} : vector<8x32xf32> to vector<8x8xf32>
    %549 = vector.extract_strided_slice %526 {offsets = [0, 8], sizes = [24, 8], strides = [1, 1]} : vector<24x32xf32> to vector<24x8xf32>
    %cst_180 = arith.constant dense<0.000000e+00> : vector<8x24xf32>
    %550 = tpu.matmul %548, %549, %cst_180 {dimension_numbers = #tpu.dot_dimension_numbers<[1], [1], [0], [0], [0, 0, 1, 0], [], []>} : vector<8x8xf32>, vector<24x8xf32>, vector<8x24xf32> -> vector<8x24xf32>
    %cst_181 = arith.constant 0.353553385 : f32
    %551 = vector.broadcast %cst_181 : f32 to vector<8x24xf32>
    %552 = arith.mulf %550, %551 : vector<8x24xf32>
    %553 = arith.addf %552, %514 : vector<8x24xf32>
    %cst_182 = arith.constant dense<0xFF800000> : vector<8xf32>
    %554 = vector.multi_reduction <maximumf>, %553, %cst_182 [1] : vector<8x24xf32> to vector<8xf32>
    %555 = vector.shape_cast %554 : vector<8xf32> to vector<8x1xf32>
    %556 = vector.broadcast %555 : vector<8x1xf32> to vector<8x24xf32>
    %557 = arith.subf %553, %556 : vector<8x24xf32>
    %558 = math.exp %557 : vector<8x24xf32>
    %cst_183 = arith.constant dense<0.000000e+00> : vector<8xf32>
    %559 = vector.multi_reduction <add>, %558, %cst_183 [1] : vector<8x24xf32> to vector<8xf32>
    %560 = vector.shape_cast %559 : vector<8xf32> to vector<8x1xf32>
    %561 = tpu.reciprocal %560 {approx = true} : vector<8x1xf32> -> vector<8x1xf32>
    %562 = vector.broadcast %561 : vector<8x1xf32> to vector<8x24xf32>
    %563 = arith.mulf %558, %562 : vector<8x24xf32>
    %564 = vector.extract_strided_slice %527 {offsets = [0, 8], sizes = [24, 8], strides = [1, 1]} : vector<24x32xf32> to vector<24x8xf32>
    %cst_184 = arith.constant dense<0.000000e+00> : vector<8x8xf32>
    %565 = tpu.matmul %563, %564, %cst_184 {dimension_numbers = #tpu.dot_dimension_numbers<[1], [0], [0], [1], [0, 0, 1, 1], [], []>} : vector<8x24xf32>, vector<24x8xf32>, vector<8x8xf32> -> vector<8x8xf32>
    %566 = vector.extract_strided_slice %520 {offsets = [0, 16], sizes = [8, 8], strides = [1, 1]} : vector<8x32xf32> to vector<8x8xf32>
    %567 = vector.extract_strided_slice %526 {offsets = [0, 16], sizes = [24, 8], strides = [1, 1]} : vector<24x32xf32> to vector<24x8xf32>
    %cst_185 = arith.constant dense<0.000000e+00> : vector<8x24xf32>
    %568 = tpu.matmul %566, %567, %cst_185 {dimension_numbers = #tpu.dot_dimension_numbers<[1], [1], [0], [0], [0, 0, 1, 0], [], []>} : vector<8x8xf32>, vector<24x8xf32>, vector<8x24xf32> -> vector<8x24xf32>
    %cst_186 = arith.constant 0.353553385 : f32
    %569 = vector.broadcast %cst_186 : f32 to vector<8x24xf32>
    %570 = arith.mulf %568, %569 : vector<8x24xf32>
    %571 = arith.addf %570, %514 : vector<8x24xf32>
    %cst_187 = arith.constant dense<0xFF800000> : vector<8xf32>
    %572 = vector.multi_reduction <maximumf>, %571, %cst_187 [1] : vector<8x24xf32> to vector<8xf32>
    %573 = vector.shape_cast %572 : vector<8xf32> to vector<8x1xf32>
    %574 = vector.broadcast %573 : vector<8x1xf32> to vector<8x24xf32>
    %575 = arith.subf %571, %574 : vector<8x24xf32>
    %576 = math.exp %575 : vector<8x24xf32>
    %cst_188 = arith.constant dense<0.000000e+00> : vector<8xf32>
    %577 = vector.multi_reduction <add>, %576, %cst_188 [1] : vector<8x24xf32> to vector<8xf32>
    %578 = vector.shape_cast %577 : vector<8xf32> to vector<8x1xf32>
    %579 = tpu.reciprocal %578 {approx = true} : vector<8x1xf32> -> vector<8x1xf32>
    %580 = vector.broadcast %579 : vector<8x1xf32> to vector<8x24xf32>
    %581 = arith.mulf %576, %580 : vector<8x24xf32>
    %582 = vector.extract_strided_slice %527 {offsets = [0, 16], sizes = [24, 8], strides = [1, 1]} : vector<24x32xf32> to vector<24x8xf32>
    %cst_189 = arith.constant dense<0.000000e+00> : vector<8x8xf32>
    %583 = tpu.matmul %581, %582, %cst_189 {dimension_numbers = #tpu.dot_dimension_numbers<[1], [0], [0], [1], [0, 0, 1, 1], [], []>} : vector<8x24xf32>, vector<24x8xf32>, vector<8x8xf32> -> vector<8x8xf32>
    %584 = vector.extract_strided_slice %520 {offsets = [0, 24], sizes = [8, 8], strides = [1, 1]} : vector<8x32xf32> to vector<8x8xf32>
    %585 = vector.extract_strided_slice %526 {offsets = [0, 24], sizes = [24, 8], strides = [1, 1]} : vector<24x32xf32> to vector<24x8xf32>
    %cst_190 = arith.constant dense<0.000000e+00> : vector<8x24xf32>
    %586 = tpu.matmul %584, %585, %cst_190 {dimension_numbers = #tpu.dot_dimension_numbers<[1], [1], [0], [0], [0, 0, 1, 0], [], []>} : vector<8x8xf32>, vector<24x8xf32>, vector<8x24xf32> -> vector<8x24xf32>
    %cst_191 = arith.constant 0.353553385 : f32
    %587 = vector.broadcast %cst_191 : f32 to vector<8x24xf32>
    %588 = arith.mulf %586, %587 : vector<8x24xf32>
    %589 = arith.addf %588, %514 : vector<8x24xf32>
    %cst_192 = arith.constant dense<0xFF800000> : vector<8xf32>
    %590 = vector.multi_reduction <maximumf>, %589, %cst_192 [1] : vector<8x24xf32> to vector<8xf32>
    %591 = vector.shape_cast %590 : vector<8xf32> to vector<8x1xf32>
    %592 = vector.broadcast %591 : vector<8x1xf32> to vector<8x24xf32>
    %593 = arith.subf %589, %592 : vector<8x24xf32>
    %594 = math.exp %593 : vector<8x24xf32>
    %cst_193 = arith.constant dense<0.000000e+00> : vector<8xf32>
    %595 = vector.multi_reduction <add>, %594, %cst_193 [1] : vector<8x24xf32> to vector<8xf32>
    %596 = vector.shape_cast %595 : vector<8xf32> to vector<8x1xf32>
    %597 = tpu.reciprocal %596 {approx = true} : vector<8x1xf32> -> vector<8x1xf32>
    %598 = vector.broadcast %597 : vector<8x1xf32> to vector<8x24xf32>
    %599 = arith.mulf %594, %598 : vector<8x24xf32>
    %600 = vector.extract_strided_slice %527 {offsets = [0, 24], sizes = [24, 8], strides = [1, 1]} : vector<24x32xf32> to vector<24x8xf32>
    %cst_194 = arith.constant dense<0.000000e+00> : vector<8x8xf32>
    %601 = tpu.matmul %599, %600, %cst_194 {dimension_numbers = #tpu.dot_dimension_numbers<[1], [0], [0], [1], [0, 0, 1, 1], [], []>} : vector<8x24xf32>, vector<24x8xf32>, vector<8x8xf32> -> vector<8x8xf32>
    %602 = tpu.concatenate %547, %565, %583, %601 in 1 : vector<8x8xf32>, vector<8x8xf32>, vector<8x8xf32>, vector<8x8xf32> -> vector<8x32xf32>
    %cst_195 = arith.constant dense<0.000000e+00> : vector<8x32xf32>
    %603 = tpu.matmul %602, %528, %cst_195 {dimension_numbers = #tpu.dot_dimension_numbers<[1], [0], [0], [1], [0, 0, 1, 1], [], []>} : vector<8x32xf32>, vector<32x32xf32>, vector<8x32xf32> -> vector<8x32xf32>
    %604 = vector.broadcast %529 : vector<1x32xf32> to vector<8x32xf32>
    %605 = arith.addf %603, %604 : vector<8x32xf32>
    %606 = arith.addf %515, %605 : vector<8x32xf32>
    %c1280 = arith.constant 1280 : index
    %c0_196 = arith.constant 0 : index
    %607 = vector.load %arg2[%c1280, %c0_196] : memref<1760x128xf32, #tpu.memory_space<vmem>>, vector<1x32xf32>
    %c1288 = arith.constant 1288 : index
    %c0_197 = arith.constant 0 : index
    %608 = vector.load %arg2[%c1288, %c0_197] : memref<1760x128xf32, #tpu.memory_space<vmem>>, vector<1x32xf32>
    %cst_198 = arith.constant dense<0.000000e+00> : vector<8xf32>
    %609 = vector.multi_reduction <add>, %606, %cst_198 [1] : vector<8x32xf32> to vector<8xf32>
    %610 = vector.shape_cast %609 : vector<8xf32> to vector<8x1xf32>
    %cst_199 = arith.constant 3.200000e+01 : f32
    %611 = vector.broadcast %cst_199 : f32 to vector<8x1xf32>
    %612 = arith.divf %610, %611 : vector<8x1xf32>
    %613 = vector.broadcast %612 : vector<8x1xf32> to vector<8x32xf32>
    %614 = arith.subf %606, %613 : vector<8x32xf32>
    %615 = arith.mulf %614, %614 : vector<8x32xf32>
    %cst_200 = arith.constant dense<0.000000e+00> : vector<8xf32>
    %616 = vector.multi_reduction <add>, %615, %cst_200 [1] : vector<8x32xf32> to vector<8xf32>
    %617 = vector.shape_cast %616 : vector<8xf32> to vector<8x1xf32>
    %cst_201 = arith.constant 3.200000e+01 : f32
    %618 = vector.broadcast %cst_201 : f32 to vector<8x1xf32>
    %619 = arith.divf %617, %618 : vector<8x1xf32>
    %620 = vector.broadcast %612 : vector<8x1xf32> to vector<8x32xf32>
    %621 = arith.subf %606, %620 : vector<8x32xf32>
    %cst_202 = arith.constant 9.99999974E-6 : f32
    %622 = vector.broadcast %cst_202 : f32 to vector<8x1xf32>
    %623 = arith.addf %619, %622 : vector<8x1xf32>
    %624 = math.rsqrt %623 : vector<8x1xf32>
    %625 = vector.broadcast %624 : vector<8x1xf32> to vector<8x32xf32>
    %626 = arith.mulf %621, %625 : vector<8x32xf32>
    %627 = vector.broadcast %607 : vector<1x32xf32> to vector<8x32xf32>
    %628 = arith.mulf %626, %627 : vector<8x32xf32>
    %629 = vector.broadcast %608 : vector<1x32xf32> to vector<8x32xf32>
    %630 = arith.addf %628, %629 : vector<8x32xf32>
    %c1296 = arith.constant 1296 : index
    %c0_203 = arith.constant 0 : index
    %631 = vector.load %arg2[%c1296, %c0_203] : memref<1760x128xf32, #tpu.memory_space<vmem>>, vector<32x128xf32>
    %c1328 = arith.constant 1328 : index
    %c0_204 = arith.constant 0 : index
    %632 = vector.load %arg2[%c1328, %c0_204] : memref<1760x128xf32, #tpu.memory_space<vmem>>, vector<1x128xf32>
    %cst_205 = arith.constant dense<0.000000e+00> : vector<8x128xf32>
    %633 = tpu.matmul %630, %631, %cst_205 {dimension_numbers = #tpu.dot_dimension_numbers<[1], [0], [0], [1], [0, 0, 1, 1], [], []>} : vector<8x32xf32>, vector<32x128xf32>, vector<8x128xf32> -> vector<8x128xf32>
    %634 = vector.broadcast %632 : vector<1x128xf32> to vector<8x128xf32>
    %635 = arith.addf %633, %634 : vector<8x128xf32>
    %636 = arith.mulf %635, %635 : vector<8x128xf32>
    %637 = arith.mulf %635, %636 : vector<8x128xf32>
    %cst_206 = arith.constant 4.471500e-02 : f32
    %638 = vector.broadcast %cst_206 : f32 to vector<8x128xf32>
    %639 = arith.mulf %638, %637 : vector<8x128xf32>
    %640 = arith.addf %635, %639 : vector<8x128xf32>
    %cst_207 = arith.constant 0.797884583 : f32
    %641 = vector.broadcast %cst_207 : f32 to vector<8x128xf32>
    %642 = arith.mulf %641, %640 : vector<8x128xf32>
    %643 = math.tanh %642 : vector<8x128xf32>
    %cst_208 = arith.constant 1.000000e+00 : f32
    %644 = vector.broadcast %cst_208 : f32 to vector<8x128xf32>
    %645 = arith.addf %644, %643 : vector<8x128xf32>
    %cst_209 = arith.constant 5.000000e-01 : f32
    %646 = vector.broadcast %cst_209 : f32 to vector<8x128xf32>
    %647 = arith.mulf %646, %645 : vector<8x128xf32>
    %648 = arith.mulf %635, %647 : vector<8x128xf32>
    %c1336 = arith.constant 1336 : index
    %c0_210 = arith.constant 0 : index
    %649 = vector.load %arg2[%c1336, %c0_210] : memref<1760x128xf32, #tpu.memory_space<vmem>>, vector<128x32xf32>
    %c1464 = arith.constant 1464 : index
    %c0_211 = arith.constant 0 : index
    %650 = vector.load %arg2[%c1464, %c0_211] : memref<1760x128xf32, #tpu.memory_space<vmem>>, vector<1x32xf32>
    %cst_212 = arith.constant dense<0.000000e+00> : vector<8x32xf32>
    %651 = tpu.matmul %648, %649, %cst_212 {dimension_numbers = #tpu.dot_dimension_numbers<[1], [0], [0], [1], [0, 0, 1, 1], [], []>} : vector<8x128xf32>, vector<128x32xf32>, vector<8x32xf32> -> vector<8x32xf32>
    %652 = vector.broadcast %650 : vector<1x32xf32> to vector<8x32xf32>
    %653 = arith.addf %651, %652 : vector<8x32xf32>
    %654 = arith.addf %630, %653 : vector<8x32xf32>
    %c1472 = arith.constant 1472 : index
    %c0_213 = arith.constant 0 : index
    %655 = vector.load %arg2[%c1472, %c0_213] : memref<1760x128xf32, #tpu.memory_space<vmem>>, vector<1x32xf32>
    %c1480 = arith.constant 1480 : index
    %c0_214 = arith.constant 0 : index
    %656 = vector.load %arg2[%c1480, %c0_214] : memref<1760x128xf32, #tpu.memory_space<vmem>>, vector<1x32xf32>
    %cst_215 = arith.constant dense<0.000000e+00> : vector<8xf32>
    %657 = vector.multi_reduction <add>, %654, %cst_215 [1] : vector<8x32xf32> to vector<8xf32>
    %658 = vector.shape_cast %657 : vector<8xf32> to vector<8x1xf32>
    %cst_216 = arith.constant 3.200000e+01 : f32
    %659 = vector.broadcast %cst_216 : f32 to vector<8x1xf32>
    %660 = arith.divf %658, %659 : vector<8x1xf32>
    %661 = vector.broadcast %660 : vector<8x1xf32> to vector<8x32xf32>
    %662 = arith.subf %654, %661 : vector<8x32xf32>
    %663 = arith.mulf %662, %662 : vector<8x32xf32>
    %cst_217 = arith.constant dense<0.000000e+00> : vector<8xf32>
    %664 = vector.multi_reduction <add>, %663, %cst_217 [1] : vector<8x32xf32> to vector<8xf32>
    %665 = vector.shape_cast %664 : vector<8xf32> to vector<8x1xf32>
    %cst_218 = arith.constant 3.200000e+01 : f32
    %666 = vector.broadcast %cst_218 : f32 to vector<8x1xf32>
    %667 = arith.divf %665, %666 : vector<8x1xf32>
    %668 = vector.broadcast %660 : vector<8x1xf32> to vector<8x32xf32>
    %669 = arith.subf %654, %668 : vector<8x32xf32>
    %cst_219 = arith.constant 9.99999974E-6 : f32
    %670 = vector.broadcast %cst_219 : f32 to vector<8x1xf32>
    %671 = arith.addf %667, %670 : vector<8x1xf32>
    %672 = math.rsqrt %671 : vector<8x1xf32>
    %673 = vector.broadcast %672 : vector<8x1xf32> to vector<8x32xf32>
    %674 = arith.mulf %669, %673 : vector<8x32xf32>
    %675 = vector.broadcast %655 : vector<1x32xf32> to vector<8x32xf32>
    %676 = arith.mulf %674, %675 : vector<8x32xf32>
    %677 = vector.broadcast %656 : vector<1x32xf32> to vector<8x32xf32>
    %678 = arith.addf %676, %677 : vector<8x32xf32>
    %c1488 = arith.constant 1488 : index
    %c0_220 = arith.constant 0 : index
    %679 = vector.load %arg2[%c1488, %c0_220] : memref<1760x128xf32, #tpu.memory_space<vmem>>, vector<128x128xf32>
    %c1616 = arith.constant 1616 : index
    %c0_221 = arith.constant 0 : index
    %680 = vector.load %arg2[%c1616, %c0_221] : memref<1760x128xf32, #tpu.memory_space<vmem>>, vector<1x128xf32>
    %681 = vector.extract_strided_slice %678 {offsets = [0, 0], sizes = [2, 32], strides = [1, 1]} : vector<8x32xf32> to vector<2x32xf32>
    %682 = vector.extract_strided_slice %679 {offsets = [0, 0], sizes = [32, 128], strides = [1, 1]} : vector<128x128xf32> to vector<32x128xf32>
    %cst_222 = arith.constant dense<0.000000e+00> : vector<2x128xf32>
    %683 = tpu.matmul %681, %682, %cst_222 {dimension_numbers = #tpu.dot_dimension_numbers<[1], [0], [0], [1], [0, 0, 1, 1], [], []>} : vector<2x32xf32>, vector<32x128xf32>, vector<2x128xf32> -> vector<2x128xf32>
    %684 = vector.extract_strided_slice %678 {offsets = [2, 0], sizes = [2, 32], strides = [1, 1]} : vector<8x32xf32> to vector<2x32xf32>
    %685 = vector.extract_strided_slice %679 {offsets = [32, 0], sizes = [32, 128], strides = [1, 1]} : vector<128x128xf32> to vector<32x128xf32>
    %cst_223 = arith.constant dense<0.000000e+00> : vector<2x128xf32>
    %686 = tpu.matmul %684, %685, %cst_223 {dimension_numbers = #tpu.dot_dimension_numbers<[1], [0], [0], [1], [0, 0, 1, 1], [], []>} : vector<2x32xf32>, vector<32x128xf32>, vector<2x128xf32> -> vector<2x128xf32>
    %687 = arith.addf %683, %686 : vector<2x128xf32>
    %688 = vector.extract_strided_slice %678 {offsets = [4, 0], sizes = [2, 32], strides = [1, 1]} : vector<8x32xf32> to vector<2x32xf32>
    %689 = vector.extract_strided_slice %679 {offsets = [64, 0], sizes = [32, 128], strides = [1, 1]} : vector<128x128xf32> to vector<32x128xf32>
    %cst_224 = arith.constant dense<0.000000e+00> : vector<2x128xf32>
    %690 = tpu.matmul %688, %689, %cst_224 {dimension_numbers = #tpu.dot_dimension_numbers<[1], [0], [0], [1], [0, 0, 1, 1], [], []>} : vector<2x32xf32>, vector<32x128xf32>, vector<2x128xf32> -> vector<2x128xf32>
    %691 = arith.addf %687, %690 : vector<2x128xf32>
    %692 = vector.extract_strided_slice %678 {offsets = [6, 0], sizes = [2, 32], strides = [1, 1]} : vector<8x32xf32> to vector<2x32xf32>
    %693 = vector.extract_strided_slice %679 {offsets = [96, 0], sizes = [32, 128], strides = [1, 1]} : vector<128x128xf32> to vector<32x128xf32>
    %cst_225 = arith.constant dense<0.000000e+00> : vector<2x128xf32>
    %694 = tpu.matmul %692, %693, %cst_225 {dimension_numbers = #tpu.dot_dimension_numbers<[1], [0], [0], [1], [0, 0, 1, 1], [], []>} : vector<2x32xf32>, vector<32x128xf32>, vector<2x128xf32> -> vector<2x128xf32>
    %695 = arith.addf %691, %694 : vector<2x128xf32>
    %696 = vector.broadcast %680 : vector<1x128xf32> to vector<2x128xf32>
    %697 = arith.addf %695, %696 : vector<2x128xf32>
    %cst_226 = arith.constant 0.000000e+00 : f32
    %698 = vector.broadcast %cst_226 : f32 to vector<2x128xf32>
    %699 = arith.maximumf %697, %698 : vector<2x128xf32>
    %c1624 = arith.constant 1624 : index
    %c0_227 = arith.constant 0 : index
    %700 = vector.load %arg2[%c1624, %c0_227] : memref<1760x128xf32, #tpu.memory_space<vmem>>, vector<128x40xf32>
    %cst_228 = arith.constant dense<0.000000e+00> : vector<2x40xf32>
    %701 = tpu.matmul %699, %700, %cst_228 {dimension_numbers = #tpu.dot_dimension_numbers<[1], [0], [0], [1], [0, 0, 1, 1], [], []>} : vector<2x128xf32>, vector<128x40xf32>, vector<2x40xf32> -> vector<2x40xf32>
    %c1752 = arith.constant 1752 : index
    %c0_229 = arith.constant 0 : index
    %702 = vector.load %arg2[%c1752, %c0_229] : memref<1760x128xf32, #tpu.memory_space<vmem>>, vector<1x40xf32>
    %703 = vector.broadcast %702 : vector<1x40xf32> to vector<2x40xf32>
    %704 = arith.addf %701, %703 : vector<2x40xf32>
    %c0_230 = arith.constant 0 : index
    %c0_231 = arith.constant 0 : index
    %705 = vector.load %arg3[%c0_230, %c0_231] : memref<2x40xf32, #tpu.memory_space<vmem>>, vector<2x40xf32>
    tpu.vector_store %arg3[%c0_230, %c0_231], %704 {strides = array<i32>} : memref<2x40xf32, #tpu.memory_space<vmem>>, vector<2x40xf32>,
    %c0_232 = arith.constant 0 : index
    %c0_233 = arith.constant 0 : index
    %706 = vector.load %arg4[%c0_232, %c0_233] : memref<2x9xf32, #tpu.memory_space<vmem>>, vector<2x9xf32>
    tpu.vector_store %arg4[%c0_232, %c0_233], %475 {strides = array<i32>} : memref<2x9xf32, #tpu.memory_space<vmem>>, vector<2x9xf32>,
    return
  }
}

</mosaic_0001>

<bundles_post_ra>
// kernel: student_agent_rma_forward.1
= control target key start
LH: loop header
LB: loop body
LE: loop exit
PB: predicated region body
PF: predicated region fallthrough
CT: control target
= control target key end

     0   :  { %10 = vsyncpa [#allocation3], 0  ;;  %s9471_s0 = inlined_call_operand.vmem [shape: f32[8,64], index: 0, kind: input, shape index: {}]   ;;  %s9472_s1 = inlined_call_operand.vmem [shape: f32[256,8], index: 1, kind: input, shape index: {}]   ;;  %s9473_s2 = inlined_call_operand.hbm [shape: f32[1760,128], index: 2, kind: input, shape index: {}]   ;;  %s9474_s3 = inlined_call_operand.vmem [shape: f32[2,40], index: 3, kind: output, shape index: {0}]   ;;  %s9475_s4 = inlined_call_operand.hbm [shape: f32[2,9], index: 4, kind: output, shape index: {1}]  }
   0x1   :  { %11 = vsyncpa [#allocation4], 0  ;;  %s8477_s15 = smov [#allocation2]   ;;  %s8429_s19 = scalar_lea.hbm %s9473_s2, 28160 }
   0x2   :  { %s21_s16 = sshll.u32 %s8477_s15, 4  ;;  %p8430_p0 = scmp.ne.s32.totalorder %s9473_s2, %s8429_s19  ;;  %s22_s16 = int_to_ptr.vmem [resolvable:$true] %s21_s16 }
   0x3   :  { %p8433_p1 = scmp.lt.u32.totalorder %s8429_s19, %s9473_s2 }
   0x5   :  { %p8435_p2 = pnand %p8433_p1, %p8430_p0 }
   0x7   :  { %8438 = shalt.err (!%p8435_p2)
}
   0x8   :  { %s8439_s24 = scalar_lea.vmem %s22_s16, 28160  ;;  %p8444_p4 = scmp.lt.s32.totalorder %s22_s16, %s22_s16 }
   0x9   :  { %p8440_p3 = scmp.ne.s32.totalorder %s22_s16, %s8439_s24  ;;  %p8445_p5 = scmp.lt.s32.totalorder %s8439_s24, %s8439_s24 }
   0xb   :  { %p8446_p6 = por %p8445_p5, %p8444_p4 }
   0xd   :  { %p8447_p7 = pnand %p8446_p6, %p8440_p3 }
   0xf   :  { %8450 = shalt.err (!%p8447_p7)
}
  0x10   :  { %s8478_s25 = smov 128   ;;  %s8479_s26 = smov 8  }
  0x11   :  { %27 = dma.hbm_to_vmem [thread:$0]  %s9473_s2, 28160, %s22_s16, [#allocation3], %s8478_s25, %s8478_s25, %s8479_s26  }
  0x12   :  { %8473 = dma.done.wait [#allocation3], 28160  }
  0x13   :  { %8474 = vsyncadd [#allocation3], 4294939136  ;;  %vm138_vm0 = vcmask 64512   ;;  %v8536_v0 = vld [vmem:[#allocation2 + $0x48] sm:$0xff]  ;;  %v126_v1 = vld [vmem:[%s9472_s1] sm:$0xff]  ;;  %v8480_v23 = vmov 0.0|0.0  }
  0x14   :  { %v127_v2 = vld [vmem:[%s9472_s1 + $0x8] sm:$0xff]  ;;  %6944 = vmatprep.subr.mxu1 %v8536_v0  ;;  %6946 = vmatprep.mubr.msk.f32.mxu1 %vm138_vm0, %v126_v1  ;;  %v128_v3 = vld [vmem:[%s9472_s1 + $0x10] sm:$0xff]  ;;  %v117_v4 = vld [vmem:[#allocation2 + $0x58] sm:$0xff]  ;;  %vm8481_vm1 = vmmov 0   ;;  %v8482_v35 = vmov 0.0   ;;  %vm41_vm2 = vcmask 523264  }
  0x15   :  { %6945 = vmatpush3.msra.mxu1 %v8536_v0  ;;  %v118_v5 = vld [vmem:[#allocation2 + $0x60] sm:$0xff]  ;;  %v119_v6 = vld [vmem:[#allocation2 + $0x68] sm:$0xff]  ;;  %v129_v7 = vld [vmem:[%s9472_s1 + $0x18] sm:$0xff]  ;;  %7719 = vmatprep.subr.bf16.mxu0 %v8480_v23  ;;  %vm1319_vm3 = vcmask 261120   ;;  %s8484_s14 = smov 96   ;;  %s8485_s15 = smov 80  }
  0x16   :  { %6947 = vmatmul.mubr.msk.f32.vlgmr.msra.gmra.mrb[0].mxu1 %vm138_vm0, %v127_v2  ;;  %v8555_v8 = vpack.c.bf16 %v118_v5, %v117_v4  ;;  %v120_v9 = vld [vmem:[#allocation2 + $0x70] sm:$0xff]  ;;  %v130_v10 = vld [vmem:[%s9472_s1 + $0x20] sm:$0xff]  ;;  %v121_v12 = vld [vmem:[#allocation2 + $0x78] sm:$0xff]  ;;  %6941 = vmatprep.mubr.msk.f32.mxu0 %vm8481_vm1, %v8482_v35  ;;  %s8486_s16 = smov 88   ;;  %s8487_s17 = smov 112   ;;  %vm1499_vm7 = vcmask 130048  }
  0x17   :  { %6949 = vmatprep.mubr.msk.f32.mxu1 %vm138_vm0, %v128_v3  ;;  %v8560_v11 = vpack.c.bf16 %v120_v9, %v119_v6  ;;  %v122_v13 = vld [vmem:[#allocation2 + $0x80] sm:$0xff]  ;;  %v131_v14 = vld [vmem:[%s9472_s1 + $0x28] sm:$0xff]  ;;  %v132_v15 = vld [vmem:[%s9472_s1 + $0x30] sm:$0xff]  ;;  %s8489_s18 = smov 56   ;;  %s8490_s19 = smov 64   ;;  %vm2249_vm8 = vcmask 195584  }
  0x18   :  { %7732 = vmatprep.subr.bf16.mxu1 %v8555_v8  ;;  %v8573_v16 = vpack.c.bf16 %v122_v13, %v121_v12  ;;  %v133_v17 = vld [vmem:[%s9472_s1 + $0x38] sm:$0xff]  ;;  %v123_v18 = vld [vmem:[#allocation2 + $0x88] sm:$0xff]  ;;  %v124_v19 = vld [vmem:[#allocation2 + $0x90] sm:$0xff]  ;;  %s8491_s20 = smov 48   ;;  %s8492_s21 = smov 72   ;;  %vm6300_vm9 = vcmask 66560  }
  0x19   :  { %7734 = vmatpush3.bf16.msra.mxu1 %v8555_v8  ;;  %v8584_v20 = vpack.c.bf16 %v124_v19, %v123_v18  ;;  %v32_v21 = vld [vmem:[#allocation2] sm:$0xff]  ;;  %v33_v22 = vld [vmem:[#allocation2 + $0x8] sm:$0xff]  ;;  %v34_v25 = vld [vmem:[#allocation2 + $0x10] sm:$0xff]  ;;  %s8493_s22 = smov 104   ;;  %s8494_s23 = smov 40  }
  0x1a   :  { %6950 = vmatmul.mubr.msk.f32.gmra.mrb[2].mxu1 %vm138_vm0, %v129_v7  ;;  %7736 = vmatprep.subr.bf16.mxu1 %v8560_v11  ;;  %v7720_v24 = vpack.c.bf16 %v33_v22, %v32_v21  ;;  %v35_v26 = vld [vmem:[#allocation2 + $0x18] sm:$0xff]  ;;  %v36_v28 = vld [vmem:[#allocation2 + $0x20] sm:$0xff]  ;;  %v37_v29 = vld [vmem:[#allocation2 + $0x28] sm:$0xff]  ;;  %s8496_s24 = smov 24  }
  0x1b   :  { %6952 = vmatprep.mubr.msk.f32.mxu1 %vm138_vm0, %v130_v10  ;;  %v7723_v27 = vpack.c.bf16 %v35_v26, %v34_v25  ;;  %v7726_v30 = vpack.c.bf16 %v37_v29, %v36_v28  ;;  %v38_v31 = vld [vmem:[#allocation2 + $0x30] sm:$0xff]  ;;  %v39_v32 = vld [vmem:[#allocation2 + $0x38] sm:$0xff]  ;;  %v31_v34 = vld [vmem:[%s9471_s0] sm:$0xff]  ;;  %s8495_s0 = smov 16  }
  0x1c   :  { %7721 = vmatpush3.bf16.msra.mxu0 %v7720_v24  ;;  %v7729_v33 = vpack.c.bf16 %v39_v32, %v38_v31  ;;  %v697_v36 = vld [vmem:[%s9472_s1 + $0x80] sm:$0xff]  ;;  %v698_v37 = vld [vmem:[%s9472_s1 + $0x88] sm:$0xff]  ;;  %v699_v38 = vld [vmem:[%s9472_s1 + $0x90] sm:$0xff] }
  0x1d   :  { %7738 = vmatpush3.bf16.msra.mxu1 %v8560_v11  ;;  %7722 = vmatprep.subr.bf16.mxu0 %v8480_v23  ;;  %v700_v39 = vld [vmem:[%s9472_s1 + $0x98] sm:$0xff]  ;;  %v701_v40 = vld [vmem:[%s9472_s1 + $0xa0] sm:$0xff]  ;;  %v702_v41 = vld [vmem:[%s9472_s1 + $0xa8] sm:$0xff] }
  0x1e   :  { %6953 = vmatmul.mubr.msk.f32.gmra.mrb[4].mxu1 %vm138_vm0, %v131_v14  ;;  %7740 = vmatprep.subr.bf16.mxu1 %v8573_v16  ;;  %v703_v42 = vld [vmem:[%s9472_s1 + $0xb0] sm:$0xff]  ;;  %v704_v43 = vld [vmem:[%s9472_s1 + $0xb8] sm:$0xff]  ;;  %v979_v44 = vld [vmem:[%s9472_s1 + $0xc0] sm:$0xff] }
  0x1f   :  { %6955 = vmatprep.mubr.msk.f32.mxu1 %vm138_vm0, %v132_v15  ;;  %v980_v45 = vld [vmem:[%s9472_s1 + $0xc8] sm:$0xff]  ;;  %v981_v46 = vld [vmem:[%s9472_s1 + $0xd0] sm:$0xff]  ;;  %v982_v47 = vld [vmem:[%s9472_s1 + $0xd8] sm:$0xff] }
  0x20   :  { %7724 = vmatpush3.bf16.msra.mxu0 %v7723_v27  ;;  %v983_v48 = vld [vmem:[%s9472_s1 + $0xe0] sm:$0xff]  ;;  %v984_v49 = vld [vmem:[%s9472_s1 + $0xe8] sm:$0xff]  ;;  %v985_v50 = vld [vmem:[%s9472_s1 + $0xf0] sm:$0xff] }
  0x21   :  { %7742 = vmatpush3.bf16.msra.mxu1 %v8573_v16  ;;  %7725 = vmatprep.subr.bf16.mxu0 %v8480_v23  ;;  %v986_v51 = vld [vmem:[%s9472_s1 + $0xf8] sm:$0xff]  ;;  %v8667_v52 = vld [vmem:[#allocation2 + $0x50] ss:$0 sm:$0xff]  ;;  %v415_v15 = vld [vmem:[%s9472_s1 + $0x40] sm:$0xff] }
  0x22   :  { %6956 = vmatmul.mubr.msk.f32.gmra.mrb[6].mxu1 %vm138_vm0, %v133_v17  ;;  %7744 = vmatprep.subr.bf16.mxu1 %v8584_v20  ;;  %v416_v17 = vld [vmem:[%s9472_s1 + $0x48] sm:$0xff]  ;;  %v417_v18 = vld [vmem:[%s9472_s1 + $0x50] sm:$0xff]  ;;  %v418_v19 = vld [vmem:[%s9472_s1 + $0x58] sm:$0xff] }
  0x23   :  { %v419_v21 = vld [vmem:[%s9472_s1 + $0x60] sm:$0xff]  ;;  %v420_v22 = vld [vmem:[%s9472_s1 + $0x68] sm:$0xff]  ;;  %v421_v24 = vld [vmem:[%s9472_s1 + $0x70] sm:$0xff] }
  0x24   :  { %7727 = vmatpush3.bf16.msra.mxu0 %v7726_v30  ;;  %v422_v25 = vld [vmem:[%s9472_s1 + $0x78] sm:$0xff]  ;;  %s8483_s1 = smov 120   ;;  %vm8933_vm4 = vmpackc.low %vm138_vm0, %vm138_vm0 }
  0x25   :  { %7746 = vmatpush3.bf16.msra.mxu1 %v8584_v20  ;;  %7728 = vmatprep.subr.bf16.mxu0 %v8480_v23 }
  0x26   :  { %6986 = vmatprep.subr.mxu1 %v8536_v0 }
  0x28   :  { %7730 = vmatpush3.bf16.msra.mxu0 %v7729_v33 }
  0x29   :  { %7028 = vmatprep.subr.mxu0 %v8536_v0 }
  0x2b   :  { %6942 = vmatmul.mubr.msk.f32.vlgmr.msra.gmra.mrb[0].mxu0 %vm41_vm2, %v31_v34 }
  0x2c   :  { %7029 = vmatpush3.msra.mxu0 %v8536_v0  ;;  %7030 = vmatprep.mubr.msk.f32.mxu0 %vm138_vm0, %v697_v36 }
  0x2d   :  { %7070 = vmatprep.subr.mxu0 %v8536_v0 }
  0x2f   :  { %7031 = vmatmul.mubr.msk.f32.vlgmr.msra.gmra.mrb[2].mxu0 %vm138_vm0, %v698_v37 }
  0x30   :  { %7033 = vmatprep.mubr.msk.f32.mxu0 %vm138_vm0, %v699_v38  ;;  %7071 = vmatpush3.msra.mxu0 %v8536_v0 }
  0x33   :  { %7034 = vmatmul.mubr.msk.f32.gmra.mrb[4].mxu0 %vm138_vm0, %v700_v39 }
  0x34   :  { %7036 = vmatprep.mubr.msk.f32.mxu0 %vm138_vm0, %v701_v40 }
  0x37   :  { %7037 = vmatmul.mubr.msk.f32.gmra.mrb[6].mxu0 %vm138_vm0, %v702_v41 }
  0x38   :  { %7039 = vmatprep.mubr.msk.f32.mxu0 %vm138_vm0, %v703_v42 }
  0x3b   :  { %7040 = vmatmul.mubr.msk.f32.gmra.mrb[8].mxu0 %vm138_vm0, %v704_v43 }
  0x3c   :  { %7072 = vmatprep.mubr.msk.f32.mxu0 %vm138_vm0, %v979_v44 }
  0x3f   :  { %7073 = vmatmul.mubr.msk.f32.vlgmr.msra.gmra.mrb[10].mxu0 %vm138_vm0, %v980_v45 }
  0x40   :  { %7075 = vmatprep.mubr.msk.f32.mxu0 %vm138_vm0, %v981_v46 }
  0x43   :  { %7076 = vmatmul.mubr.msk.f32.gmra.mrb[12].mxu0 %vm138_vm0, %v982_v47  ;;  %v8761_v47 = vld [vmem:[#allocation2 + $0x98] ss:$0 sm:$0xff] }
  0x44   :  { %7078 = vmatprep.mubr.msk.f32.mxu0 %vm138_vm0, %v983_v48 }
  0x47   :  { %7079 = vmatmul.mubr.msk.f32.gmra.mrb[14].mxu0 %vm138_vm0, %v984_v49 }
  0x48   :  { %7081 = vmatprep.mubr.msk.f32.mxu0 %vm138_vm0, %v985_v50 }
  0x4b   :  { %7082 = vmatmul.mubr.msk.f32.gmra.mrb[16].mxu0 %vm138_vm0, %v986_v51 }
  0xe9   :  { %v6948_v53 = vpop.f32.mrb[0].mxu1 }
  0xea   :  { %v235_v54 = vadd.f32 %v6948_v53, %v8667_v52  ;;  %v229_v55 = vpop.f32.mrb[1].mxu1 }
  0xeb   :  { %v230_v56 = vadd.f32 %v8667_v52, %v229_v55 }
  0xec   :  { %v269_v59 = vmax.f32 %v235_v54, 0.0 }
  0xed   :  { %v268_v57 = vmax.f32 %v230_v56, 0.0  ;;  %v6951_v58 = vpop.f32.mrb[2].mxu1 }
  0xee   :  { %v245_v60 = vadd.f32 %v6951_v58, %v8667_v52  ;;  %v239_v61 = vpop.f32.mrb[3].mxu1 }
  0xef   :  { %v240_v62 = vadd.f32 %v8667_v52, %v239_v61  ;;  %6974 = vmatprep.mubr.msk.f32.mxu1 %vm41_vm2, %v268_v57 }
  0xf0   :  { %6975 = vmatmul.mubr.msk.f32.vlgmr.msra.gmra.mrb[8].mxu1 %vm41_vm2, %v269_v59  ;;  %v271_v2 = vmax.f32 %v245_v60, 0.0 }
  0xf1   :  { %v270_v63 = vmax.f32 %v240_v62, 0.0  ;;  %v6954_v1 = vpop.f32.mrb[4].mxu1  ;;  %6987 = vmatpush3.msra.mxu1 %v8536_v0 }
  0xf2   :  { %v255_v3 = vadd.f32 %v6954_v1, %v8667_v52  ;;  %v249_v4 = vpop.f32.mrb[5].mxu1  ;;  %7748 = vmatprep.subr.bf16.mxu1 %v8555_v8 }
  0xf3   :  { %v250_v5 = vadd.f32 %v8667_v52, %v249_v4  ;;  %6977 = vmatprep.mubr.msk.f32.mxu1 %vm41_vm2, %v270_v63 }
  0xf4   :  { %6978 = vmatmul.mubr.msk.f32.gmra.mrb[10].mxu1 %vm41_vm2, %v271_v2  ;;  %v273_v9 = vmax.f32 %v255_v3, 0.0 }
  0xf5   :  { %v272_v6 = vmax.f32 %v250_v5, 0.0  ;;  %v6957_v7 = vpop.f32.mrb[6].mxu1 }
  0xf6   :  { %v265_v10 = vadd.f32 %v6957_v7, %v8667_v52  ;;  %v259_v12 = vpop.f32.mrb[7].mxu1 }
  0xf7   :  { %v260_v0 = vadd.f32 %v8667_v52, %v259_v12  ;;  %6980 = vmatprep.mubr.msk.f32.mxu1 %vm41_vm2, %v272_v6 }
  0xf8   :  { %6981 = vmatmul.mubr.msk.f32.gmra.mrb[12].mxu1 %vm41_vm2, %v273_v9  ;;  %v275_v14 = vmax.f32 %v265_v10, 0.0 }
  0xf9   :  { %v274_v13 = vmax.f32 %v260_v0, 0.0 }
  0xfb   :  { %6983 = vmatprep.mubr.msk.f32.mxu1 %vm41_vm2, %v274_v13 }
  0xfc   :  { %6984 = vmatmul.mubr.msk.f32.gmra.mrb[14].mxu1 %vm41_vm2, %v275_v14 }
  0xfd   :  { %6988 = vmatprep.mubr.msk.f32.mxu1 %vm138_vm0, %v415_v15 }
  0xfe   :  { %v8727_v26 = vpop.f32.mrb[0].mxu0 }
  0xff   :  { %v6943_v27 = vpop.f32.mrb[1].mxu0 }
 0x100   :  { %6989 = vmatmul.mubr.msk.f32.vlgmr.msra.gmra.mrb[16].mxu1 %vm138_vm0, %v416_v17 }
 0x101   :  { %6991 = vmatprep.mubr.msk.f32.mxu1 %vm138_vm0, %v417_v18  ;;  %7750 = vmatpush3.bf16.msra.mxu1 %v8555_v8 }
 0x102   :  { %7752 = vmatprep.subr.bf16.mxu1 %v8560_v11  ;;  %v8729_v28 = vpop.f32.mrb[2].mxu0 }
 0x103   :  { %v8731_v29 = vpop.f32.mrb[3].mxu0 }
 0x104   :  { %6992 = vmatmul.mubr.msk.f32.gmra.mrb[18].mxu1 %vm138_vm0, %v418_v19 }
 0x105   :  { %6994 = vmatprep.mubr.msk.f32.mxu1 %vm138_vm0, %v419_v21  ;;  %7754 = vmatpush3.bf16.msra.mxu1 %v8560_v11 }
 0x106   :  { %7756 = vmatprep.subr.bf16.mxu1 %v8573_v16  ;;  %v8733_v30 = vpop.f32.mrb[4].mxu0 }
 0x107   :  { %v8735_v31 = vpop.f32.mrb[5].mxu0 }
 0x108   :  { %6995 = vmatmul.mubr.msk.f32.gmra.mrb[20].mxu1 %vm138_vm0, %v420_v22 }
 0x109   :  { %6997 = vmatprep.mubr.msk.f32.mxu1 %vm138_vm0, %v421_v24  ;;  %7758 = vmatpush3.bf16.msra.mxu1 %v8573_v16 }
 0x10a   :  { %7760 = vmatprep.subr.bf16.mxu1 %v8584_v20  ;;  %v8737_v32 = vpop.f32.mrb[6].mxu0 }
 0x10b   :  { %v8739_v33 = vpop.f32.mrb[7].mxu0 }
 0x10c   :  { %6998 = vmatmul.mubr.msk.f32.gmra.mrb[22].mxu1 %vm138_vm0, %v422_v25 }
 0x10d   :  { %7762 = vmatpush3.bf16.msra.mxu1 %v8584_v20 }
 0x10e   :  { %7764 = vmatprep.subr.bf16.mxu1 %v8555_v8  ;;  %v8741_v34 = vpop.f32.mrb[8].mxu0 }
 0x10f   :  { %v8743_v36 = vpop.f32.mrb[9].mxu0 }
 0x112   :  { %v8745_v37 = vpop.f32.mrb[10].mxu0 }
 0x113   :  { %v8747_v38 = vpop.f32.mrb[11].mxu0 }
 0x116   :  { %v8749_v39 = vpop.f32.mrb[12].mxu0 }
 0x117   :  { %v8751_v40 = vpop.f32.mrb[13].mxu0 }
 0x11a   :  { %v8753_v41 = vpop.f32.mrb[14].mxu0 }
 0x11b   :  { %v8755_v42 = vpop.f32.mrb[15].mxu0 }
 0x11e   :  { %v8757_v43 = vpop.f32.mrb[16].mxu0 }
 0x11f   :  { %v8759_v44 = vpop.f32.mrb[17].mxu0 }
 0x1c3   :  { %v6976_v45 = vpop.f32.mrb[8].mxu1 }
 0x1c4   :  { %v370_v46 = vpop.f32.mrb[9].mxu1  ;;  %v376_v49 = vadd.f32 %v6976_v45, %v8761_v47 }
 0x1c5   :  { %v371_v53 = vadd.f32 %v8761_v47, %v370_v46  ;;  %v796_v46 = vadd.f32 %v8667_v52, %v8731_v29 }
 0x1c7   :  { %v6979_v48 = vpop.f32.mrb[10].mxu1 }
 0x1c8   :  { %v386_v50 = vadd.f32 %v6979_v48, %v8761_v47  ;;  %v380_v51 = vpop.f32.mrb[11].mxu1 }
 0x1c9   :  { %v381_v54 = vadd.f32 %v8761_v47, %v380_v51 }
 0x1ca   :  { %v410_v55 = vmax.f32 %v376_v49, %v386_v50 }
 0x1cb   :  { %v409_v56 = vmax.f32 %v371_v53, %v381_v54  ;;  %v6982_v57 = vpop.f32.mrb[12].mxu1  ;;  %v834_v54 = vmax.f32 %v796_v46, 0.0 }
 0x1cc   :  { %v396_v58 = vadd.f32 %v6982_v57, %v8761_v47  ;;  %v390_v59 = vpop.f32.mrb[13].mxu1 }
 0x1cd   :  { %v391_v60 = vadd.f32 %v8761_v47, %v390_v59 }
 0x1ce   :  { %v8769_v61 = vmax.f32 %v410_v55, %v396_v58  ;;  %v806_v55 = vadd.f32 %v8667_v52, %v8735_v31  ;;  %v816_v58 = vadd.f32 %v8667_v52, %v8739_v33  ;;  %v811_v31 = vadd.f32 %v8733_v30, %v8667_v52 }
 0x1cf   :  { %v8771_v62 = vmax.f32 %v409_v56, %v391_v60  ;;  %v6985_v63 = vpop.f32.mrb[14].mxu1  ;;  %v801_v56 = vadd.f32 %v8729_v28, %v8667_v52  ;;  %v826_v60 = vadd.f32 %v8667_v52, %v8743_v36  ;;  %v821_v33 = vadd.f32 %v8737_v32, %v8667_v52 }
 0x1d0   :  { %v8774_v1 = vadd.f32 %v6985_v63, %v8761_v47  ;;  %v400_v2 = vpop.f32.mrb[15].mxu1  ;;  %v836_v57 = vmax.f32 %v806_v55, 0.0  ;;  %v838_v28 = vmax.f32 %v816_v58, 0.0  ;;  %v837_v63 = vmax.f32 %v811_v31, 0.0 }
 0x1d1   :  { %v8777_v3 = vadd.f32 %v8761_v47, %v400_v2  ;;  %v835_v59 = vmax.f32 %v801_v56, 0.0  ;;  %v840_v30 = vmax.f32 %v826_v60, 0.0  ;;  %v839_v2 = vmax.f32 %v821_v33, 0.0 }
 0x1d2   :  { %v414_v4 = vmax.f32 %v8769_v61, %v8774_v1  ;;  %v831_v36 = vadd.f32 %v8741_v34, %v8667_v52 }
 0x1d3   :  { %v413_v5 = vmax.f32 %v8771_v62, %v8777_v3  ;;  %v6990_v6 = vpop.f32.mrb[16].mxu1 }
 0x1d4   :  { %v519_v7 = vadd.f32 %v6990_v6, %v8667_v52  ;;  %v513_v9 = vpop.f32.mrb[17].mxu1  ;;  %v841_v6 = vmax.f32 %v831_v36, 0.0 }
 0x1d5   :  { %v514_v10 = vadd.f32 %v8667_v52, %v513_v9 }
 0x1d6   :  { %v553_v13 = vmax.f32 %v519_v7, 0.0 }
 0x1d7   :  { %v552_v12 = vmax.f32 %v514_v10, 0.0  ;;  %v6993_v0 = vpop.f32.mrb[18].mxu1 }
 0x1d8   :  { %v529_v14 = vadd.f32 %v6993_v0, %v8667_v52  ;;  %v523_v15 = vpop.f32.mrb[19].mxu1 }
 0x1d9   :  { %v524_v17 = vadd.f32 %v8667_v52, %v523_v15  ;;  %7016 = vmatprep.mubr.msk.f32.mxu1 %vm41_vm2, %v552_v12  ;;  %v1313_v15 = vld [vmem:[#allocation2 + $0xc8] sm:$0xff] }
 0x1da   :  { %7017 = vmatmul.mubr.msk.f32.vlgmr.msra.gmra.mrb[24].mxu1 %vm41_vm2, %v553_v13  ;;  %v555_v21 = vmax.f32 %v529_v14, 0.0  ;;  %v1311_v13 = vld [vmem:[#allocation2 + $0xb8] sm:$0xff] }
 0x1db   :  { %v554_v18 = vmax.f32 %v524_v17, 0.0  ;;  %v6996_v19 = vpop.f32.mrb[20].mxu1  ;;  %7766 = vmatpush3.bf16.msra.mxu1 %v8555_v8 }
 0x1dc   :  { %v539_v22 = vadd.f32 %v6996_v19, %v8667_v52  ;;  %v533_v24 = vpop.f32.mrb[21].mxu1  ;;  %7768 = vmatprep.subr.bf16.mxu1 %v8560_v11 }
 0x1dd   :  { %v534_v25 = vadd.f32 %v8667_v52, %v533_v24  ;;  %7019 = vmatprep.mubr.msk.f32.mxu1 %vm41_vm2, %v554_v18 }
 0x1de   :  { %7020 = vmatmul.mubr.msk.f32.gmra.mrb[26].mxu1 %vm41_vm2, %v555_v21  ;;  %v557_v48 = vmax.f32 %v539_v22, 0.0 }
 0x1df   :  { %v556_v27 = vmax.f32 %v534_v25, 0.0  ;;  %v6999_v45 = vpop.f32.mrb[22].mxu1  ;;  %7770 = vmatpush3.bf16.msra.mxu1 %v8560_v11 }
 0x1e0   :  { %v549_v49 = vadd.f32 %v6999_v45, %v8667_v52  ;;  %v543_v50 = vpop.f32.mrb[23].mxu1  ;;  %7772 = vmatprep.subr.bf16.mxu1 %v8573_v16 }
 0x1e1   :  { %v544_v51 = vadd.f32 %v8667_v52, %v543_v50  ;;  %7022 = vmatprep.mubr.msk.f32.mxu1 %vm41_vm2, %v556_v27 }
 0x1e2   :  { %7023 = vmatmul.mubr.msk.f32.gmra.mrb[28].mxu1 %vm41_vm2, %v557_v48  ;;  %v559_v29 = vmax.f32 %v549_v49, 0.0 }
 0x1e3   :  { %v558_v53 = vmax.f32 %v544_v51, 0.0  ;;  %7774 = vmatpush3.bf16.msra.mxu1 %v8573_v16 }
 0x1e4   :  { %7776 = vmatprep.subr.bf16.mxu1 %v8584_v20 }
 0x1e5   :  { %7025 = vmatprep.mubr.msk.f32.mxu1 %vm41_vm2, %v558_v53 }
 0x1e6   :  { %7026 = vmatmul.mubr.msk.f32.gmra.mrb[30].mxu1 %vm41_vm2, %v559_v29 }
 0x1e7   :  { %7778 = vmatpush3.bf16.msra.mxu1 %v8584_v20  ;;  %7058 = vmatprep.mubr.msk.f32.mxu1 %vm41_vm2, %v834_v54 }
 0x1e8   :  { %7780 = vmatprep.subr.bf16.mxu1 %v8555_v8 }
 0x1ea   :  { %7059 = vmatmul.mubr.msk.f32.vlgmr.msra.gmra.mrb[32].mxu1 %vm41_vm2, %v835_v59 }
 0x1eb   :  { %7782 = vmatpush3.bf16.msra.mxu1 %v8555_v8  ;;  %7061 = vmatprep.mubr.msk.f32.mxu1 %vm41_vm2, %v836_v57  ;;  %v1078_v8 = vadd.f32 %v8667_v52, %v8747_v38  ;;  %v1083_v38 = vadd.f32 %v8745_v37, %v8667_v52  ;;  %v1108_v37 = vadd.f32 %v8667_v52, %v8759_v44  ;;  %v1310_v44 = vld [vmem:[#allocation2 + $0xb0] sm:$0xff] }
 0x1ec   :  { %7784 = vmatprep.subr.bf16.mxu1 %v8560_v11  ;;  %v7795_v14 = vpack.c.bf16 %v1311_v13, %v1310_v44 }
 0x1ed   :  { %v1116_v32 = vmax.f32 %v1078_v8, 0.0  ;;  %v1117_v7 = vmax.f32 %v1083_v38, 0.0  ;;  %v1122_v12 = vmax.f32 %v1108_v37, 0.0 }
 0x1ee   :  { %7062 = vmatmul.mubr.msk.f32.gmra.mrb[34].mxu1 %vm41_vm2, %v837_v63  ;;  %7796 = vmatprep.subr.bf16.mxu0 %v7795_v14 }
 0x1ef   :  { %7786 = vmatpush3.bf16.msra.mxu1 %v8560_v11  ;;  %7064 = vmatprep.mubr.msk.f32.mxu1 %vm41_vm2, %v838_v28  ;;  %v1088_v11 = vadd.f32 %v8667_v52, %v8751_v40  ;;  %v1093_v40 = vadd.f32 %v8749_v39, %v8667_v52  ;;  %v1113_v39 = vadd.f32 %v8757_v43, %v8667_v52 }
 0x1f0   :  { %7788 = vmatprep.subr.bf16.mxu1 %v8573_v16  ;;  %7798 = vmatpush3.bf16.msra.mxu0 %v7795_v14 }
 0x1f1   :  { %v1118_v34 = vmax.f32 %v1088_v11, 0.0  ;;  %v1119_v10 = vmax.f32 %v1093_v40, 0.0  ;;  %v1123_v0 = vmax.f32 %v1113_v39, 0.0 }
 0x1f2   :  { %7065 = vmatmul.mubr.msk.f32.gmra.mrb[36].mxu1 %vm41_vm2, %v839_v2 }
 0x1f3   :  { %7790 = vmatpush3.bf16.msra.mxu1 %v8573_v16  ;;  %7067 = vmatprep.mubr.msk.f32.mxu1 %vm41_vm2, %v840_v30  ;;  %v1098_v16 = vadd.f32 %v8667_v52, %v8755_v42 }
 0x1f4   :  { %7792 = vmatprep.subr.bf16.mxu1 %v8584_v20 }
 0x1f5   :  { %v1120_v9 = vmax.f32 %v1098_v16, 0.0 }
 0x1f6   :  { %7068 = vmatmul.mubr.msk.f32.gmra.mrb[38].mxu1 %vm41_vm2, %v841_v6 }
 0x1f7   :  { %7794 = vmatpush3.bf16.msra.mxu1 %v8584_v20  ;;  %7100 = vmatprep.mubr.msk.f32.mxu1 %vm41_vm2, %v1116_v32  ;;  %v1103_v20 = vadd.f32 %v8753_v41, %v8667_v52  ;;  %v1312_v41 = vld [vmem:[#allocation2 + $0xc0] sm:$0xff] }
 0x1f8   :  { %v7799_v17 = vpack.c.bf16 %v1313_v15, %v1312_v41 }
 0x1f9   :  { %v1121_v42 = vmax.f32 %v1103_v20, 0.0 }
 0x1fa   :  { %7101 = vmatmul.mubr.msk.f32.vlgmr.msra.gmra.mrb[40].mxu1 %vm41_vm2, %v1117_v7  ;;  %7800 = vmatprep.subr.bf16.mxu0 %v7799_v17 }
 0x1fb   :  { %7103 = vmatprep.mubr.msk.f32.mxu1 %vm41_vm2, %v1118_v34  ;;  %7802 = vmatpush3.bf16.msra.mxu0 %v7799_v17 }
 0x1fe   :  { %7104 = vmatmul.mubr.msk.f32.gmra.mrb[42].mxu1 %vm41_vm2, %v1119_v10 }
 0x1ff   :  { %7106 = vmatprep.mubr.msk.f32.mxu1 %vm41_vm2, %v1120_v9 }
 0x202   :  { %7107 = vmatmul.mubr.msk.f32.gmra.mrb[44].mxu1 %vm41_vm2, %v1121_v42 }
 0x203   :  { %7109 = vmatprep.mubr.msk.f32.mxu1 %vm41_vm2, %v1122_v12 }
 0x206   :  { %7110 = vmatmul.mubr.msk.f32.gmra.mrb[46].mxu1 %vm41_vm2, %v1123_v0 }
 0x2ad   :  { %v7018_v18 = vpop.f32.mrb[24].mxu1 }
 0x2ae   :  { %v650_v19 = vpop.f32.mrb[25].mxu1  ;;  %v656_v43 = vadd.f32 %v7018_v18, %v8761_v47 }
 0x2af   :  { %v651_v24 = vadd.f32 %v8761_v47, %v650_v19 }
 0x2b1   :  { %v7021_v52 = vpop.f32.mrb[26].mxu1 }
 0x2b2   :  { %v666_v21 = vadd.f32 %v7021_v52, %v8761_v47  ;;  %v660_v22 = vpop.f32.mrb[27].mxu1 }
 0x2b3   :  { %v661_v25 = vadd.f32 %v8761_v47, %v660_v22 }
 0x2b4   :  { %v690_v27 = vmax.f32 %v656_v43, %v666_v21 }
 0x2b5   :  { %v689_v45 = vmax.f32 %v651_v24, %v661_v25  ;;  %v7024_v46 = vpop.f32.mrb[28].mxu1 }
 0x2b6   :  { %v676_v48 = vadd.f32 %v7024_v46, %v8761_v47  ;;  %v670_v49 = vpop.f32.mrb[29].mxu1 }
 0x2b7   :  { %v671_v50 = vadd.f32 %v8761_v47, %v670_v49  ;;  %v1307_v49 = vld [vmem:[#allocation2 + $0xa8] sm:$0xff] }
 0x2b8   :  { %v692_v51 = vmax.f32 %v690_v27, %v676_v48  ;;  %v1306_v48 = vld [vmem:[#allocation2 + $0xa0] sm:$0xff] }
 0x2b9   :  { %v691_v53 = vmax.f32 %v689_v45, %v671_v50  ;;  %v7027_v54 = vpop.f32.mrb[30].mxu1 }
 0x2ba   :  { %v686_v55 = vadd.f32 %v7027_v54, %v8761_v47  ;;  %v680_v29 = vpop.f32.mrb[31].mxu1 }
 0x2bb   :  { %v681_v56 = vadd.f32 %v8761_v47, %v680_v29 }
 0x2bc   :  { %v694_v57 = vmax.f32 %v692_v51, %v686_v55 }
 0x2bd   :  { %v693_v58 = vmax.f32 %v691_v53, %v681_v56  ;;  %v7060_v59 = vpop.f32.mrb[32].mxu1 }
 0x2be   :  { %v696_v31 = vmax.f32 %v414_v4, %v694_v57  ;;  %v932_v28 = vpop.f32.mrb[33].mxu1  ;;  %v938_v33 = vadd.f32 %v7060_v59, %v8761_v47 }
 0x2bf   :  { %v695_v60 = vmax.f32 %v413_v5, %v693_v58  ;;  %v933_v2 = vadd.f32 %v8761_v47, %v932_v28 }
 0x2c1   :  { %v7063_v63 = vpop.f32.mrb[34].mxu1 }
 0x2c2   :  { %v948_v30 = vadd.f32 %v7063_v63, %v8761_v47  ;;  %v942_v8 = vpop.f32.mrb[35].mxu1 }
 0x2c3   :  { %v943_v36 = vadd.f32 %v8761_v47, %v942_v8 }
 0x2c4   :  { %v972_v32 = vmax.f32 %v938_v33, %v948_v30 }
 0x2c5   :  { %v971_v11 = vmax.f32 %v933_v2, %v943_v36  ;;  %v7066_v6 = vpop.f32.mrb[36].mxu1 }
 0x2c6   :  { %v958_v61 = vadd.f32 %v7066_v6, %v8761_v47  ;;  %v952_v1 = vpop.f32.mrb[37].mxu1 }
 0x2c7   :  { %v953_v4 = vadd.f32 %v8761_v47, %v952_v1 }
 0x2c8   :  { %v974_v62 = vmax.f32 %v972_v32, %v958_v61 }
 0x2c9   :  { %v973_v3 = vmax.f32 %v971_v11, %v953_v4  ;;  %v7069_v5 = vpop.f32.mrb[38].mxu1 }
 0x2ca   :  { %v968_v38 = vadd.f32 %v7069_v5, %v8761_v47  ;;  %v962_v34 = vpop.f32.mrb[39].mxu1 }
 0x2cb   :  { %v963_v16 = vadd.f32 %v8761_v47, %v962_v34 }
 0x2cc   :  { %v976_v7 = vmax.f32 %v974_v62, %v968_v38  ;;  %v1261_v62 = vlaneseq }
 0x2cd   :  { %v975_v40 = vmax.f32 %v973_v3, %v963_v16  ;;  %v7102_v9 = vpop.f32.mrb[40].mxu1 }
 0x2ce   :  { %v978_v37 = vmax.f32 %v696_v31, %v976_v7  ;;  %v1214_v10 = vpop.f32.mrb[41].mxu1  ;;  %v1220_v42 = vadd.f32 %v7102_v9, %v8761_v47  ;;  %v1262_v3 = vshrl.u32 %v1261_v62, 7  ;;  %v1265_v38 = vand.u32 127, %v1261_v62 }
 0x2cf   :  { %v977_v20 = vmax.f32 %v695_v60, %v975_v40  ;;  %v1215_v44 = vadd.f32 %v8761_v47, %v1214_v10  ;;  %v8488_v9 = vmov -1e+09  }
 0x2d0   :  { %v1263_v5 = vadd.s32 8, %v1262_v3  ;;  %v1294_v16 = vand.u32 1, %v1265_v38  ;;  %v1270_v7 = vand.u32 1, %v1262_v3 }
 0x2d1   :  { %v7105_v12 = vpop.f32.mrb[42].mxu1 }
 0x2d2   :  { %v1230_v39 = vadd.f32 %v7105_v12, %v8761_v47  ;;  %v1224_v0 = vpop.f32.mrb[43].mxu1  ;;  %v1277_v34 = vand.u32 1, %v1263_v5  ;;  %vm1302_vm6 = vcmp.eq.s32.totalorder %v1270_v7, %v1294_v16 }
 0x2d3   :  { %v1225_v13 = vadd.f32 %v8761_v47, %v1224_v0  ;;  %v8956_v12 = vsel %vm1302_vm6, 0.0, %v8488_v9 }
 0x2d4   :  { %v1254_v14 = vmax.f32 %v1220_v42, %v1230_v39  ;;  %vm1303_vm5 = vcmp.eq.s32.totalorder %v1277_v34, %v1294_v16 }
 0x2d5   :  { %v1253_v41 = vmax.f32 %v1215_v44, %v1225_v13  ;;  %v7108_v15 = vpop.f32.mrb[44].mxu1 }
 0x2d6   :  { %v1240_v17 = vadd.f32 %v7108_v15, %v8761_v47  ;;  %v1234_v18 = vpop.f32.mrb[45].mxu1 }
 0x2d7   :  { %v1235_v19 = vadd.f32 %v8761_v47, %v1234_v18 }
 0x2d8   :  { %v1256_v52 = vmax.f32 %v1254_v14, %v1240_v17 }
 0x2d9   :  { %v1255_v43 = vmax.f32 %v1253_v41, %v1235_v19  ;;  %v7111_v21 = vpop.f32.mrb[46].mxu1 }
 0x2da   :  { %v1250_v22 = vadd.f32 %v7111_v21, %v8761_v47  ;;  %v1244_v24 = vpop.f32.mrb[47].mxu1 }
 0x2db   :  { %v1245_v25 = vadd.f32 %v8761_v47, %v1244_v24  ;;  %v6388_v47 = vld [vmem:[#allocation2 + $0xd0] ss:$0 sm:$0xff] }
 0x2dc   :  { %v1258_v27 = vmax.f32 %v1256_v52, %v1250_v22 }
 0x2dd   :  { %v1257_v45 = vmax.f32 %v1255_v43, %v1245_v25 }
 0x2de   :  { %v8892_v46 = vmax.f32 %v978_v37, %v1258_v27  ;;  %v8954_v37 = vsel %vm1303_vm5, 0.0, %v8488_v9 }
 0x2df   :  { %v8894_v50 = vmax.f32 %v977_v20, %v1257_v45 }
 0x2e0   :  { %v8900_v53 = vadd.f32 %v1307_v49, %v8892_v46 }
 0x2e1   :  { %v8897_v51 = vadd.f32 %v1306_v48, %v8894_v50 }
 0x2e3   :  { %7120 = vmatprep.mubr.msk.f32.mxu0 %vm1319_vm3, %v8897_v51 }
 0x2e4   :  { %7121 = vmatmul.mubr.msk.f32.vlgmr.msra.gmra.mrb[18].mxu0 %vm1319_vm3, %v8900_v53 }
 0x3b7   :  { %v7122_v54 = vpop.f32.mrb[18].mxu0 }
 0x3b8   :  { %v8906_v55 = vadd.f32 %v7122_v54, %v6388_v47  ;;  %v1392_v29 = vpop.f32.mrb[19].mxu0 }
 0x3b9   :  { %v8908_v56 = vadd.f32 %v6388_v47, %v1392_v29 }
 0x3bb   :  { %1609 = vrot.lane.b32.xlu1 %v8908_v56, %s8483_s1  ;;  %7127 = vmatprep.mubr.msk.f32.mxu0 %vm138_vm0, %v8908_v56  ;;  %v8916_v57 = vpack.i.bf16 %v8906_v55, %v8908_v56 }
 0x3bd   :  { %8205 = vrot.lane.b32.xlu0 %v8916_v57, %s8484_s14 }
 0x3bf   :  { %8215 = vrot.lane.b32.xlu1 %v8916_v57, %s8485_s15 }
 0x3c1   :  { %8210 = vrot.lane.b32.xlu0 %v8916_v57, %s8486_s16 }
 0x3c3   :  { %1813 = vrot.lane.b32.xlu1 %v8908_v56, %s8487_s17 }
 0x3c5   :  { %1611 = vrot.lane.b32.xlu0 %v8906_v55, %s8483_s1 }
 0x3c9   :  { %1815 = vrot.lane.b32.xlu0 %v8906_v55, %s8487_s17 }
 0x42d   :  { %v1610_v58 = vpop.permute.xlu1 %1609 }
 0x42e   :  { %7141 = vmatprep.mubr.msk.f32.mxu1 %vm138_vm0, %v1610_v58 }
 0x42f   :  { %v8206_v59 = vpop.permute.xlu0 %8205 }
 0x430   :  { %v8208_v31 = vunpack.i.h.bf16 %v8206_v59  ;;  %v8207_v28 = vunpack.i.l.bf16 %v8206_v59 }
 0x431   :  { %v8216_v60 = vpop.permute.xlu1 %8215 }
 0x432   :  { %v7803_v33 = vpack.c.bf16 %v8208_v31, %v8207_v28  ;;  %v8218_v8 = vunpack.i.h.bf16 %v8216_v60  ;;  %v8217_v2 = vunpack.i.l.bf16 %v8216_v60 }
 0x433   :  { %v8211_v30 = vpop.permute.xlu0 %8210 }
 0x434   :  { %v8213_v36 = vunpack.i.h.bf16 %v8211_v30  ;;  %v8212_v32 = vunpack.i.l.bf16 %v8211_v30  ;;  %7805 = vmatprep.subr.msk.bf16.mxu0 %vm8933_vm4, %v7803_v33  ;;  %v7823_v6 = vpack.c.bf16 %v8218_v8, %v8217_v2 }
 0x435   :  { %7808 = vmatpush3.bf16.xpose.msk.msra.mxu0 %vm8933_vm4, %v7803_v33  ;;  %v1814_v1 = vpop.permute.xlu1 %1813 }
 0x436   :  { %v7813_v11 = vpack.c.bf16 %v8213_v36, %v8212_v32 }
 0x437   :  { %v1612_v61 = vpop.permute.xlu0 %1611 }
 0x438   :  { %7815 = vmatprep.subr.msk.bf16.mxu1 %vm8933_vm4, %v7813_v11 }
 0x439   :  { %7818 = vmatpush3.bf16.xpose.msk.msra.mxu1 %vm8933_vm4, %v7813_v11 }
 0x43a   :  { %7825 = vmatprep.subr.msk.bf16.mxu1 %vm8933_vm4, %v7823_v6 }
 0x43b   :  { %v1816_v4 = vpop.permute.xlu0 %1815 }
 0x43c   :  { %7128 = vmatmul.mubr.msk.f32.vlgmr.msra.gmra.mrb[20].mxu0 %vm138_vm0, %v8906_v55 }
 0x440   :  { %7142 = vmatmul.mubr.msk.f32.vlgmr.msra.gmra.mrb[48].mxu1 %vm138_vm0, %v1612_v61 }
 0x441   :  { %7828 = vmatpush3.bf16.xpose.msk.msra.mxu1 %vm8933_vm4, %v7823_v6  ;;  %7155 = vmatprep.mubr.msk.f32.mxu1 %vm138_vm0, %v1814_v1 }
 0x448   :  { %7156 = vmatmul.mubr.msk.f32.vlgmr.msra.gmra.mrb[50].mxu1 %vm138_vm0, %v1816_v4 }
 0x50f   :  { %v7129_v40 = vpop.f32.mrb[20].mxu0 }
 0x510   :  { %v1496_v10 = vmul.f32 0.35355338, %v7129_v40  ;;  %v1486_v20 = vpop.f32.mrb[21].mxu0 }
 0x511   :  { %v1495_v42 = vmul.f32 0.35355338, %v1486_v20 }
 0x512   :  { %v1498_v39 = vadd.f32 %v1496_v10, %v8954_v37 }
 0x513   :  { %v7143_v0 = vpop.f32.mrb[48].mxu1  ;;  %v1497_v44 = vadd.f32 %v1495_v42, %v8956_v12 }
 0x514   :  { %v1701_v13 = vmul.f32 0.35355338, %v7143_v0  ;;  %v1691_v14 = vpop.f32.mrb[49].mxu1  ;;  %v1503_v41 = vsel %vm1499_vm7, %v1498_v39, -inf }
 0x515   :  { %v1700_v15 = vmul.f32 0.35355338, %v1691_v14  ;;  %1504 = vmax.xlane.f32.xlu0 %v1503_v41  ;;  %v1500_v17 = vsel %vm1499_vm7, %v1497_v44, -inf }
 0x516   :  { %1501 = vmax.xlane.f32.xlu1 %v1500_v17  ;;  %v1703_v18 = vadd.f32 %v1701_v13, %v8954_v37 }
 0x517   :  { %v1702_v19 = vadd.f32 %v1700_v15, %v8956_v12 }
 0x518   :  { %v1707_v52 = vsel %vm1499_vm7, %v1703_v18, -inf }
 0x519   :  { %v1704_v43 = vsel %vm1499_vm7, %v1702_v19, -inf }
 0x51a   :  { %1705 = vmax.xlane.f32.xlu0 %v1704_v43  ;;  %1708 = vmax.xlane.f32.xlu1 %v1707_v52 }
 0x51b   :  { %v7157_v21 = vpop.f32.mrb[50].mxu1 }
 0x51c   :  { %v1905_v22 = vmul.f32 0.35355338, %v7157_v21  ;;  %v1895_v24 = vpop.f32.mrb[51].mxu1 }
 0x51d   :  { %v1904_v25 = vmul.f32 0.35355338, %v1895_v24 }
 0x51e   :  { %v8967_v27 = vadd.f32 %v1905_v22, %v8954_v37 }
 0x51f   :  { %v1906_v45 = vadd.f32 %v1904_v25, %v8956_v12 }
 0x520   :  { %v1911_v48 = vsel %vm1499_vm7, %v8967_v27, -inf }
 0x521   :  { %1912 = vmax.xlane.f32.xlu1 %v1911_v48  ;;  %v1908_v49 = vsel %vm1499_vm7, %v1906_v45, -inf }
 0x522   :  { %1909 = vmax.xlane.f32.xlu0 %v1908_v49 }
 0x532   :  { %8225 = vrot.lane.b32.xlu1 %v8916_v57, %s8489_s18 }
 0x538   :  { %8220 = vrot.lane.b32.xlu0 %v8916_v57, %s8490_s19 }
 0x5a2   :  { %v1505_v47 = vpop.xlane.xlu0 %1504 }
 0x5a3   :  { %v1507_v54 = vsub.f32 %v1498_v39, %v1505_v47  ;;  %v1502_v29 = vpop.xlane.xlu1 %1501 }
 0x5a4   :  { %v1506_v58 = vsub.f32 %v1497_v44, %v1502_v29 }
 0x5a5   :  { %v1510_v59 = vmul.f32 1.442695, %v1507_v54 }
 0x5a6   :  { %v1508_v31 = vmul.f32 1.442695, %v1506_v58 }
 0x5a7   :  { %8319 = vpow2.f32 %v1510_v59  ;;  %v1706_v28 = vpop.xlane.xlu0 %1705  ;;  %v1709_v60 = vpop.xlane.xlu1 %1708 }
 0x5a8   :  { %8321 = vpow2.f32 %v1508_v31  ;;  %v1710_v33 = vsub.f32 %v1702_v19, %v1706_v28  ;;  %v1711_v30 = vsub.f32 %v1703_v18, %v1709_v60 }
 0x5aa   :  { %v1712_v8 = vmul.f32 1.442695, %v1710_v33  ;;  %v1714_v2 = vmul.f32 1.442695, %v1711_v30 }
 0x5ac   :  { %8323 = vpow2.f32 %v1712_v8 }
 0x5ad   :  { %8325 = vpow2.f32 %v1714_v2 }
 0x5ae   :  { %v1913_v36 = vpop.xlane.xlu1 %1912 }
 0x5af   :  { %v1910_v32 = vpop.xlane.xlu0 %1909  ;;  %v1915_v13 = vsub.f32 %v8967_v27, %v1913_v36 }
 0x5b0   :  { %v1914_v11 = vsub.f32 %v1906_v45, %v1910_v32 }
 0x5b1   :  { %v8320_v6 = vpop.eup %8319  ;;  %v1918_v14 = vmul.f32 1.442695, %v1915_v13 }
 0x5b2   :  { %v8322_v61 = vpop.eup %8321  ;;  %v1916_v1 = vmul.f32 1.442695, %v1914_v11  ;;  %v8226_v4 = vpop.permute.xlu1 %8225  ;;  %v1515_v62 = vsel %vm1499_vm7, %v8320_v6, 0.0 }
 0x5b3   :  { %v8228_v3 = vunpack.i.h.bf16 %v8226_v4  ;;  %v8221_v5 = vpop.permute.xlu0 %8220  ;;  %1516 = vadd.xlane.f32.xlu1 %v1515_v62  ;;  %v1512_v38 = vsel %vm1499_vm7, %v8322_v61, 0.0  ;;  %v8227_v34 = vunpack.i.l.bf16 %v8226_v4 }
 0x5b4   :  { %8327 = vpow2.f32 %v1916_v1  ;;  %v8223_v16 = vunpack.i.h.bf16 %v8221_v5  ;;  %v8222_v7 = vunpack.i.l.bf16 %v8221_v5  ;;  %1513 = vadd.xlane.f32.xlu0 %v1512_v38 }
 0x5b5   :  { %v7819_v39 = vpack.c.bf16 %v8228_v3, %v8227_v34  ;;  %8329 = vpow2.f32 %v1918_v14 }
 0x5b6   :  { %v8324_v40 = vpop.eup %8323  ;;  %v7809_v9 = vpack.c.bf16 %v8223_v16, %v8222_v7 }
 0x5b7   :  { %v8326_v10 = vpop.eup %8325  ;;  %v1716_v20 = vsel %vm1499_vm7, %v8324_v40, 0.0 }
 0x5b8   :  { %7810 = vmatprep.subr.bf16.mxu0 %v7809_v9  ;;  %1717 = vadd.xlane.f32.xlu0 %v1716_v20  ;;  %v1719_v42 = vsel %vm1499_vm7, %v8326_v10, 0.0 }
 0x5b9   :  { %1720 = vadd.xlane.f32.xlu1 %v1719_v42  ;;  %7812 = vmatpush3.bf16.msra.mxu0 %v7809_v9 }
 0x5ba   :  { %7820 = vmatprep.subr.bf16.mxu0 %v7819_v39 }
 0x5be   :  { %v8328_v0 = vpop.eup %8327 }
 0x5bf   :  { %v1920_v44 = vsel %vm1499_vm7, %v8328_v0, 0.0  ;;  %v8330_v41 = vpop.eup %8329 }
 0x5c0   :  { %1921 = vadd.xlane.f32.xlu0 %v1920_v44  ;;  %v1923_v15 = vsel %vm1499_vm7, %v8330_v41, 0.0 }
 0x5ca   :  { %8230 = vrot.lane.b32.xlu1 %v8916_v57, %s8491_s20 }
 0x5d6   :  { %8235 = vrot.lane.b32.xlu0 %v8916_v57, %s8492_s21 }
 0x5da   :  { %2019 = vrot.lane.b32.xlu0 %v8906_v55, %s8493_s22 }
 0x5ee   :  { %1924 = vadd.xlane.f32.xlu1 %v1923_v15 }
 0x5ff   :  { %2017 = vrot.lane.b32.xlu1 %v8908_v56, %s8493_s22 }
 0x640   :  { %v1517_v17 = vpop.xlane.xlu1 %1516 }
 0x641   :  { %8331 = vrcp.f32 %v1517_v17  ;;  %v1514_v18 = vpop.xlane.xlu0 %1513 }
 0x642   :  { %8333 = vrcp.f32 %v1514_v18 }
 0x645   :  { %v1718_v19 = vpop.xlane.xlu0 %1717 }
 0x646   :  { %8335 = vrcp.f32 %v1718_v19  ;;  %v1721_v52 = vpop.xlane.xlu1 %1720 }
 0x647   :  { %8337 = vrcp.f32 %v1721_v52 }
 0x64a   :  { %v8231_v43 = vpop.permute.xlu1 %8230 }
 0x64b   :  { %v8332_v21 = vpop.eup %8331  ;;  %v8233_v22 = vunpack.i.h.bf16 %v8231_v43  ;;  %v8232_v24 = vunpack.i.l.bf16 %v8231_v43 }
 0x64c   :  { %v8334_v55 = vpop.eup %8333  ;;  %v1521_v45 = vmul.f32 %v8332_v21, %v8320_v6 }
 0x64d   :  { %v1922_v25 = vpop.xlane.xlu0 %1921  ;;  %v1520_v27 = vmul.f32 %v8334_v55, %v8322_v61  ;;  %v7829_v48 = vpack.c.bf16 %v8233_v22, %v8232_v24 }
 0x64e   :  { %8339 = vrcp.f32 %v1922_v25  ;;  %v1402_v25 = vld [vmem:[#allocation2 + $0xe0] sm:$0xff] }
 0x64f   :  { %7134 = vmatprep.mubr.msk.f32.mxu0 %vm1499_vm7, %v1520_v27  ;;  %v1403_v27 = vld [vmem:[#allocation2 + $0xe8] sm:$0xff] }
 0x650   :  { %v8336_v56 = vpop.eup %8335  ;;  %7135 = vmatmul.mubr.msk.f32.vlgmr.msra.gmra.mrb[22].mxu0 %vm1499_vm7, %v1521_v45 }
 0x651   :  { %v8338_v49 = vpop.eup %8337  ;;  %7822 = vmatpush3.bf16.msra.mxu0 %v7819_v39  ;;  %v8236_v47 = vpop.permute.xlu0 %8235  ;;  %v1724_v54 = vmul.f32 %v8336_v56, %v8324_v40  ;;  %v1404_v56 = vld [vmem:[#allocation2 + $0xf0] sm:$0xff] }
 0x652   :  { %v8238_v29 = vunpack.i.h.bf16 %v8236_v47  ;;  %v8237_v58 = vunpack.i.l.bf16 %v8236_v47  ;;  %7830 = vmatprep.subr.bf16.mxu0 %v7829_v48  ;;  %v1725_v59 = vmul.f32 %v8338_v49, %v8326_v10 }
 0x653   :  { %7148 = vmatprep.mubr.msk.f32.mxu0 %vm1499_vm7, %v1724_v54 }
 0x654   :  { %v7833_v31 = vpack.c.bf16 %v8238_v29, %v8237_v58  ;;  %7149 = vmatmul.mubr.msk.f32.vlgmr.msra.gmra.mrb[24].mxu0 %vm1499_vm7, %v1725_v59 }
 0x655   :  { %7832 = vmatpush3.bf16.msra.mxu0 %v7829_v48  ;;  %v2020_v36 = vpop.permute.xlu0 %2019  ;;  %v7847_v48 = vpack.c.bf16 %v1404_v56, %v1403_v27 }
 0x656   :  { %7835 = vmatprep.subr.msk.bf16.mxu0 %vm8933_vm4, %v7833_v31 }
 0x658   :  { %v8340_v28 = vpop.eup %8339 }
 0x659   :  { %v1928_v60 = vmul.f32 %v8340_v28, %v8328_v0 }
 0x65b   :  { %7162 = vmatprep.mubr.msk.f32.mxu0 %vm1499_vm7, %v1928_v60 }
 0x67b   :  { %v1925_v33 = vpop.xlane.xlu1 %1924 }
 0x67c   :  { %8341 = vrcp.f32 %v1925_v33 }
 0x67f   :  { %v2018_v2 = vpop.permute.xlu1 %2017 }
 0x686   :  { %v8342_v30 = vpop.eup %8341 }
 0x687   :  { %v1929_v8 = vmul.f32 %v8342_v30, %v8330_v41 }
 0x689   :  { %7163 = vmatmul.mubr.msk.f32.vlgmr.msra.gmra.mrb[26].mxu0 %vm1499_vm7, %v1929_v8 }
 0x68a   :  { %7838 = vmatpush3.bf16.xpose.msk.msra.mxu0 %vm8933_vm4, %v7833_v31  ;;  %7169 = vmatprep.mubr.msk.f32.mxu0 %vm138_vm0, %v2018_v2 }
 0x691   :  { %7170 = vmatmul.mubr.msk.f32.vlgmr.msra.gmra.mrb[28].mxu0 %vm138_vm0, %v2020_v36 }
 0x723   :  { %v9004_v32 = vpop.f32.mrb[22].mxu0 }
 0x724   :  { %v9006_v11 = vpop.f32.mrb[23].mxu0 }
 0x727   :  { %v7150_v6 = vpop.f32.mrb[24].mxu0 }
 0x728   :  { %v1804_v61 = vpop.f32.mrb[25].mxu0 }
 0x75c   :  { %v7164_v1 = vpop.f32.mrb[26].mxu0 }
 0x75d   :  { %v2008_v4 = vpop.f32.mrb[27].mxu0 }
 0x764   :  { %v7171_v62 = vpop.f32.mrb[28].mxu0 }
 0x765   :  { %v2109_v3 = vmul.f32 0.35355338, %v7171_v62  ;;  %v2099_v5 = vpop.f32.mrb[29].mxu0 }
 0x766   :  { %v2108_v38 = vmul.f32 0.35355338, %v2099_v5 }
 0x767   :  { %v2111_v34 = vadd.f32 %v2109_v3, %v8954_v37 }
 0x768   :  { %v2110_v16 = vadd.f32 %v2108_v38, %v8956_v12 }
 0x769   :  { %v2115_v7 = vsel %vm1499_vm7, %v2111_v34, -inf }
 0x76a   :  { %2116 = vmax.xlane.f32.xlu0 %v2115_v7  ;;  %v2112_v40 = vsel %vm1499_vm7, %v2110_v16, -inf }
 0x76b   :  { %2113 = vmax.xlane.f32.xlu1 %v2112_v40 }
 0x7f7   :  { %v2117_v9 = vpop.xlane.xlu0 %2116 }
 0x7f8   :  { %v2119_v10 = vsub.f32 %v2111_v34, %v2117_v9  ;;  %v2114_v20 = vpop.xlane.xlu1 %2113 }
 0x7f9   :  { %v2118_v42 = vsub.f32 %v2110_v16, %v2114_v20 }
 0x7fa   :  { %v2122_v39 = vmul.f32 1.442695, %v2119_v10 }
 0x7fb   :  { %v2120_v0 = vmul.f32 1.442695, %v2118_v42 }
 0x7fc   :  { %8343 = vpow2.f32 %v2122_v39  ;;  %v2381_v39 = vld [vmem:[#allocation2 + $0x118] sm:$0xff] }
 0x7fd   :  { %8345 = vpow2.f32 %v2120_v0 }
 0x806   :  { %v8344_v44 = vpop.eup %8343 }
 0x807   :  { %v8346_v13 = vpop.eup %8345  ;;  %v2127_v14 = vsel %vm1499_vm7, %v8344_v44, 0.0 }
 0x808   :  { %2128 = vadd.xlane.f32.xlu1 %v2127_v14  ;;  %v2124_v41 = vsel %vm1499_vm7, %v8346_v13, 0.0 }
 0x809   :  { %2125 = vadd.xlane.f32.xlu0 %v2124_v41 }
 0x819   :  { %2223 = vrot.lane.b32.xlu1 %v1804_v61, %s8479_s26 }
 0x81d   :  { %2225 = vrot.lane.b32.xlu1 %v7150_v6, %s8479_s26  ;;  %v6415_v6 = vld [vmem:[#allocation2 + $0xf8] ss:$0 sm:$0xff] }
 0x81f   :  { %8240 = vrot.lane.b32.xlu0 %v8916_v57, %s8494_s23  ;;  %v1401_v57 = vld [vmem:[#allocation2 + $0xd8] sm:$0xff] }
 0x820   :  { %v7843_v45 = vpack.c.bf16 %v1402_v25, %v1401_v57 }
 0x821   :  { %2233 = vrot.lane.b32.xlu1 %v7164_v1, %s8495_s0 }
 0x823   :  { %2231 = vrot.lane.b32.xlu0 %v2008_v4, %s8495_s0 }
 0x895   :  { %v2129_v15 = vpop.xlane.xlu1 %2128 }
 0x896   :  { %8347 = vrcp.f32 %v2129_v15  ;;  %v2126_v17 = vpop.xlane.xlu0 %2125 }
 0x897   :  { %8349 = vrcp.f32 %v2126_v17 }
 0x899   :  { %v2224_v54 = vpop.permute.xlu1 %2223 }
 0x89a   :  { %v8241_v18 = vpop.permute.xlu0 %8240  ;;  %v2245_v31 = vsel %vm138_vm0, %v9006_v11, %v2224_v54  ;;  %v2490_v54 = vld [vmem:[#allocation2 + $0x148] sm:$0xff] }
 0x89b   :  { %v8243_v19 = vunpack.i.h.bf16 %v8241_v18  ;;  %v8242_v52 = vunpack.i.l.bf16 %v8241_v18 }
 0x89d   :  { %v7839_v43 = vpack.c.bf16 %v8243_v19, %v8242_v52  ;;  %v2226_v29 = vpop.permute.xlu1 %2225 }
 0x89e   :  { %v2232_v59 = vpop.permute.xlu0 %2231  ;;  %v2246_v60 = vsel %vm138_vm0, %v9004_v32, %v2226_v29  ;;  %v2491_v29 = vld [vmem:[#allocation2 + $0x150] sm:$0xff] }
 0x89f   :  { %7840 = vmatprep.subr.bf16.mxu1 %v7839_v43  ;;  %v2247_v33 = vsel %vm1499_vm7, %v2245_v31, %v2232_v59  ;;  %v2492_v59 = vld [vmem:[#allocation2 + $0x158] sm:$0xff]  ;;  %v2493_v31 = vld [vmem:[#allocation2 + $0x160] sm:$0xff] }
 0x8a0   :  { %v8348_v21 = vpop.eup %8347  ;;  %7842 = vmatpush3.bf16.msra.mxu1 %v7839_v43 }
 0x8a1   :  { %v8350_v55 = vpop.eup %8349  ;;  %v2133_v24 = vmul.f32 %v8348_v21, %v8344_v44  ;;  %7844 = vmatprep.subr.bf16.mxu1 %v7843_v45  ;;  %v2234_v58 = vpop.permute.xlu1 %2233  ;;  %v2382_v44 = vld [vmem:[#allocation2 + $0x120] sm:$0xff] }
 0x8a2   :  { %v2132_v22 = vmul.f32 %v8350_v55, %v8346_v13  ;;  %v2248_v8 = vsel %vm1499_vm7, %v2246_v60, %v2234_v58  ;;  %v2383_v13 = vld [vmem:[#allocation2 + $0x128] sm:$0xff]  ;;  %v6418_v21 = vld [vmem:[#allocation2 + $0x100] ss:$0 sm:$0xff]  ;;  %v7863_v58 = vpack.c.bf16 %v2491_v29, %v2490_v54 }
 0x8a3   :  { %v7855_v14 = vpack.c.bf16 %v2383_v13, %v2382_v44  ;;  %v2494_v60 = vld [vmem:[#allocation2 + $0x168] sm:$0xff] }
 0x8a4   :  { %7176 = vmatprep.mubr.msk.f32.mxu1 %vm1499_vm7, %v2132_v22  ;;  %v6419_v22 = vld [vmem:[#allocation2 + $0x108] ss:$0 sm:$0xff] }
 0x8a5   :  { %7177 = vmatmul.mubr.msk.f32.vlgmr.msra.gmra.mrb[52].mxu1 %vm1499_vm7, %v2133_v24 }
 0x8a6   :  { %7846 = vmatpush3.bf16.msra.mxu1 %v7843_v45 }
 0x8a7   :  { %7848 = vmatprep.subr.bf16.mxu1 %v7847_v48 }
 0x8aa   :  { %7850 = vmatpush3.bf16.msra.mxu1 %v7847_v48  ;;  %v2488_v48 = vld [vmem:[#allocation2 + $0x138] sm:$0xff] }
 0x978   :  { %v7178_v49 = vpop.f32.mrb[52].mxu1 }
 0x979   :  { %2241 = vrot.lane.b32.xlu1 %v7178_v49, %s8496_s24  ;;  %v2212_v47 = vpop.f32.mrb[53].mxu1  ;;  %v2489_v49 = vld [vmem:[#allocation2 + $0x140] sm:$0xff] }
 0x97a   :  { %2239 = vrot.lane.b32.xlu0 %v2212_v47, %s8496_s24  ;;  %v7859_v47 = vpack.c.bf16 %v2489_v49, %v2488_v48 }
 0x97c   :  { %7860 = vmatprep.subr.bf16.mxu1 %v7859_v47 }
 0x9eb   :  { %v2242_v28 = vpop.permute.xlu1 %2241 }
 0x9ec   :  { %v2240_v30 = vpop.permute.xlu0 %2239  ;;  %v2251_v36 = vsel %vm2249_vm8, %v2248_v8, %v2242_v28  ;;  %v7867_v28 = vpack.c.bf16 %v2493_v31, %v2492_v59  ;;  %v2496_v8 = vld [vmem:[#allocation2 + $0x178] sm:$0xff] }
 0x9ed   :  { %v2250_v2 = vsel %vm2249_vm8, %v2247_v33, %v2240_v30  ;;  %v2495_v33 = vld [vmem:[#allocation2 + $0x170] sm:$0xff] }
 0x9ee   :  { %7187 = vmatprep.mubr.msk.f32.mxu1 %vm1319_vm3, %v2250_v2  ;;  %v7871_v30 = vpack.c.bf16 %v2495_v33, %v2494_v60  ;;  %v2497_v2 = vld [vmem:[#allocation2 + $0x180] sm:$0xff] }
 0x9ef   :  { %7188 = vmatmul.mubr.msk.f32.vlgmr.msra.gmra.mrb[54].mxu1 %vm1319_vm3, %v2251_v36  ;;  %v2498_v36 = vld [vmem:[#allocation2 + $0x188] sm:$0xff] }
 0x9f0   :  { %7862 = vmatpush3.bf16.msra.mxu1 %v7859_v47 }
 0x9f1   :  { %7864 = vmatprep.subr.bf16.mxu1 %v7863_v58 }
 0x9f4   :  { %7866 = vmatpush3.bf16.msra.mxu1 %v7863_v58 }
 0x9f5   :  { %7868 = vmatprep.subr.bf16.mxu1 %v7867_v28 }
 0x9f8   :  { %7870 = vmatpush3.bf16.msra.mxu1 %v7867_v28 }
 0x9f9   :  { %7872 = vmatprep.subr.bf16.mxu1 %v7871_v30 }
 0x9fc   :  { %7874 = vmatpush3.bf16.msra.mxu1 %v7871_v30  ;;  %v2627_v30 = vld [vmem:[#allocation2 + $0x1d8] sm:$0xff] }
 0xac2   :  { %v7189_v61 = vpop.f32.mrb[54].mxu1 }
 0xac3   :  { %v2334_v11 = vadd.f32 %v7189_v61, %v6415_v6  ;;  %v2328_v1 = vpop.f32.mrb[55].mxu1  ;;  %v2499_v61 = vld [vmem:[#allocation2 + $0x190] sm:$0xff] }
 0xac4   :  { %v2329_v4 = vadd.f32 %v6415_v6, %v2328_v1  ;;  %v7875_v6 = vpack.c.bf16 %v2497_v2, %v2496_v8  ;;  %v2500_v1 = vld [vmem:[#allocation2 + $0x198] sm:$0xff]  ;;  %v2628_v2 = vld [vmem:[#allocation2 + $0x1e0] sm:$0xff] }
 0xac5   :  { %v2338_v32 = vadd.f32 %v2334_v11, %v8900_v53  ;;  %v7879_v11 = vpack.c.bf16 %v2499_v61, %v2498_v36  ;;  %v2629_v36 = vld [vmem:[#allocation2 + $0x1e8] sm:$0xff] }
 0xac6   :  { %v2337_v62 = vadd.f32 %v2329_v4, %v8897_v51  ;;  %v2380_v51 = vld [vmem:[#allocation2 + $0x110] sm:$0xff]  ;;  %v2501_v4 = vld [vmem:[#allocation2 + $0x1a0] sm:$0xff]  ;;  %7876 = vmatprep.subr.bf16.mxu1 %v7875_v6 }
 0xac7   :  { %v2344_v3 = vsel %vm1319_vm3, %v2338_v32, 0.0  ;;  %v7851_v0 = vpack.c.bf16 %v2381_v39, %v2380_v51  ;;  %7878 = vmatpush3.bf16.msra.mxu1 %v7875_v6  ;;  %v7895_v6 = vpack.c.bf16 %v2629_v36, %v2628_v2 }
 0xac8   :  { %2345 = vadd.xlane.f32.xlu1 %v2344_v3  ;;  %v2341_v5 = vsel %vm1319_vm3, %v2337_v62, 0.0  ;;  %7880 = vmatprep.subr.bf16.mxu1 %v7879_v11  ;;  %v2503_v3 = vld [vmem:[#allocation2 + $0x1b0] sm:$0xff] }
 0xac9   :  { %2342 = vadd.xlane.f32.xlu0 %v2341_v5  ;;  %7852 = vmatprep.subr.bf16.mxu0 %v7851_v0 }
 0xaca   :  { %7854 = vmatpush3.bf16.msra.mxu0 %v7851_v0 }
 0xacb   :  { %7856 = vmatprep.subr.bf16.mxu0 %v7855_v14  ;;  %7882 = vmatpush3.bf16.msra.mxu1 %v7879_v11 }
 0xace   :  { %7858 = vmatpush3.bf16.msra.mxu0 %v7855_v14 }
 0xb55   :  { %v2346_v38 = vpop.xlane.xlu1 %2345 }
 0xb56   :  { %v2349_v34 = vmul.f32 0.03125, %v2346_v38  ;;  %v2343_v16 = vpop.xlane.xlu0 %2342  ;;  %v6420_v38 = vld [vmem:[#allocation2 + $0x130] ss:$0 sm:$0xff] }
 0xb57   :  { %v2348_v7 = vmul.f32 0.03125, %v2343_v16 }
 0xb58   :  { %v2351_v40 = vsub.f32 %v2338_v32, %v2349_v34  ;;  %v7883_v32 = vpack.c.bf16 %v2501_v4, %v2500_v1 }
 0xb59   :  { %v2350_v9 = vsub.f32 %v2337_v62, %v2348_v7  ;;  %v2502_v62 = vld [vmem:[#allocation2 + $0x1a8] sm:$0xff] }
 0xb5a   :  { %v2353_v42 = vmul.f32 %v2351_v40, %v2351_v40  ;;  %7884 = vmatprep.subr.bf16.mxu1 %v7883_v32  ;;  %v7887_v5 = vpack.c.bf16 %v2503_v3, %v2502_v62 }
 0xb5b   :  { %v2352_v10 = vmul.f32 %v2350_v9, %v2350_v9  ;;  %7886 = vmatpush3.bf16.msra.mxu1 %v7883_v32 }
 0xb5c   :  { %v2357_v53 = vsel %vm1319_vm3, %v2353_v42, 0.0  ;;  %7888 = vmatprep.subr.bf16.mxu1 %v7887_v5 }
 0xb5d   :  { %v2354_v20 = vsel %vm1319_vm3, %v2352_v10, 0.0 }
 0xb5e   :  { %2355 = vadd.xlane.f32.xlu0 %v2354_v20 }
 0xb5f   :  { %7890 = vmatpush3.bf16.msra.mxu1 %v7887_v5  ;;  %v6424_v5 = vld [vmem:[#allocation2 + $0x1c0] ss:$0 sm:$0xff] }
 0xb62   :  { %2358 = vadd.xlane.f32.xlu0 %v2357_v53 }
 0xbeb   :  { %v2356_v41 = vpop.xlane.xlu0 %2355 }
 0xbec   :  { %v2360_v15 = vmul.f32 0.03125, %v2356_v41 }
 0xbee   :  { %v2362_v17 = vadd.f32 1e-05, %v2360_v15 }
 0xbef   :  { %v2359_v18 = vpop.xlane.xlu0 %2358 }
 0xbf0   :  { %8351 = vrsqrt.f32 %v2362_v17  ;;  %v2361_v19 = vmul.f32 0.03125, %v2359_v18 }
 0xbf2   :  { %v2363_v52 = vadd.f32 1e-05, %v2361_v19 }
 0xbf4   :  { %8353 = vrsqrt.f32 %v2363_v52 }
 0xbfa   :  { %v8352_v43 = vpop.eup %8351 }
 0xbfb   :  { %v2366_v55 = vmul.f32 %v8352_v43, %v2350_v9 }
 0xbfd   :  { %v2372_v24 = vmul.f32 %v6418_v21, %v2366_v55 }
 0xbfe   :  { %v8354_v57 = vpop.eup %8353 }
 0xbff   :  { %v2367_v25 = vmul.f32 %v8354_v57, %v2351_v40  ;;  %v9040_v27 = vadd.f32 %v6419_v22, %v2372_v24 }
 0xc01   :  { %v2373_v45 = vmul.f32 %v6418_v21, %v2367_v25  ;;  %7198 = vmatprep.mubr.msk.f32.mxu0 %vm1319_vm3, %v9040_v27  ;;  %v6423_v21 = vld [vmem:[#allocation2 + $0x1b8] ss:$0 sm:$0xff] }
 0xc03   :  { %v9044_v56 = vadd.f32 %v6419_v22, %v2373_v45 }
 0xc05   :  { %7199 = vmatmul.mubr.msk.f32.vlgmr.msra.gmra.mrb[30].mxu0 %vm1319_vm3, %v9044_v56 }
 0xcd8   :  { %v7200_v34 = vpop.f32.mrb[30].mxu0 }
 0xcd9   :  { %v2467_v16 = vadd.f32 %v7200_v34, %v6420_v38  ;;  %v2461_v7 = vpop.f32.mrb[31].mxu0 }
 0xcda   :  { %v2462_v40 = vadd.f32 %v6420_v38, %v2461_v7  ;;  %v6425_v7 = vld [vmem:[#allocation2 + $0x1c8] ss:$0 sm:$0xff] }
 0xcdb   :  { %v2471_v9 = vmul.f32 %v2467_v16, %v2467_v16 }
 0xcdc   :  { %v2470_v10 = vmul.f32 %v2462_v40, %v2462_v40 }
 0xcdd   :  { %v2473_v20 = vmul.f32 %v2471_v9, %v2467_v16 }
 0xcde   :  { %v2472_v42 = vmul.f32 %v2470_v10, %v2462_v40 }
 0xcdf   :  { %v2475_v53 = vmul.f32 0.044715, %v2473_v20 }
 0xce0   :  { %v2474_v51 = vmul.f32 0.044715, %v2472_v42  ;;  %v6426_v42 = vld [vmem:[#allocation2 + $0x1f0] ss:$0 sm:$0xff] }
 0xce1   :  { %v2477_v39 = vadd.f32 %v2475_v53, %v2467_v16 }
 0xce2   :  { %v2476_v0 = vadd.f32 %v2474_v51, %v2462_v40 }
 0xce3   :  { %v2479_v44 = vmul.f32 0.7978846, %v2477_v39 }
 0xce4   :  { %v2478_v13 = vmul.f32 0.7978846, %v2476_v0 }
 0xce5   :  { %8355 = vtanh.f32 %v2479_v44 }
 0xce6   :  { %8357 = vtanh.f32 %v2478_v13 }
 0xcef   :  { %v8356_v14 = vpop.eup %8355 }
 0xcf0   :  { %v8358_v41 = vpop.eup %8357  ;;  %v2483_v15 = vadd.f32 1.0, %v8356_v14 }
 0xcf1   :  { %v2482_v17 = vadd.f32 1.0, %v8358_v41 }
 0xcf2   :  { %v2485_v18 = vmul.f32 0.5, %v2483_v15 }
 0xcf3   :  { %v2484_v19 = vmul.f32 0.5, %v2482_v17 }
 0xcf4   :  { %v2487_v43 = vmul.f32 %v2485_v18, %v2467_v16 }
 0xcf5   :  { %v2486_v52 = vmul.f32 %v2484_v19, %v2462_v40 }
 0xcf7   :  { %7233 = vmatprep.mubr.f32.mxu1 %v2486_v52 }
 0xcf8   :  { %7234 = vmatmul.mubr.f32.vlgmr.msra.gmra.mrb[56].mxu1 %v2487_v43 }
 0xdcb   :  { %v7235_v55 = vpop.f32.mrb[56].mxu1 }
 0xdcc   :  { %v2581_v22 = vadd.f32 %v7235_v55, %v6423_v21  ;;  %v2575_v24 = vpop.f32.mrb[57].mxu1 }
 0xdcd   :  { %v2576_v57 = vadd.f32 %v6423_v21, %v2575_v24 }
 0xdce   :  { %v2585_v25 = vadd.f32 %v2581_v22, %v9044_v56 }
 0xdcf   :  { %v2584_v45 = vadd.f32 %v2576_v57, %v9040_v27  ;;  %v2626_v27 = vld [vmem:[#allocation2 + $0x1d0] sm:$0xff] }
 0xdd0   :  { %v2591_v48 = vsel %vm1319_vm3, %v2585_v25, 0.0  ;;  %v7891_v8 = vpack.c.bf16 %v2627_v30, %v2626_v27 }
 0xdd1   :  { %2592 = vadd.xlane.f32.xlu0 %v2591_v48  ;;  %v2588_v49 = vsel %vm1319_vm3, %v2584_v45, 0.0 }
 0xdd2   :  { %2589 = vadd.xlane.f32.xlu1 %v2588_v49  ;;  %7892 = vmatprep.subr.bf16.mxu0 %v7891_v8 }
 0xdd3   :  { %7894 = vmatpush3.bf16.msra.mxu0 %v7891_v8 }
 0xdd4   :  { %7896 = vmatprep.subr.bf16.mxu0 %v7895_v6 }
 0xdd7   :  { %7898 = vmatpush3.bf16.msra.mxu0 %v7895_v6 }
 0xe5e   :  { %v2593_v47 = vpop.xlane.xlu0 %2592 }
 0xe5f   :  { %v2595_v54 = vmul.f32 0.03125, %v2593_v47  ;;  %v2590_v29 = vpop.xlane.xlu1 %2589 }
 0xe60   :  { %v2594_v58 = vmul.f32 0.03125, %v2590_v29 }
 0xe61   :  { %v2597_v59 = vsub.f32 %v2585_v25, %v2595_v54 }
 0xe62   :  { %v2596_v31 = vsub.f32 %v2584_v45, %v2594_v58 }
 0xe63   :  { %v2599_v28 = vmul.f32 %v2597_v59, %v2597_v59 }
 0xe64   :  { %v2598_v60 = vmul.f32 %v2596_v31, %v2596_v31 }
 0xe65   :  { %v2603_v33 = vsel %vm1319_vm3, %v2599_v28, 0.0 }
 0xe66   :  { %2604 = vadd.xlane.f32.xlu0 %v2603_v33  ;;  %v2600_v56 = vsel %vm1319_vm3, %v2598_v60, 0.0 }
 0xe67   :  { %2601 = vadd.xlane.f32.xlu1 %v2600_v56 }
 0xef3   :  { %v2605_v61 = vpop.xlane.xlu0 %2604 }
 0xef4   :  { %v2607_v11 = vmul.f32 0.03125, %v2605_v61  ;;  %v2602_v1 = vpop.xlane.xlu1 %2601 }
 0xef5   :  { %v2606_v4 = vmul.f32 0.03125, %v2602_v1 }
 0xef6   :  { %v2609_v32 = vadd.f32 1e-05, %v2607_v11 }
 0xef7   :  { %v2608_v62 = vadd.f32 1e-05, %v2606_v4 }
 0xef8   :  { %8359 = vrsqrt.f32 %v2609_v32 }
 0xef9   :  { %8361 = vrsqrt.f32 %v2608_v62 }
 0xf02   :  { %v8360_v3 = vpop.eup %8359 }
 0xf03   :  { %v8362_v38 = vpop.eup %8361  ;;  %v2613_v34 = vmul.f32 %v8360_v3, %v2597_v59 }
 0xf04   :  { %v2612_v16 = vmul.f32 %v8362_v38, %v2596_v31 }
 0xf05   :  { %v2619_v40 = vmul.f32 %v6424_v5, %v2613_v34 }
 0xf06   :  { %v2618_v9 = vmul.f32 %v6424_v5, %v2612_v16 }
 0xf07   :  { %v9056_v20 = vadd.f32 %v6425_v7, %v2619_v40 }
 0xf08   :  { %v9054_v10 = vadd.f32 %v6425_v7, %v2618_v9 }
 0xf0a   :  { %7244 = vmatprep.mubr.msk.f32.mxu0 %vm1319_vm3, %v9054_v10 }
 0xf0b   :  { %7245 = vmatmul.mubr.msk.f32.vlgmr.msra.gmra.mrb[32].mxu0 %vm1319_vm3, %v9056_v20 }
 0xfde   :  { %v7246_v53 = vpop.f32.mrb[32].mxu0 }
 0xfdf   :  { %v9062_v51 = vadd.f32 %v7246_v53, %v6426_v42  ;;  %v2707_v39 = vpop.f32.mrb[33].mxu0 }
 0xfe0   :  { %v9064_v0 = vadd.f32 %v6426_v42, %v2707_v39 }
 0xfe2   :  { %7251 = vmatprep.mubr.msk.f32.mxu0 %vm138_vm0, %v9064_v0  ;;  %v9070_v44 = vpack.i.bf16 %v9062_v51, %v9064_v0 }
 0xfe4   :  { %8245 = vrot.lane.b32.xlu1 %v9070_v44, %s8484_s14 }
 0xfe8   :  { %8250 = vrot.lane.b32.xlu1 %v9070_v44, %s8490_s19 }
 0xfec   :  { %2923 = vrot.lane.b32.xlu1 %v9064_v0, %s8483_s1 }
 0xff0   :  { %8260 = vrot.lane.b32.xlu1 %v9070_v44, %s8485_s15 }
 0xff4   :  { %2925 = vrot.lane.b32.xlu1 %v9062_v51, %s8483_s1 }
 0xff8   :  { %3127 = vrot.lane.b32.xlu1 %v9064_v0, %s8487_s17 }
 0xffc   :  { %3129 = vrot.lane.b32.xlu1 %v9062_v51, %s8487_s17 }
0x1056   :  { %v8246_v13 = vpop.permute.xlu1 %8245 }
0x1057   :  { %v8248_v14 = vunpack.i.h.bf16 %v8246_v13  ;;  %v8247_v41 = vunpack.i.l.bf16 %v8246_v13 }
0x1059   :  { %v7899_v15 = vpack.c.bf16 %v8248_v14, %v8247_v41 }
0x105a   :  { %v8251_v17 = vpop.permute.xlu1 %8250 }
0x105b   :  { %v8253_v18 = vunpack.i.h.bf16 %v8251_v17  ;;  %v8252_v19 = vunpack.i.l.bf16 %v8251_v17  ;;  %7901 = vmatprep.subr.msk.bf16.mxu0 %vm8933_vm4, %v7899_v15 }
0x105c   :  { %7904 = vmatpush3.bf16.xpose.msk.msra.mxu0 %vm8933_vm4, %v7899_v15 }
0x105d   :  { %v7905_v52 = vpack.c.bf16 %v8253_v18, %v8252_v19 }
0x105e   :  { %v2924_v43 = vpop.permute.xlu1 %2923 }
0x105f   :  { %7906 = vmatprep.subr.bf16.mxu0 %v7905_v52 }
0x1062   :  { %v8261_v21 = vpop.permute.xlu1 %8260 }
0x1063   :  { %v8263_v55 = vunpack.i.h.bf16 %v8261_v21  ;;  %v8262_v22 = vunpack.i.l.bf16 %v8261_v21  ;;  %7252 = vmatmul.mubr.msk.f32.vlgmr.msra.gmra.mrb[34].mxu0 %vm138_vm0, %v9062_v51 }
0x1064   :  { %7908 = vmatpush3.bf16.msra.mxu0 %v7905_v52 }
0x1065   :  { %v7919_v24 = vpack.c.bf16 %v8263_v55, %v8262_v22 }
0x1066   :  { %v2926_v57 = vpop.permute.xlu1 %2925 }
0x1067   :  { %7921 = vmatprep.subr.msk.bf16.mxu1 %vm8933_vm4, %v7919_v24 }
0x1068   :  { %7924 = vmatpush3.bf16.xpose.msk.msra.mxu1 %vm8933_vm4, %v7919_v24 }
0x106a   :  { %v3128_v25 = vpop.permute.xlu1 %3127 }
0x106b   :  { %7279 = vmatprep.mubr.msk.f32.mxu1 %vm138_vm0, %v3128_v25 }
0x106e   :  { %v3130_v45 = vpop.permute.xlu1 %3129 }
0x106f   :  { %7280 = vmatmul.mubr.msk.f32.vlgmr.msra.gmra.mrb[58].mxu1 %vm138_vm0, %v3130_v45 }
0x1136   :  { %v7253_v48 = vpop.f32.mrb[34].mxu0 }
0x1137   :  { %v2801_v49 = vpop.f32.mrb[35].mxu0  ;;  %v2811_v47 = vmul.f32 0.35355338, %v7253_v48 }
0x1138   :  { %v2810_v54 = vmul.f32 0.35355338, %v2801_v49 }
0x1139   :  { %v2813_v59 = vadd.f32 %v2811_v47, %v8954_v37 }
0x113a   :  { %v2812_v29 = vadd.f32 %v2810_v54, %v8956_v12 }
0x113b   :  { %v2817_v31 = vsel %vm1499_vm7, %v2813_v59, -inf }
0x113c   :  { %v2814_v58 = vsel %vm1499_vm7, %v2812_v29, -inf }
0x113d   :  { %2815 = vmax.xlane.f32.xlu0 %v2814_v58 }
0x1141   :  { %2818 = vmax.xlane.f32.xlu0 %v2817_v31 }
0x1142   :  { %v7281_v28 = vpop.f32.mrb[58].mxu1 }
0x1143   :  { %v3209_v60 = vpop.f32.mrb[59].mxu1  ;;  %v3219_v18 = vmul.f32 0.35355338, %v7281_v28 }
0x1144   :  { %v3218_v13 = vmul.f32 0.35355338, %v3209_v60 }
0x1145   :  { %v3221_v21 = vadd.f32 %v3219_v18, %v8954_v37 }
0x1146   :  { %v3220_v52 = vadd.f32 %v3218_v13, %v8956_v12 }
0x1147   :  { %v3225_v55 = vsel %vm1499_vm7, %v3221_v21, -inf }
0x11ca   :  { %v2816_v33 = vpop.xlane.xlu0 %2815 }
0x11cb   :  { %v2820_v56 = vsub.f32 %v2812_v29, %v2816_v33 }
0x11cd   :  { %v2822_v8 = vmul.f32 1.442695, %v2820_v56 }
0x11ce   :  { %v2819_v27 = vpop.xlane.xlu0 %2818 }
0x11cf   :  { %v2821_v30 = vsub.f32 %v2813_v59, %v2819_v27 }
0x11d1   :  { %v2824_v2 = vmul.f32 1.442695, %v2821_v30 }
0x11d3   :  { %8363 = vpow2.f32 %v2824_v2 }
0x11d4   :  { %8365 = vpow2.f32 %v2822_v8 }
0x11dd   :  { %v8364_v36 = vpop.eup %8363 }
0x11de   :  { %v2829_v6 = vsel %vm1499_vm7, %v8364_v36, 0.0  ;;  %v8366_v61 = vpop.eup %8365 }
0x11df   :  { %2830 = vadd.xlane.f32.xlu0 %v2829_v6  ;;  %v2826_v11 = vsel %vm1499_vm7, %v8366_v61, 0.0 }
0x11e3   :  { %2827 = vadd.xlane.f32.xlu0 %v2826_v11 }
0x11f9   :  { %8255 = vrot.lane.b32.xlu0 %v9070_v44, %s8486_s16 }
0x126c   :  { %v2831_v1 = vpop.xlane.xlu0 %2830 }
0x126d   :  { %8367 = vrcp.f32 %v2831_v1 }
0x1270   :  { %v2828_v4 = vpop.xlane.xlu0 %2827 }
0x1271   :  { %8369 = vrcp.f32 %v2828_v4 }
0x1274   :  { %v8256_v32 = vpop.permute.xlu0 %8255 }
0x1275   :  { %v8258_v62 = vunpack.i.h.bf16 %v8256_v32  ;;  %v8257_v3 = vunpack.i.l.bf16 %v8256_v32 }
0x1277   :  { %v7909_v5 = vpack.c.bf16 %v8258_v62, %v8257_v3  ;;  %v8368_v38 = vpop.eup %8367 }
0x1278   :  { %v2835_v7 = vmul.f32 %v8368_v38, %v8364_v36 }
0x1279   :  { %7911 = vmatprep.subr.msk.bf16.mxu0 %vm8933_vm4, %v7909_v5 }
0x127b   :  { %v8370_v34 = vpop.eup %8369 }
0x127c   :  { %v2834_v16 = vmul.f32 %v8370_v34, %v8366_v61 }
0x127e   :  { %7258 = vmatprep.mubr.msk.f32.mxu0 %vm1499_vm7, %v2834_v16 }
0x127f   :  { %7259 = vmatmul.mubr.msk.f32.vlgmr.msra.gmra.mrb[36].mxu0 %vm1499_vm7, %v2835_v7 }
0x1280   :  { %7914 = vmatpush3.bf16.xpose.msk.msra.mxu0 %vm8933_vm4, %v7909_v5  ;;  %7265 = vmatprep.mubr.msk.f32.mxu0 %vm138_vm0, %v2924_v43  ;;  %v3222_v43 = vsel %vm1499_vm7, %v3220_v52, -inf }
0x1287   :  { %7266 = vmatmul.mubr.msk.f32.vlgmr.msra.gmra.mrb[38].mxu0 %vm138_vm0, %v2926_v57 }
0x1352   :  { %v9114_v40 = vpop.f32.mrb[36].mxu0 }
0x1353   :  { %v9116_v9 = vpop.f32.mrb[37].mxu0 }
0x135a   :  { %v7267_v42 = vpop.f32.mrb[38].mxu0 }
0x135b   :  { %v3015_v53 = vmul.f32 0.35355338, %v7267_v42  ;;  %v3005_v39 = vpop.f32.mrb[39].mxu0 }
0x135c   :  { %v3014_v14 = vmul.f32 0.35355338, %v3005_v39 }
0x135d   :  { %v3017_v41 = vadd.f32 %v3015_v53, %v8954_v37 }
0x135e   :  { %v3016_v15 = vadd.f32 %v3014_v14, %v8956_v12 }
0x135f   :  { %v3021_v17 = vsel %vm1499_vm7, %v3017_v41, -inf }
0x1360   :  { %3022 = vmax.xlane.f32.xlu1 %v3021_v17  ;;  %v3018_v19 = vsel %vm1499_vm7, %v3016_v15, -inf }
0x1361   :  { %3019 = vmax.xlane.f32.xlu0 %v3018_v19 }
0x1365   :  { %3223 = vmax.xlane.f32.xlu0 %v3222_v43 }
0x1369   :  { %3226 = vmax.xlane.f32.xlu0 %v3225_v55 }
0x13ed   :  { %v3023_v24 = vpop.xlane.xlu1 %3022 }
0x13ee   :  { %v3020_v22 = vpop.xlane.xlu0 %3019  ;;  %v3025_v45 = vsub.f32 %v3017_v41, %v3023_v24 }
0x13ef   :  { %v3024_v56 = vsub.f32 %v3016_v15, %v3020_v22 }
0x13f0   :  { %v3028_v54 = vmul.f32 1.442695, %v3025_v45 }
0x13f1   :  { %v3026_v27 = vmul.f32 1.442695, %v3024_v56 }
0x13f2   :  { %v3224_v57 = vpop.xlane.xlu0 %3223 }
0x13f3   :  { %v3228_v25 = vsub.f32 %v3220_v52, %v3224_v57 }
0x13f5   :  { %v3230_v48 = vmul.f32 1.442695, %v3228_v25 }
0x13f6   :  { %v3227_v49 = vpop.xlane.xlu0 %3226 }
0x13f7   :  { %8371 = vpow2.f32 %v3230_v48  ;;  %v3229_v47 = vsub.f32 %v3221_v21, %v3227_v49 }
0x13f9   :  { %v3232_v29 = vmul.f32 1.442695, %v3229_v47 }
0x13fb   :  { %8373 = vpow2.f32 %v3232_v29 }
0x13fc   :  { %8375 = vpow2.f32 %v3028_v54 }
0x13fd   :  { %8377 = vpow2.f32 %v3026_v27 }
0x1401   :  { %v8372_v58 = vpop.eup %8371 }
0x1402   :  { %v3234_v59 = vsel %vm1499_vm7, %v8372_v58, 0.0 }
0x1403   :  { %3235 = vadd.xlane.f32.xlu1 %v3234_v59 }
0x1405   :  { %v8374_v31 = vpop.eup %8373 }
0x1406   :  { %v3237_v28 = vsel %vm1499_vm7, %v8374_v31, 0.0  ;;  %v8376_v60 = vpop.eup %8375 }
0x1407   :  { %3238 = vadd.xlane.f32.xlu0 %v3237_v28  ;;  %v3033_v33 = vsel %vm1499_vm7, %v8376_v60, 0.0  ;;  %v8378_v30 = vpop.eup %8377 }
0x1408   :  { %v3030_v8 = vsel %vm1499_vm7, %v8378_v30, 0.0 }
0x140b   :  { %3034 = vadd.xlane.f32.xlu0 %v3033_v33 }
0x1414   :  { %8265 = vrot.lane.b32.xlu1 %v9070_v44, %s8489_s18 }
0x1421   :  { %8270 = vrot.lane.b32.xlu0 %v9070_v44, %s8491_s20 }
0x1425   :  { %3333 = vrot.lane.b32.xlu0 %v9062_v51, %s8493_s22 }
0x1438   :  { %3031 = vadd.xlane.f32.xlu1 %v3030_v8 }
0x1449   :  { %8275 = vrot.lane.b32.xlu1 %v9070_v44, %s8492_s21 }
0x144d   :  { %3331 = vrot.lane.b32.xlu1 %v9064_v0, %s8493_s22 }
0x1490   :  { %v3236_v2 = vpop.xlane.xlu1 %3235 }
0x1491   :  { %8379 = vrcp.f32 %v3236_v2 }
0x1494   :  { %v8266_v36 = vpop.permute.xlu1 %8265  ;;  %v3239_v6 = vpop.xlane.xlu0 %3238 }
0x1495   :  { %v8268_v61 = vunpack.i.h.bf16 %v8266_v36  ;;  %v8267_v11 = vunpack.i.l.bf16 %v8266_v36 }
0x1497   :  { %v7915_v1 = vpack.c.bf16 %v8268_v61, %v8267_v11 }
0x1498   :  { %v3035_v4 = vpop.xlane.xlu0 %3034 }
0x1499   :  { %7916 = vmatprep.subr.bf16.mxu0 %v7915_v1  ;;  %8381 = vrcp.f32 %v3035_v4  ;;  %v2717_v4 = vld [vmem:[#allocation2 + $0x200] sm:$0xff] }
0x149a   :  { %7918 = vmatpush3.bf16.msra.mxu0 %v7915_v1 }
0x149b   :  { %v8380_v38 = vpop.eup %8379 }
0x149c   :  { %v8271_v51 = vpop.permute.xlu0 %8270  ;;  %v3242_v14 = vmul.f32 %v8380_v38, %v8372_v58 }
0x149d   :  { %v8273_v32 = vunpack.i.h.bf16 %v8271_v51  ;;  %v8272_v62 = vunpack.i.l.bf16 %v8271_v51  ;;  %v2718_v51 = vld [vmem:[#allocation2 + $0x208] sm:$0xff] }
0x149f   :  { %v7925_v3 = vpack.c.bf16 %v8273_v32, %v8272_v62  ;;  %v2719_v62 = vld [vmem:[#allocation2 + $0x210] sm:$0xff] }
0x14a0   :  { %v3334_v18 = vpop.permute.xlu0 %3333 }
0x14a1   :  { %7926 = vmatprep.subr.bf16.mxu0 %v7925_v3 }
0x14a3   :  { %v8382_v34 = vpop.eup %8381 }
0x14a4   :  { %v3039_v39 = vmul.f32 %v8382_v34, %v8376_v60 }
0x14c5   :  { %v3032_v5 = vpop.xlane.xlu1 %3031 }
0x14c6   :  { %8383 = vrcp.f32 %v3032_v5 }
0x14c7   :  { %8385 = vrcp.f32 %v3239_v6 }
0x14c9   :  { %v8276_v0 = vpop.permute.xlu1 %8275 }
0x14ca   :  { %v8278_v7 = vunpack.i.h.bf16 %v8276_v0  ;;  %v8277_v42 = vunpack.i.l.bf16 %v8276_v0 }
0x14cc   :  { %v7929_v41 = vpack.c.bf16 %v8278_v7, %v8277_v42 }
0x14cd   :  { %v3332_v17 = vpop.permute.xlu1 %3331 }
0x14d0   :  { %v8384_v16 = vpop.eup %8383 }
0x14d1   :  { %v3038_v53 = vmul.f32 %v8384_v16, %v8378_v30  ;;  %v8386_v13 = vpop.eup %8385 }
0x14d2   :  { %v3243_v15 = vmul.f32 %v8386_v13, %v8374_v31 }
0x14d3   :  { %7272 = vmatprep.mubr.msk.f32.mxu0 %vm1499_vm7, %v3038_v53 }
0x14d4   :  { %7273 = vmatmul.mubr.msk.f32.vlgmr.msra.gmra.mrb[40].mxu0 %vm1499_vm7, %v3039_v39 }
0x14d5   :  { %7928 = vmatpush3.bf16.msra.mxu0 %v7925_v3  ;;  %7286 = vmatprep.mubr.msk.f32.mxu0 %vm1499_vm7, %v3242_v14  ;;  %v7943_v3 = vpack.c.bf16 %v2719_v62, %v2718_v51 }
0x14d6   :  { %7931 = vmatprep.subr.msk.bf16.mxu0 %vm8933_vm4, %v7929_v41 }
0x14d8   :  { %7287 = vmatmul.mubr.msk.f32.vlgmr.msra.gmra.mrb[42].mxu0 %vm1499_vm7, %v3243_v15 }
0x14d9   :  { %7293 = vmatprep.mubr.msk.f32.mxu0 %vm138_vm0, %v3332_v17 }
0x14de   :  { %7934 = vmatpush3.bf16.xpose.msk.msra.mxu0 %vm8933_vm4, %v7929_v41 }
0x14e5   :  { %7294 = vmatmul.mubr.msk.f32.vlgmr.msra.gmra.mrb[44].mxu0 %vm138_vm0, %v3334_v18  ;;  %v6453_v18 = vld [vmem:[#allocation2 + $0x218] ss:$0 sm:$0xff] }
0x15a7   :  { %v7274_v19 = vpop.f32.mrb[40].mxu0 }
0x15a8   :  { %v3118_v52 = vpop.f32.mrb[41].mxu0 }
0x15ab   :  { %v7288_v43 = vpop.f32.mrb[42].mxu0 }
0x15ac   :  { %v3322_v21 = vpop.f32.mrb[43].mxu0 }
0x15b8   :  { %v7295_v55 = vpop.f32.mrb[44].mxu0 }
0x15b9   :  { %v3423_v22 = vmul.f32 0.35355338, %v7295_v55  ;;  %v3413_v24 = vpop.f32.mrb[45].mxu0 }
0x15ba   :  { %v3422_v57 = vmul.f32 0.35355338, %v3413_v24 }
0x15bb   :  { %v3425_v25 = vadd.f32 %v3423_v22, %v8954_v37 }
0x15bc   :  { %v3424_v45 = vadd.f32 %v3422_v57, %v8956_v12 }
0x15bd   :  { %v3429_v48 = vsel %vm1499_vm7, %v3425_v25, -inf }
0x15be   :  { %3430 = vmax.xlane.f32.xlu0 %v3429_v48  ;;  %v3426_v49 = vsel %vm1499_vm7, %v3424_v45, -inf }
0x15bf   :  { %3427 = vmax.xlane.f32.xlu1 %v3426_v49 }
0x164b   :  { %v3431_v47 = vpop.xlane.xlu0 %3430 }
0x164c   :  { %v3433_v54 = vsub.f32 %v3425_v25, %v3431_v47  ;;  %v3428_v29 = vpop.xlane.xlu1 %3427 }
0x164d   :  { %v3432_v58 = vsub.f32 %v3424_v45, %v3428_v29 }
0x164e   :  { %v3436_v59 = vmul.f32 1.442695, %v3433_v54 }
0x164f   :  { %v3434_v31 = vmul.f32 1.442695, %v3432_v58  ;;  %v3693_v58 = vld [vmem:[#allocation2 + $0x238] sm:$0xff] }
0x1650   :  { %8387 = vpow2.f32 %v3436_v59 }
0x1651   :  { %8389 = vpow2.f32 %v3434_v31  ;;  %v3694_v31 = vld [vmem:[#allocation2 + $0x240] sm:$0xff] }
0x165a   :  { %v8388_v28 = vpop.eup %8387 }
0x165b   :  { %v8390_v60 = vpop.eup %8389  ;;  %v3441_v37 = vsel %vm1499_vm7, %v8388_v28, 0.0 }
0x165c   :  { %3442 = vadd.xlane.f32.xlu1 %v3441_v37  ;;  %v3438_v33 = vsel %vm1499_vm7, %v8390_v60, 0.0  ;;  %v3800_v37 = vld [vmem:[#allocation2 + $0x258] sm:$0xff] }
0x165d   :  { %3439 = vadd.xlane.f32.xlu0 %v3438_v33  ;;  %v3801_v33 = vld [vmem:[#allocation2 + $0x260] sm:$0xff] }
0x166d   :  { %3537 = vrot.lane.b32.xlu1 %v3118_v52, %s8479_s26 }
0x1671   :  { %3539 = vrot.lane.b32.xlu1 %v7274_v19, %s8479_s26 }
0x1673   :  { %8280 = vrot.lane.b32.xlu0 %v9070_v44, %s8494_s23  ;;  %v2716_v44 = vld [vmem:[#allocation2 + $0x1f8] sm:$0xff] }
0x1674   :  { %v7939_v32 = vpack.c.bf16 %v2717_v4, %v2716_v44  ;;  %v6457_v44 = vld [vmem:[#allocation2 + $0x228] ss:$0 sm:$0xff] }
0x1675   :  { %3547 = vrot.lane.b32.xlu1 %v7288_v43, %s8495_s0 }
0x1677   :  { %3545 = vrot.lane.b32.xlu0 %v3322_v21, %s8495_s0 }
0x16e9   :  { %v3443_v56 = vpop.xlane.xlu1 %3442 }
0x16ea   :  { %8391 = vrcp.f32 %v3443_v56  ;;  %v3440_v27 = vpop.xlane.xlu0 %3439  ;;  %v7955_v56 = vpack.c.bf16 %v3801_v33, %v3800_v37  ;;  %v4659_v33 = vld [vmem:[#allocation2 + $0x488] sm:$0xff] }
0x16eb   :  { %8393 = vrcp.f32 %v3440_v27 }
0x16ed   :  { %v3538_v38 = vpop.permute.xlu1 %3537 }
0x16ee   :  { %v8281_v30 = vpop.permute.xlu0 %8280  ;;  %v3559_v42 = vsel %vm138_vm0, %v9116_v9, %v3538_v38 }
0x16ef   :  { %v8283_v8 = vunpack.i.h.bf16 %v8281_v30  ;;  %v8282_v2 = vunpack.i.l.bf16 %v8281_v30 }
0x16f1   :  { %v7935_v36 = vpack.c.bf16 %v8283_v8, %v8282_v2  ;;  %v3540_v34 = vpop.permute.xlu1 %3539 }
0x16f2   :  { %v3546_v7 = vpop.permute.xlu0 %3545  ;;  %v3560_v39 = vsel %vm138_vm0, %v9114_v40, %v3540_v34 }
0x16f3   :  { %7936 = vmatprep.subr.bf16.mxu1 %v7935_v36  ;;  %v3561_v13 = vsel %vm1499_vm7, %v3559_v42, %v3546_v7  ;;  %v3945_v7 = vld [vmem:[#allocation2 + $0x328] sm:$0xff] }
0x16f4   :  { %v8392_v6 = vpop.eup %8391  ;;  %7938 = vmatpush3.bf16.msra.mxu1 %v7935_v36 }
0x16f5   :  { %v8394_v61 = vpop.eup %8393  ;;  %v3447_v1 = vmul.f32 %v8392_v6, %v8388_v28  ;;  %7940 = vmatprep.subr.bf16.mxu1 %v7939_v32  ;;  %v3548_v16 = vpop.permute.xlu1 %3547  ;;  %v3695_v28 = vld [vmem:[#allocation2 + $0x248] sm:$0xff] }
0x16f6   :  { %v3446_v11 = vmul.f32 %v8394_v61, %v8390_v60  ;;  %v3562_v41 = vsel %vm1499_vm7, %v3560_v39, %v3548_v16  ;;  %v7951_v60 = vpack.c.bf16 %v3695_v28, %v3694_v31  ;;  %v3944_v16 = vld [vmem:[#allocation2 + $0x320] sm:$0xff]  ;;  %v3939_v39 = vld [vmem:[#allocation2 + $0x2f8] sm:$0xff]  ;;  %v4339_v28 = vrot.slane %v8892_v46, 2 }
0x16f7   :  { %v7991_v42 = vpack.c.bf16 %v3945_v7, %v3944_v16  ;;  %v3804_v16 = vld [vmem:[#allocation2 + $0x278] sm:$0xff]  ;;  %v3805_v7 = vld [vmem:[#allocation2 + $0x280] sm:$0xff] }
0x16f8   :  { %7300 = vmatprep.mubr.msk.f32.mxu1 %vm1499_vm7, %v3446_v11  ;;  %v6456_v11 = vld [vmem:[#allocation2 + $0x220] ss:$0 sm:$0xff] }
0x16f9   :  { %7301 = vmatmul.mubr.msk.f32.vlgmr.msra.gmra.mrb[60].mxu1 %vm1499_vm7, %v3447_v1 }
0x16fa   :  { %7942 = vmatpush3.bf16.msra.mxu1 %v7939_v32 }
0x16fb   :  { %7944 = vmatprep.subr.bf16.mxu1 %v7943_v3 }
0x16fe   :  { %7946 = vmatpush3.bf16.msra.mxu1 %v7943_v3  ;;  %v3942_v3 = vld [vmem:[#allocation2 + $0x310] sm:$0xff] }
0x16ff   :  { %7956 = vmatprep.subr.bf16.mxu1 %v7955_v56 }
0x17cc   :  { %v7302_v5 = vpop.f32.mrb[60].mxu1 }
0x17cd   :  { %3555 = vrot.lane.b32.xlu1 %v7302_v5, %s8496_s24  ;;  %v3526_v0 = vpop.f32.mrb[61].mxu1  ;;  %v3943_v5 = vld [vmem:[#allocation2 + $0x318] sm:$0xff] }
0x17ce   :  { %3553 = vrot.lane.b32.xlu0 %v3526_v0, %s8496_s24  ;;  %v7988_v38 = vpack.c.bf16 %v3943_v5, %v3942_v3  ;;  %v3802_v5 = vld [vmem:[#allocation2 + $0x268] sm:$0xff] }
0x183f   :  { %v3556_v53 = vpop.permute.xlu1 %3555 }
0x1840   :  { %v3554_v14 = vpop.permute.xlu0 %3553  ;;  %v3564_v17 = vsel %vm2249_vm8, %v3562_v41, %v3556_v53  ;;  %v3938_v53 = vld [vmem:[#allocation2 + $0x2f0] sm:$0xff]  ;;  %v3940_v41 = vld [vmem:[#allocation2 + $0x300] sm:$0xff] }
0x1841   :  { %v3563_v15 = vsel %vm2249_vm8, %v3561_v13, %v3554_v14  ;;  %v7994_v13 = vpack.c.bf16 %v3939_v39, %v3938_v53  ;;  %v3972_v14 = vrot.slane %v8894_v50, 2  ;;  %v3806_v53 = vld [vmem:[#allocation2 + $0x288] sm:$0xff]  ;;  %v3807_v39 = vld [vmem:[#allocation2 + $0x290] sm:$0xff] }
0x1842   :  { %7311 = vmatprep.mubr.msk.f32.mxu1 %vm1319_vm3, %v3563_v15  ;;  %v3941_v15 = vld [vmem:[#allocation2 + $0x308] sm:$0xff] }
0x1843   :  { %7312 = vmatmul.mubr.msk.f32.vlgmr.msra.gmra.mrb[62].mxu1 %vm1319_vm3, %v3564_v17  ;;  %v7997_v17 = vpack.c.bf16 %v3941_v15, %v3940_v41  ;;  %v3810_v15 = vld [vmem:[#allocation2 + $0x2a8] sm:$0xff] }
0x1844   :  { %7958 = vmatpush3.bf16.msra.mxu1 %v7955_v56  ;;  %v4660_v56 = vld [vmem:[#allocation2 + $0x490] sm:$0xff] }
0x1916   :  { %v7313_v19 = vpop.f32.mrb[62].mxu1 }
0x1917   :  { %v3647_v9 = vadd.f32 %v7313_v19, %v6453_v18  ;;  %v3641_v52 = vpop.f32.mrb[63].mxu1  ;;  %v3947_v19 = vld [vmem:[#allocation2 + $0x338] sm:$0xff] }
0x1918   :  { %v3642_v43 = vadd.f32 %v6453_v18, %v3641_v52  ;;  %v3946_v18 = vld [vmem:[#allocation2 + $0x330] sm:$0xff]  ;;  %v3948_v52 = vld [vmem:[#allocation2 + $0x340] sm:$0xff] }
0x1919   :  { %v3651_v40 = vadd.f32 %v3647_v9, %v9056_v20  ;;  %v8000_v9 = vpack.c.bf16 %v3947_v19, %v3946_v18  ;;  %v3812_v18 = vld [vmem:[#allocation2 + $0x2b8] sm:$0xff] }
0x191a   :  { %v3650_v21 = vadd.f32 %v3642_v43, %v9054_v10  ;;  %v3692_v10 = vld [vmem:[#allocation2 + $0x230] sm:$0xff]  ;;  %v3949_v43 = vld [vmem:[#allocation2 + $0x348] sm:$0xff] }
0x191b   :  { %v3657_v55 = vsel %vm1319_vm3, %v3651_v40, 0.0  ;;  %v7947_v59 = vpack.c.bf16 %v3693_v58, %v3692_v10  ;;  %v3966_v58 = vld [vmem:[#allocation2 + $0x3d0] sm:$0xff] }
0x191c   :  { %3658 = vadd.xlane.f32.xlu1 %v3657_v55  ;;  %v3654_v22 = vsel %vm1319_vm3, %v3650_v21, 0.0  ;;  %v3951_v55 = vld [vmem:[#allocation2 + $0x358] sm:$0xff] }
0x191d   :  { %3655 = vadd.xlane.f32.xlu0 %v3654_v22  ;;  %7948 = vmatprep.subr.bf16.mxu0 %v7947_v59 }
0x191e   :  { %7950 = vmatpush3.bf16.msra.mxu0 %v7947_v59  ;;  %v3967_v59 = vld [vmem:[#allocation2 + $0x3d8] sm:$0xff] }
0x191f   :  { %7952 = vmatprep.subr.bf16.mxu0 %v7951_v60  ;;  %v8030_v31 = vpack.c.bf16 %v3967_v59, %v3966_v58 }
0x1922   :  { %7954 = vmatpush3.bf16.msra.mxu0 %v7951_v60  ;;  %v3969_v60 = vld [vmem:[#allocation2 + $0x3e8] sm:$0xff] }
0x1923   :  { %7987 = vmatprep.subr.bf16.mxu0 %v8480_v23 }
0x19a9   :  { %v3659_v24 = vpop.xlane.xlu1 %3658 }
0x19aa   :  { %v3661_v57 = vmul.f32 0.03125, %v3659_v24  ;;  %v3656_v25 = vpop.xlane.xlu0 %3655  ;;  %v4117_v24 = vrot.slane %v8894_v50, 4 }
0x19ab   :  { %v3660_v45 = vmul.f32 0.03125, %v3656_v25  ;;  %v3953_v25 = vld [vmem:[#allocation2 + $0x368] sm:$0xff] }
0x19ac   :  { %v3663_v48 = vsub.f32 %v3651_v40, %v3661_v57  ;;  %v8003_v40 = vpack.c.bf16 %v3949_v43, %v3948_v52  ;;  %v3952_v57 = vld [vmem:[#allocation2 + $0x360] sm:$0xff]  ;;  %v3814_v43 = vld [vmem:[#allocation2 + $0x2c8] sm:$0xff] }
0x19ad   :  { %v3662_v49 = vsub.f32 %v3650_v21, %v3660_v45  ;;  %v3950_v21 = vld [vmem:[#allocation2 + $0x350] sm:$0xff]  ;;  %v8009_v45 = vpack.c.bf16 %v3953_v25, %v3952_v57 }
0x19ae   :  { %v3665_v29 = vmul.f32 %v3663_v48, %v3663_v48  ;;  %v8006_v22 = vpack.c.bf16 %v3951_v55, %v3950_v21  ;;  %v6458_v55 = vld [vmem:[#allocation2 + $0x250] ss:$0 sm:$0xff] }
0x19af   :  { %v3664_v47 = vmul.f32 %v3662_v49, %v3662_v49 }
0x19b0   :  { %v3669_v20 = vsel %vm1319_vm3, %v3665_v29, 0.0  ;;  %v3960_v29 = vld [vmem:[#allocation2 + $0x3a0] sm:$0xff] }
0x19b1   :  { %v3666_v54 = vsel %vm1319_vm3, %v3664_v47, 0.0 }
0x19b2   :  { %3667 = vadd.xlane.f32.xlu0 %v3666_v54  ;;  %v4191_v54 = vrot.slane %v8894_v50, 6 }
0x19b6   :  { %3670 = vadd.xlane.f32.xlu0 %v3669_v20  ;;  %v3961_v20 = vld [vmem:[#allocation2 + $0x3a8] sm:$0xff] }
0x19b7   :  { %v8021_v10 = vpack.c.bf16 %v3961_v20, %v3960_v29 }
0x1a3f   :  { %v3668_v27 = vpop.xlane.xlu0 %3667 }
0x1a40   :  { %v3672_v30 = vmul.f32 0.03125, %v3668_v27  ;;  %v8060_v27 = vpack.c.bf16 %v4660_v56, %v4659_v33 }
0x1a42   :  { %v3674_v8 = vadd.f32 1e-05, %v3672_v30  ;;  %v4487_v30 = vrot.slane %v8892_v46, 6 }
0x1a43   :  { %v3671_v2 = vpop.xlane.xlu0 %3670 }
0x1a44   :  { %8395 = vrsqrt.f32 %v3674_v8  ;;  %v3673_v36 = vmul.f32 0.03125, %v3671_v2  ;;  %v4661_v8 = vld [vmem:[#allocation2 + $0x498] sm:$0xff]  ;;  %v4662_v2 = vld [vmem:[#allocation2 + $0x4a0] sm:$0xff] }
0x1a46   :  { %v3675_v6 = vadd.f32 1e-05, %v3673_v36  ;;  %v8063_v36 = vpack.c.bf16 %v4662_v2, %v4661_v8 }
0x1a48   :  { %8397 = vrsqrt.f32 %v3675_v6  ;;  %v4741_v6 = vld [vmem:[#allocation2 + $0x4b0] sm:$0xff] }
0x1a4e   :  { %v8396_v61 = vpop.eup %8395 }
0x1a4f   :  { %v3678_v1 = vmul.f32 %v8396_v61, %v3662_v49  ;;  %v3959_v49 = vld [vmem:[#allocation2 + $0x398] sm:$0xff] }
0x1a50   :  { %v4742_v61 = vld [vmem:[#allocation2 + $0x4b8] sm:$0xff] }
0x1a51   :  { %v3684_v4 = vmul.f32 %v6456_v11, %v3678_v1  ;;  %v8066_v1 = vpack.c.bf16 %v4742_v61, %v4741_v6  ;;  %v3954_v61 = vld [vmem:[#allocation2 + $0x370] sm:$0xff] }
0x1a52   :  { %v8398_v51 = vpop.eup %8397 }
0x1a53   :  { %v3679_v32 = vmul.f32 %v8398_v51, %v3663_v48  ;;  %v9183_v62 = vadd.f32 %v6457_v44, %v3684_v4  ;;  %v3958_v48 = vld [vmem:[#allocation2 + $0x390] sm:$0xff]  ;;  %v4744_v4 = vld [vmem:[#allocation2 + $0x4c8] sm:$0xff] }
0x1a54   :  { %v8018_v47 = vpack.c.bf16 %v3959_v49, %v3958_v48 }
0x1a55   :  { %v3685_v0 = vmul.f32 %v6456_v11, %v3679_v32  ;;  %7322 = vmatprep.mubr.msk.f32.mxu0 %vm1319_vm3, %v9183_v62  ;;  %v9230_v11 = vld [vmem:[#allocation2 + $0x480] sm:$0xff] }
0x1a56   :  { %v40_v32 = vld [vmem:[#allocation2 + $0x40] sm:$0xff] }
0x1a57   :  { %v9187_v34 = vadd.f32 %v6457_v44, %v3685_v0  ;;  %v4743_v44 = vld [vmem:[#allocation2 + $0x4c0] sm:$0xff]  ;;  %v112_v3 = vadd.f32 %v8727_v26, %v40_v32  ;;  %v3803_v0 = vld [vmem:[#allocation2 + $0x270] sm:$0xff]  ;;  %v7967_v26 = vpack.c.bf16 %v3807_v39, %v3806_v53  ;;  %v3963_v53 = vld [vmem:[#allocation2 + $0x3b8] sm:$0xff] }
0x1a58   :  { %v8069_v51 = vpack.c.bf16 %v4744_v4, %v4743_v44 }
0x1a59   :  { %7323 = vmatmul.mubr.msk.f32.vlgmr.msra.gmra.mrb[46].mxu0 %vm1319_vm3, %v9187_v34 }
0x1a5a   :  { %7989 = vmatpush3.bf16.msra.mxu0 %v7988_v38  ;;  %7368 = vmatprep.mubr.msk.f32.mxu0 %vm8481_vm1, %v8482_v35  ;;  %v7959_v38 = vpack.c.bf16 %v3803_v0, %v3802_v5  ;;  %v3957_v5 = vld [vmem:[#allocation2 + $0x388] sm:$0xff] }
0x1a5b   :  { %7990 = vmatprep.subr.bf16.mxu0 %v8480_v23 }
0x1a5c   :  { %7960 = vmatprep.subr.bf16.mxu1 %v7959_v38 }
0x1a5d   :  { %7962 = vmatpush3.bf16.msra.mxu1 %v7959_v38 }
0x1a5e   :  { %7992 = vmatpush3.bf16.msra.mxu0 %v7991_v42  ;;  %v7963_v42 = vpack.c.bf16 %v3805_v7, %v3804_v16 }
0x1a5f   :  { %7993 = vmatprep.subr.bf16.mxu0 %v8480_v23 }
0x1a60   :  { %7964 = vmatprep.subr.bf16.mxu1 %v7963_v42 }
0x1a61   :  { %7369 = vmatmul.mubr.msk.f32.vlgmr.msra.gmra.mrb[48].mxu0 %vm1319_vm3, %v3972_v14  ;;  %7966 = vmatpush3.bf16.msra.mxu1 %v7963_v42  ;;  %v3809_v14 = vld [vmem:[#allocation2 + $0x2a0] sm:$0xff]  ;;  %v3962_v42 = vld [vmem:[#allocation2 + $0x3b0] sm:$0xff] }
0x1a62   :  { %7995 = vmatpush3.bf16.msra.mxu0 %v7994_v13  ;;  %7379 = vmatprep.mubr.msk.f32.mxu0 %vm8481_vm1, %v8482_v35  ;;  %v3808_v13 = vld [vmem:[#allocation2 + $0x298] sm:$0xff]  ;;  %v8024_v39 = vpack.c.bf16 %v3963_v53, %v3962_v42 }
0x1a63   :  { %7996 = vmatprep.subr.bf16.mxu0 %v8480_v23  ;;  %7968 = vmatprep.subr.bf16.mxu1 %v7967_v26  ;;  %v7971_v41 = vpack.c.bf16 %v3809_v14, %v3808_v13  ;;  %v3965_v13 = vld [vmem:[#allocation2 + $0x3c8] sm:$0xff] }
0x1a65   :  { %7970 = vmatpush3.bf16.msra.mxu1 %v7967_v26  ;;  %v3964_v26 = vld [vmem:[#allocation2 + $0x3c0] sm:$0xff] }
0x1a66   :  { %7998 = vmatpush3.bf16.msra.mxu0 %v7997_v17  ;;  %7972 = vmatprep.subr.bf16.mxu1 %v7971_v41  ;;  %v3811_v17 = vld [vmem:[#allocation2 + $0x2b0] sm:$0xff] }
0x1a67   :  { %7999 = vmatprep.subr.bf16.mxu0 %v8480_v23  ;;  %v7975_v19 = vpack.c.bf16 %v3811_v17, %v3810_v15  ;;  %v8027_v15 = vpack.c.bf16 %v3965_v13, %v3964_v26  ;;  %v4567_v17 = vld [vmem:[#allocation2 + $0x3f8] sm:$0xff] }
0x1a69   :  { %7380 = vmatmul.mubr.msk.f32.vlgmr.msra.gmra.mrb[50].mxu0 %vm1319_vm3, %v8894_v50  ;;  %v3968_v50 = vld [vmem:[#allocation2 + $0x3e0] sm:$0xff]  ;;  %7974 = vmatpush3.bf16.msra.mxu1 %v7971_v41 }
0x1a6a   :  { %8001 = vmatpush3.bf16.msra.mxu0 %v8000_v9  ;;  %7390 = vmatprep.mubr.msk.f32.mxu0 %vm8481_vm1, %v8482_v35  ;;  %v8033_v37 = vpack.c.bf16 %v3969_v60, %v3968_v50  ;;  %v3813_v9 = vld [vmem:[#allocation2 + $0x2c0] sm:$0xff] }
0x1a6b   :  { %8002 = vmatprep.subr.bf16.mxu0 %v8480_v23  ;;  %v7979_v52 = vpack.c.bf16 %v3813_v9, %v3812_v18  ;;  %7976 = vmatprep.subr.bf16.mxu1 %v7975_v19  ;;  %v4568_v18 = vld [vmem:[#allocation2 + $0x400] sm:$0xff]  ;;  %v4413_v9 = vrot.slane %v8892_v46, 4 }
0x1a6d   :  { %7978 = vmatpush3.bf16.msra.mxu1 %v7975_v19  ;;  %v8036_v19 = vpack.c.bf16 %v4568_v18, %v4567_v17 }
0x1a6e   :  { %8004 = vmatpush3.bf16.msra.mxu0 %v8003_v40  ;;  %7980 = vmatprep.subr.bf16.mxu1 %v7979_v52  ;;  %v3815_v40 = vld [vmem:[#allocation2 + $0x2d0] sm:$0xff] }
0x1a6f   :  { %8005 = vmatprep.subr.bf16.mxu0 %v8480_v23  ;;  %v7983_v21 = vpack.c.bf16 %v3815_v40, %v3814_v43  ;;  %v4570_v43 = vld [vmem:[#allocation2 + $0x410] sm:$0xff] }
0x1a71   :  { %7391 = vmatmul.mubr.msk.f32.vlgmr.msra.gmra.mrb[52].mxu0 %vm1319_vm3, %v4117_v24  ;;  %7982 = vmatpush3.bf16.msra.mxu1 %v7979_v52  ;;  %v4569_v52 = vld [vmem:[#allocation2 + $0x408] sm:$0xff] }
0x1a72   :  { %8007 = vmatpush3.bf16.msra.mxu0 %v8006_v22  ;;  %7401 = vmatprep.mubr.msk.f32.mxu0 %vm8481_vm1, %v8482_v35 }
0x1a73   :  { %8008 = vmatprep.subr.bf16.mxu0 %v8480_v23  ;;  %7984 = vmatprep.subr.bf16.mxu1 %v7983_v21 }
0x1a75   :  { %7986 = vmatpush3.bf16.msra.mxu1 %v7983_v21 }
0x1a76   :  { %8010 = vmatpush3.bf16.msra.mxu0 %v8009_v45  ;;  %8011 = vmatprep.subr.bf16.mxu1 %v8480_v23 }
0x1a77   :  { %8017 = vmatprep.subr.bf16.mxu0 %v8480_v23 }
0x1a79   :  { %7402 = vmatmul.mubr.msk.f32.vlgmr.msra.gmra.mrb[54].mxu0 %vm1319_vm3, %v4191_v54 }
0x1a7a   :  { %8019 = vmatpush3.bf16.msra.mxu0 %v8018_v47  ;;  %7423 = vmatprep.mubr.msk.f32.mxu0 %vm8481_vm1, %v8482_v35 }
0x1a7b   :  { %8020 = vmatprep.subr.bf16.mxu0 %v8480_v23 }
0x1a7e   :  { %8022 = vmatpush3.bf16.msra.mxu0 %v8021_v10 }
0x1a7f   :  { %8029 = vmatprep.subr.bf16.mxu0 %v8480_v23 }
0x1a81   :  { %7424 = vmatmul.mubr.msk.f32.vlgmr.msra.gmra.mrb[56].mxu0 %vm1319_vm3, %v4339_v28 }
0x1a82   :  { %8031 = vmatpush3.bf16.msra.mxu0 %v8030_v31  ;;  %7445 = vmatprep.mubr.msk.f32.mxu0 %vm8481_vm1, %v8482_v35 }
0x1a83   :  { %8032 = vmatprep.subr.bf16.mxu0 %v8480_v23 }
0x1a86   :  { %8034 = vmatpush3.bf16.msra.mxu0 %v8033_v37 }
0x1a87   :  { %8059 = vmatprep.subr.bf16.mxu0 %v8480_v23 }
0x1a89   :  { %7446 = vmatmul.mubr.msk.f32.vlgmr.msra.gmra.mrb[58].mxu0 %vm1319_vm3, %v4487_v30 }
0x1a8a   :  { %8061 = vmatpush3.bf16.msra.mxu0 %v8060_v27  ;;  %7491 = vmatprep.mubr.msk.f32.mxu0 %vm8481_vm1, %v8482_v35 }
0x1a8b   :  { %8062 = vmatprep.subr.bf16.mxu0 %v8480_v23 }
0x1a8e   :  { %8064 = vmatpush3.bf16.msra.mxu0 %v8063_v36 }
0x1a8f   :  { %8065 = vmatprep.subr.bf16.mxu0 %v8480_v23 }
0x1a91   :  { %7492 = vmatmul.mubr.msk.f32.vlgmr.msra.gmra.mrb[60].mxu0 %vm1319_vm3, %v9230_v11 }
0x1a92   :  { %8067 = vmatpush3.bf16.msra.mxu0 %v8066_v1  ;;  %7502 = vmatprep.mubr.msk.f32.mxu0 %vm8481_vm1, %v8482_v35  ;;  %v3955_v1 = vld [vmem:[#allocation2 + $0x378] sm:$0xff] }
0x1a93   :  { %8068 = vmatprep.subr.bf16.mxu0 %v8480_v23 }
0x1a96   :  { %8070 = vmatpush3.bf16.msra.mxu0 %v8069_v51  ;;  %v8012_v51 = vpack.c.bf16 %v3955_v1, %v3954_v61 }
0x1a97   :  { %8071 = vmatprep.subr.bf16.mxu0 %v8480_v23 }
0x1a99   :  { %7503 = vmatmul.mubr.msk.f32.vlgmr.msra.gmra.mrb[62].mxu0 %vm1319_vm3, %v112_v3  ;;  %v3956_v3 = vld [vmem:[#allocation2 + $0x380] sm:$0xff] }
0x1a9a   :  { %7505 = vmatprep.mubr.msk.f32.mxu0 %vm8481_vm1, %v8482_v35  ;;  %v8015_v7 = vpack.c.bf16 %v3957_v5, %v3956_v3 }
0x1b2c   :  { %v7324_v22 = vpop.f32.mrb[46].mxu0 }
0x1b2d   :  { %v3779_v24 = vadd.f32 %v7324_v22, %v6458_v55  ;;  %v3773_v57 = vpop.f32.mrb[47].mxu0 }
0x1b2e   :  { %v3774_v25 = vadd.f32 %v6458_v55, %v3773_v57  ;;  %v8039_v55 = vpack.c.bf16 %v4570_v43, %v4569_v52 }
0x1b2f   :  { %v3783_v45 = vmul.f32 %v3779_v24, %v3779_v24 }
0x1b30   :  { %v3782_v48 = vmul.f32 %v3774_v25, %v3774_v25 }
0x1b31   :  { %v3785_v49 = vmul.f32 %v3783_v45, %v3779_v24  ;;  %v4572_v45 = vld [vmem:[#allocation2 + $0x420] sm:$0xff] }
0x1b32   :  { %v3784_v47 = vmul.f32 %v3782_v48, %v3774_v25 }
0x1b33   :  { %v3787_v54 = vmul.f32 0.044715, %v3785_v49  ;;  %v4573_v49 = vld [vmem:[#allocation2 + $0x428] sm:$0xff] }
0x1b34   :  { %v3786_v29 = vmul.f32 0.044715, %v3784_v47  ;;  %v4041_v20 = vpop.f32.mrb[48].mxu0  ;;  %v4574_v47 = vld [vmem:[#allocation2 + $0x430] sm:$0xff] }
0x1b35   :  { %v3789_v10 = vadd.f32 %v3787_v54, %v3779_v24  ;;  %v7370_v58 = vpop.f32.mrb[49].mxu0  ;;  %v8045_v54 = vpack.c.bf16 %v4574_v47, %v4573_v49  ;;  %v6462_v49 = vld [vmem:[#allocation2 + $0x2e0] ss:$0 sm:$0xff] }
0x1b36   :  { %v3788_v59 = vadd.f32 %v3786_v29, %v3774_v25  ;;  %v4575_v29 = vld [vmem:[#allocation2 + $0x438] sm:$0xff]  ;;  %v4577_v58 = vld [vmem:[#allocation2 + $0x448] sm:$0xff] }
0x1b37   :  { %v3791_v31 = vmul.f32 0.7978846, %v3789_v10 }
0x1b38   :  { %v3790_v28 = vmul.f32 0.7978846, %v3788_v59  ;;  %v4578_v59 = vld [vmem:[#allocation2 + $0x450] sm:$0xff] }
0x1b39   :  { %8399 = vtanh.f32 %v3791_v31  ;;  %v8051_v31 = vpack.c.bf16 %v4578_v59, %v4577_v58 }
0x1b3a   :  { %8401 = vtanh.f32 %v3790_v28  ;;  %v4579_v28 = vld [vmem:[#allocation2 + $0x458] sm:$0xff] }
0x1b3c   :  { %v4113_v50 = vpop.f32.mrb[50].mxu0 }
0x1b3d   :  { %v4114_v60 = vadd.f32 %v4113_v50, %v4041_v20  ;;  %v7381_v37 = vpop.f32.mrb[51].mxu0  ;;  %v4576_v20 = vld [vmem:[#allocation2 + $0x440] sm:$0xff] }
0x1b3e   :  { %v8048_v10 = vpack.c.bf16 %v4576_v20, %v4575_v29  ;;  %v4580_v50 = vld [vmem:[#allocation2 + $0x460] sm:$0xff]  ;;  %v4581_v37 = vld [vmem:[#allocation2 + $0x468] sm:$0xff] }
0x1b3f   :  { %v6463_v29 = vld [vmem:[#allocation2 + $0x2e8] ss:$0 sm:$0xff] }
0x1b43   :  { %v8400_v33 = vpop.eup %8399 }
0x1b44   :  { %v8402_v56 = vpop.eup %8401  ;;  %v4186_v27 = vpop.f32.mrb[52].mxu0  ;;  %v3795_v30 = vadd.f32 1.0, %v8400_v33  ;;  %v4582_v33 = vld [vmem:[#allocation2 + $0x470] sm:$0xff] }
0x1b45   :  { %v4190_v8 = vadd.f32 %v4186_v27, %v4114_v60  ;;  %v7392_v2 = vpop.f32.mrb[53].mxu0  ;;  %v3794_v36 = vadd.f32 1.0, %v8402_v56  ;;  %v8054_v60 = vpack.c.bf16 %v4580_v50, %v4579_v28  ;;  %v8057_v56 = vpack.c.bf16 %v4582_v33, %v4581_v37  ;;  %v6461_v27 = vld [vmem:[#allocation2 + $0x2d8] ss:$0 sm:$0xff] }
0x1b46   :  { %v3797_v6 = vmul.f32 0.5, %v3795_v30 }
0x1b47   :  { %v3796_v44 = vmul.f32 0.5, %v3794_v36 }
0x1b48   :  { %v3799_v32 = vmul.f32 %v3797_v6, %v3779_v24 }
0x1b49   :  { %v3798_v4 = vmul.f32 %v3796_v44, %v3774_v25  ;;  %v4571_v25 = vld [vmem:[#allocation2 + $0x418] sm:$0xff] }
0x1b4a   :  { %v8042_v48 = vpack.c.bf16 %v4572_v45, %v4571_v25 }
0x1b4b   :  { %7357 = vmatprep.mubr.f32.mxu1 %v3798_v4 }
0x1b4c   :  { %v4260_v0 = vpop.f32.mrb[54].mxu0  ;;  %7358 = vmatmul.mubr.f32.vlgmr.msra.gmra.mrb[64].mxu1 %v3799_v32 }
0x1b4d   :  { %v9244_v38 = vadd.f32 %v4260_v0, %v4190_v8  ;;  %v7403_v16 = vpop.f32.mrb[55].mxu0  ;;  %8013 = vmatpush3.bf16.msra.mxu1 %v8012_v51  ;;  %7412 = vmatprep.mubr.msk.f32.mxu1 %vm8481_vm1, %v8482_v35 }
0x1b4e   :  { %8014 = vmatprep.subr.bf16.mxu1 %v8480_v23 }
0x1b51   :  { %8016 = vmatpush3.bf16.msra.mxu1 %v8015_v7  ;;  %v6472_v7 = vld [vmem:[#allocation2 + $0x3f0] ss:$0 sm:$0xff] }
0x1b52   :  { %8023 = vmatprep.subr.bf16.mxu1 %v8480_v23 }
0x1b54   :  { %7413 = vmatmul.mubr.msk.f32.vlgmr.msra.gmra.mrb[66].mxu1 %vm1319_vm3, %v8892_v46  ;;  %v9252_v14 = vpop.f32.mrb[56].mxu0 }
0x1b55   :  { %v7425_v41 = vpop.f32.mrb[57].mxu0  ;;  %8025 = vmatpush3.bf16.msra.mxu1 %v8024_v39  ;;  %7434 = vmatprep.mubr.msk.f32.mxu1 %vm8481_vm1, %v8482_v35 }
0x1b56   :  { %8026 = vmatprep.subr.bf16.mxu1 %v8480_v23 }
0x1b59   :  { %8028 = vmatpush3.bf16.msra.mxu1 %v8027_v15 }
0x1b5a   :  { %8035 = vmatprep.subr.bf16.mxu1 %v8480_v23 }
0x1b5c   :  { %7435 = vmatmul.mubr.msk.f32.vlgmr.msra.gmra.mrb[68].mxu1 %vm1319_vm3, %v4413_v9  ;;  %v4556_v40 = vpop.f32.mrb[58].mxu0 }
0x1b5d   :  { %v7447_v21 = vpop.f32.mrb[59].mxu0  ;;  %8037 = vmatpush3.bf16.msra.mxu1 %v8036_v19  ;;  %7480 = vmatprep.mubr.msk.f32.mxu1 %vm8481_vm1, %v8482_v35  ;;  %v6473_v19 = vld [vmem:[#allocation2 + $0x478] ss:$0 sm:$0xff] }
0x1b5e   :  { %8038 = vmatprep.subr.bf16.mxu1 %v8480_v23 }
0x1b61   :  { %8040 = vmatpush3.bf16.msra.mxu1 %v8039_v55 }
0x1b62   :  { %8041 = vmatprep.subr.bf16.mxu1 %v8480_v23 }
0x1b64   :  { %v9264_v22 = vpop.f32.mrb[60].mxu0 }
0x1b65   :  { %v7493_v46 = vpop.f32.mrb[61].mxu0  ;;  %8043 = vmatpush3.bf16.msra.mxu1 %v8042_v48 }
0x1b66   :  { %8044 = vmatprep.subr.bf16.mxu1 %v8480_v23 }
0x1b69   :  { %8046 = vmatpush3.bf16.msra.mxu1 %v8045_v54 }
0x1b6a   :  { %8047 = vmatprep.subr.bf16.mxu1 %v8480_v23 }
0x1b6c   :  { %v9266_v24 = vpop.f32.mrb[62].mxu0 }
0x1b6d   :  { %v7504_v57 = vpop.f32.mrb[63].mxu0  ;;  %8049 = vmatpush3.bf16.msra.mxu1 %v8048_v10 }
0x1b6e   :  { %8050 = vmatprep.subr.bf16.mxu1 %v8480_v23 }
0x1b71   :  { %8052 = vmatpush3.bf16.msra.mxu1 %v8051_v31  ;;  %v6476_v31 = vld [vmem:[#allocation2 + $0x4d0] ss:$0 sm:$0xff] }
0x1b72   :  { %8053 = vmatprep.subr.bf16.mxu1 %v8480_v23  ;;  %v4826_v50 = vadd.f32 %v6476_v31, %v9266_v24 }
0x1b75   :  { %8055 = vmatpush3.bf16.msra.mxu1 %v8054_v60 }
0x1b76   :  { %8056 = vmatprep.subr.bf16.mxu1 %v8480_v23 }
0x1b79   :  { %8058 = vmatpush3.bf16.msra.mxu1 %v8057_v56 }
0x1b7a   :  { %8078 = vmatprep.subr.bf16.mxu1 %v8480_v23 }
0x1c1f   :  { %v7359_v30 = vpop.f32.mrb[64].mxu1 }
0x1c20   :  { %v3893_v8 = vadd.f32 %v7359_v30, %v6461_v27  ;;  %v3887_v2 = vpop.f32.mrb[65].mxu1 }
0x1c21   :  { %v3888_v36 = vadd.f32 %v6461_v27, %v3887_v2  ;;  %v6474_v27 = vld [vmem:[#allocation2 + $0x4a8] ss:$0 sm:$0xff] }
0x1c22   :  { %v3897_v6 = vadd.f32 %v3893_v8, %v9187_v34  ;;  %v9301_v24 = vadd.f32 %v6474_v27, %v9264_v22 }
0x1c23   :  { %v3896_v61 = vadd.f32 %v3888_v36, %v9183_v62 }
0x1c24   :  { %v3903_v1 = vsel %vm1319_vm3, %v3897_v6, 0.0 }
0x1c25   :  { %3904 = vadd.xlane.f32.xlu0 %v3903_v1  ;;  %v3900_v44 = vsel %vm1319_vm3, %v3896_v61, 0.0 }
0x1c26   :  { %3901 = vadd.xlane.f32.xlu1 %v3900_v44 }
0x1c27   :  { %v4334_v4 = vpop.f32.mrb[66].mxu1 }
0x1c28   :  { %v4338_v51 = vadd.f32 %v4334_v4, %v9244_v38  ;;  %v7414_v32 = vpop.f32.mrb[67].mxu1 }
0x1c2a   :  { %v4412_v3 = vadd.f32 %v9252_v14, %v4338_v51 }
0x1c2f   :  { %v4482_v5 = vpop.f32.mrb[68].mxu1 }
0x1c30   :  { %v4486_v0 = vadd.f32 %v4482_v5, %v4412_v3  ;;  %v7436_v16 = vpop.f32.mrb[69].mxu1 }
0x1c32   :  { %v4560_v42 = vadd.f32 %v4556_v40, %v4486_v0 }
0x1c34   :  { %v4565_v34 = vadd.f32 %v6472_v7, %v4560_v42 }
0x1c36   :  { %v4566_v53 = vmax.f32 %v4565_v34, 0.0 }
0x1c38   :  { %7481 = vmatmul.mubr.f32.vlgmr.msra.gmra.mrb[70].mxu1 %v4566_v53 }
0x1c39   :  { %7535 = vmatprep.mubr.msk.f32.mxu1 %vm8481_vm1, %v8482_v35 }
0x1cb2   :  { %v3905_v62 = vpop.xlane.xlu0 %3904 }
0x1cb3   :  { %v3907_v39 = vmul.f32 0.03125, %v3905_v62  ;;  %v3902_v26 = vpop.xlane.xlu1 %3901 }
0x1cb4   :  { %v3906_v13 = vmul.f32 0.03125, %v3902_v26 }
0x1cb5   :  { %v3909_v41 = vsub.f32 %v3897_v6, %v3907_v39 }
0x1cb6   :  { %v3908_v38 = vsub.f32 %v3896_v61, %v3906_v13 }
0x1cb7   :  { %v3911_v15 = vmul.f32 %v3909_v41, %v3909_v41 }
0x1cb8   :  { %v3910_v17 = vmul.f32 %v3908_v38, %v3908_v38 }
0x1cb9   :  { %v3915_v14 = vsel %vm1319_vm3, %v3911_v15, 0.0 }
0x1cba   :  { %3916 = vadd.xlane.f32.xlu0 %v3915_v14  ;;  %v3912_v18 = vsel %vm1319_vm3, %v3910_v17, 0.0 }
0x1cbb   :  { %3913 = vadd.xlane.f32.xlu1 %v3912_v18 }
0x1d0b   :  { %v4654_v9 = vpop.f32.mrb[70].mxu1 }
0x1d0c   :  { %v4655_v52 = vadd.f32 %v6473_v19, %v4654_v9  ;;  %v7482_v43 = vpop.f32.mrb[71].mxu1 }
0x1d0e   :  { %6301 = vst.msk [vmem:[#allocation5] sm:$0x3] %vm6300_vm9, %v4655_v52 }
0x1d47   :  { %v3917_v40 = vpop.xlane.xlu0 %3916 }
0x1d48   :  { %v3919_v21 = vmul.f32 0.03125, %v3917_v40  ;;  %v3914_v55 = vpop.xlane.xlu1 %3913 }
0x1d49   :  { %v3918_v46 = vmul.f32 0.03125, %v3914_v55 }
0x1d4a   :  { %v3921_v57 = vadd.f32 1e-05, %v3919_v21 }
0x1d4b   :  { %v3920_v25 = vadd.f32 1e-05, %v3918_v46 }
0x1d4c   :  { %8403 = vrsqrt.f32 %v3921_v57 }
0x1d4d   :  { %8405 = vrsqrt.f32 %v3920_v25 }
0x1d56   :  { %v8404_v45 = vpop.eup %8403 }
0x1d57   :  { %v8406_v48 = vpop.eup %8405  ;;  %v3925_v54 = vmul.f32 %v8404_v45, %v3909_v41 }
0x1d58   :  { %v3924_v47 = vmul.f32 %v8406_v48, %v3908_v38 }
0x1d59   :  { %v3931_v58 = vmul.f32 %v6462_v49, %v3925_v54 }
0x1d5a   :  { %v3930_v20 = vmul.f32 %v6462_v49, %v3924_v47 }
0x1d5b   :  { %v3937_v59 = vadd.f32 %v6463_v29, %v3931_v58 }
0x1d5c   :  { %v3936_v10 = vadd.f32 %v6463_v29, %v3930_v20 }
0x1d5e   :  { %7506 = vmatmul.mubr.msk.f32.gmra.mrb[64].mxu0 %vm1319_vm3, %v3936_v10 }
0x1d5f   :  { %7508 = vmatprep.mubr.msk.f32.mxu0 %vm8481_vm1, %v8482_v35 }
0x1d62   :  { %7509 = vmatmul.mubr.msk.f32.gmra.mrb[66].mxu0 %vm1319_vm3, %v3937_v59 }
0x1d63   :  { %7517 = vmatprep.mubr.msk.f32.mxu0 %vm8481_vm1, %v8482_v35 }
0x1e31   :  { %v4830_v28 = vpop.f32.mrb[64].mxu0 }
0x1e32   :  { %v4831_v60 = vadd.f32 %v6476_v31, %v4830_v28  ;;  %v7507_v37 = vpop.f32.mrb[65].mxu0 }
0x1e34   :  { %v9291_v33 = vpack.i.bf16 %v4831_v60, %v4826_v50  ;;  %v8072_v56 = vpack.c.bf16 %v4831_v60, %v4826_v50 }
0x1e35   :  { %v4835_v30 = vpop.f32.mrb[66].mxu0 }
0x1e36   :  { %v9293_v8 = vadd.f32 %v6476_v31, %v4835_v30  ;;  %8285 = vrot.lane.b32.xlu1 %v9291_v33, %s8483_s1  ;;  %v7510_v2 = vpop.f32.mrb[67].mxu0  ;;  %8074 = vmatpush3.bf16.xpose.msk.msra.mxu0 %vm8933_vm4, %v8072_v56 }
0x1e37   :  { %7515 = vmatprep.subr.mxu0 %v8482_v35 }
0x1e38   :  { %5027 = vrot.lane.b32.xlu0 %v9293_v8, %s8483_s1 }
0x1e3a   :  { %5021 = vrot.lane.b32.xlu1 %v9301_v24, %s8483_s1 }
0x1e3e   :  { %7516 = vmatpush3.xpose.msk.msra.mxu0 %vm138_vm0, %v9293_v8 }
0x1e3f   :  { %8075 = vmatprep.subr.bf16.mxu0 %v8480_v23 }
0x1e41   :  { %7518 = vmatmul.mubr.msk.f32.vlgmr.msra.gmra.mrb[68].mxu0 %vm138_vm0, %v9301_v24 }
0x1e42   :  { %7526 = vmatprep.mubr.msk.f32.mxu0 %vm8481_vm1, %v8482_v35 }
0x1ea8   :  { %v8286_v36 = vpop.permute.xlu1 %8285 }
0x1ea9   :  { %v8288_v22 = vunpack.i.h.bf16 %v8286_v36  ;;  %v8287_v6 = vunpack.i.l.bf16 %v8286_v36 }
0x1eaa   :  { %v5028_v1 = vpop.permute.xlu0 %5027 }
0x1eab   :  { %v8079_v61 = vpack.c.bf16 %v8288_v22, %v8287_v6 }
0x1eac   :  { %v5022_v44 = vpop.permute.xlu1 %5021 }
0x1ead   :  { %8081 = vmatpush3.bf16.xpose.msk.msra.mxu1 %vm8933_vm4, %v8079_v61 }
0x1eae   :  { %7533 = vmatprep.subr.mxu1 %v8482_v35 }
0x1eb5   :  { %7534 = vmatpush3.xpose.msk.msra.mxu1 %vm138_vm0, %v5028_v1 }
0x1eb6   :  { %8089 = vmatprep.subr.bf16.mxu1 %v8480_v23 }
0x1eb8   :  { %7536 = vmatmul.mubr.msk.f32.vlgmr.msra.gmra.mrb[72].mxu1 %vm138_vm0, %v5022_v44 }
0x1eb9   :  { %7562 = vmatprep.mubr.msk.f32.mxu1 %vm8481_vm1, %v8482_v35 }
0x1f14   :  { %v4922_v4 = vpop.f32.mrb[68].mxu0 }
0x1f15   :  { %v4926_v51 = vmul.f32 0.35355338, %v4922_v4  ;;  %v7519_v32 = vpop.f32.mrb[69].mxu0 }
0x1f17   :  { %v4927_v3 = vadd.f32 %v4926_v51, %v8956_v12 }
0x1f19   :  { %v4928_v5 = vsel %vm2249_vm8, %v4927_v3, -inf }
0x1f1a   :  { %4929 = vmax.xlane.f32.xlu1 %v4928_v5 }
0x1f2b   :  { %4943 = vrot.lane.b32.xlu1 %v9293_v8, %s8484_s14 }
0x1f2f   :  { %8295 = vrot.lane.b32.xlu1 %v9291_v33, %s8486_s16 }
0x1f8b   :  { %v5103_v0 = vpop.f32.mrb[72].mxu1 }
0x1f8c   :  { %v5107_v16 = vmul.f32 0.35355338, %v5103_v0  ;;  %v7537_v7 = vpop.f32.mrb[73].mxu1 }
0x1f8e   :  { %v5108_v42 = vadd.f32 %v5107_v16, %v8956_v12 }
0x1f90   :  { %v5109_v34 = vsel %vm2249_vm8, %v5108_v42, -inf }
0x1f91   :  { %5110 = vmax.xlane.f32.xlu0 %v5109_v34 }
0x1fa7   :  { %8290 = vrot.lane.b32.xlu0 %v9291_v33, %s8484_s14  ;;  %v4930_v53 = vpop.xlane.xlu1 %4929 }
0x1fa8   :  { %v4931_v62 = vsub.f32 %v4927_v3, %v4930_v53 }
0x1faa   :  { %v4932_v39 = vmul.f32 1.442695, %v4931_v62 }
0x1fab   :  { %v4944_v9 = vpop.permute.xlu1 %4943 }
0x1fac   :  { %8407 = vpow2.f32 %v4932_v39 }
0x1faf   :  { %v8296_v21 = vpop.permute.xlu1 %8295 }
0x1fb0   :  { %v8298_v55 = vunpack.i.h.bf16 %v8296_v21  ;;  %v8297_v46 = vunpack.i.l.bf16 %v8296_v21 }
0x1fb2   :  { %v8083_v45 = vpack.c.bf16 %v8298_v55, %v8297_v46 }
0x1fb6   :  { %v8408_v26 = vpop.eup %8407 }
0x1fb7   :  { %v4934_v13 = vsel %vm2249_vm8, %v8408_v26, 0.0 }
0x1fc6   :  { %4935 = vadd.xlane.f32.xlu0 %v4934_v13 }
0x1fdc   :  { %5124 = vrot.lane.b32.xlu0 %v9293_v8, %s8486_s16 }
0x1fe0   :  { %5208 = vrot.lane.b32.xlu0 %v9293_v8, %s8487_s17 }
0x201e   :  { %v5111_v41 = vpop.xlane.xlu0 %5110 }
0x201f   :  { %v5112_v38 = vsub.f32 %v5108_v42, %v5111_v41 }
0x2021   :  { %v5113_v15 = vmul.f32 1.442695, %v5112_v38 }
0x2022   :  { %v8291_v17 = vpop.permute.xlu0 %8290 }
0x2023   :  { %8409 = vpow2.f32 %v5113_v15  ;;  %v8293_v14 = vunpack.i.h.bf16 %v8291_v17  ;;  %v8292_v18 = vunpack.i.l.bf16 %v8291_v17 }
0x2025   :  { %v8076_v19 = vpack.c.bf16 %v8293_v14, %v8292_v18 }
0x2027   :  { %8077 = vmatpush3.bf16.msra.mxu0 %v8076_v19 }
0x2028   :  { %7524 = vmatprep.subr.mxu0 %v8482_v35 }
0x202b   :  { %7525 = vmatpush3.msra.mxu0 %v4944_v9 }
0x202c   :  { %8082 = vmatprep.subr.bf16.mxu0 %v8480_v23 }
0x202d   :  { %v8410_v52 = vpop.eup %8409 }
0x202e   :  { %v5115_v43 = vsel %vm2249_vm8, %v8410_v52, 0.0 }
0x202f   :  { %5116 = vadd.xlane.f32.xlu1 %v5115_v43 }
0x2040   :  { %8300 = vrot.lane.b32.xlu1 %v9291_v33, %s8487_s17 }
0x2044   :  { %5202 = vrot.lane.b32.xlu1 %v9301_v24, %s8487_s17 }
0x2048   :  { %5305 = vrot.lane.b32.xlu1 %v9293_v8, %s8485_s15 }
0x2053   :  { %v4936_v40 = vpop.xlane.xlu0 %4935 }
0x2054   :  { %8411 = vrcp.f32 %v4936_v40 }
0x2057   :  { %v5125_v48 = vpop.permute.xlu0 %5124 }
0x205b   :  { %v5209_v59 = vpop.permute.xlu0 %5208 }
0x205e   :  { %v8412_v57 = vpop.eup %8411 }
0x205f   :  { %v4938_v25 = vmul.f32 %v8412_v57, %v8408_v26 }
0x2061   :  { %7527 = vmatmul.mubr.msk.f32.vlgmr.msra.gmra.mrb[70].mxu0 %vm2249_vm8, %v4938_v25  ;;  %v4840_v25 = vld [vmem:[#allocation2 + $0x4e0] sm:$0xff] }
0x2062   :  { %8084 = vmatpush3.bf16.msra.mxu0 %v8083_v45  ;;  %7544 = vmatprep.mubr.msk.f32.mxu0 %vm8481_vm1, %v8482_v35  ;;  %v4841_v45 = vld [vmem:[#allocation2 + $0x4e8] sm:$0xff] }
0x2063   :  { %7542 = vmatprep.subr.mxu0 %v8482_v35 }
0x2066   :  { %7543 = vmatpush3.msra.mxu0 %v5125_v48 }
0x2067   :  { %8085 = vmatprep.subr.bf16.mxu0 %v8480_v23 }
0x20bc   :  { %v5117_v49 = vpop.xlane.xlu1 %5116 }
0x20bd   :  { %8413 = vrcp.f32 %v5117_v49  ;;  %v4842_v49 = vld [vmem:[#allocation2 + $0x4f0] sm:$0xff] }
0x20c0   :  { %v8301_v47 = vpop.permute.xlu1 %8300 }
0x20c1   :  { %v8303_v54 = vunpack.i.h.bf16 %v8301_v47  ;;  %v8302_v29 = vunpack.i.l.bf16 %v8301_v47  ;;  %v8103_v47 = vpack.c.bf16 %v4842_v49, %v4841_v45  ;;  %v6504_v45 = vld [vmem:[#allocation2 + $0x530] ss:$0 sm:$0xff] }
0x20c3   :  { %v8086_v58 = vpack.c.bf16 %v8303_v54, %v8302_v29 }
0x20c4   :  { %v5203_v31 = vpop.permute.xlu1 %5202 }
0x20c7   :  { %v8414_v20 = vpop.eup %8413 }
0x20c8   :  { %v5119_v10 = vmul.f32 %v8414_v20, %v8410_v52  ;;  %v5306_v32 = vpop.permute.xlu1 %5305 }
0x20ca   :  { %7545 = vmatmul.mubr.msk.f32.vlgmr.msra.gmra.mrb[72].mxu0 %vm2249_vm8, %v5119_v10 }
0x20cb   :  { %8088 = vmatpush3.bf16.xpose.msk.msra.mxu0 %vm8933_vm4, %v8086_v58  ;;  %7553 = vmatprep.mubr.msk.f32.mxu0 %vm8481_vm1, %v8482_v35 }
0x20cc   :  { %7551 = vmatprep.subr.mxu0 %v8482_v35 }
0x20d3   :  { %7552 = vmatpush3.xpose.msk.msra.mxu0 %vm138_vm0, %v5209_v59 }
0x20d4   :  { %8096 = vmatprep.subr.bf16.mxu0 %v8480_v23 }
0x20d6   :  { %7554 = vmatmul.mubr.msk.f32.vlgmr.msra.gmra.mrb[74].mxu0 %vm138_vm0, %v5203_v31 }
0x20d7   :  { %7580 = vmatprep.mubr.msk.f32.mxu0 %vm8481_vm1, %v8482_v35 }
0x2134   :  { %v9362_v28 = vpop.f32.mrb[70].mxu0 }
0x2135   :  { %v7528_v50 = vpop.f32.mrb[71].mxu0 }
0x219d   :  { %v5198_v60 = vpop.f32.mrb[72].mxu0 }
0x219e   :  { %v7546_v37 = vpop.f32.mrb[73].mxu0 }
0x21a9   :  { %v5284_v56 = vpop.f32.mrb[74].mxu0 }
0x21aa   :  { %v5288_v27 = vmul.f32 0.35355338, %v5284_v56  ;;  %v7555_v30 = vpop.f32.mrb[75].mxu0 }
0x21ac   :  { %v5289_v2 = vadd.f32 %v5288_v27, %v8956_v12 }
0x21ae   :  { %v5290_v36 = vsel %vm2249_vm8, %v5289_v2, -inf }
0x21af   :  { %5291 = vmax.xlane.f32.xlu0 %v5290_v36 }
0x21c5   :  { %8305 = vrot.lane.b32.xlu0 %v9291_v33, %s8485_s15 }
0x21c9   :  { %8310 = vrot.lane.b32.xlu0 %v9291_v33, %s8493_s22 }
0x21cd   :  { %5383 = vrot.lane.b32.xlu0 %v9301_v24, %s8493_s22 }
0x223c   :  { %v5292_v22 = vpop.xlane.xlu0 %5291 }
0x223d   :  { %v5293_v6 = vsub.f32 %v5289_v2, %v5292_v22 }
0x223f   :  { %v5294_v61 = vmul.f32 1.442695, %v5293_v6 }
0x2240   :  { %v8306_v1 = vpop.permute.xlu0 %8305 }
0x2241   :  { %8415 = vpow2.f32 %v5294_v61  ;;  %v8308_v44 = vunpack.i.h.bf16 %v8306_v1  ;;  %v8307_v4 = vunpack.i.l.bf16 %v8306_v1  ;;  %v5682_v1 = vld [vmem:[#allocation2 + $0x510] sm:$0xff] }
0x2243   :  { %v8090_v51 = vpack.c.bf16 %v8308_v44, %v8307_v4  ;;  %v5683_v44 = vld [vmem:[#allocation2 + $0x518] sm:$0xff] }
0x2244   :  { %v8311_v0 = vpop.permute.xlu0 %8310  ;;  %v8106_v4 = vpack.c.bf16 %v5683_v44, %v5682_v1  ;;  %v5894_v44 = vld [vmem:[#allocation2 + $0x5f0] sm:$0xff] }
0x2245   :  { %8091 = vmatpush3.bf16.msra.mxu1 %v8090_v51  ;;  %v8313_v16 = vunpack.i.h.bf16 %v8311_v0  ;;  %v8312_v7 = vunpack.i.l.bf16 %v8311_v0  ;;  %v5684_v51 = vld [vmem:[#allocation2 + $0x520] sm:$0xff] }
0x2246   :  { %7560 = vmatprep.subr.mxu1 %v8482_v35 }
0x2247   :  { %v8093_v53 = vpack.c.bf16 %v8313_v16, %v8312_v7 }
0x2248   :  { %v5384_v39 = vpop.permute.xlu0 %5383 }
0x2249   :  { %7561 = vmatpush3.msra.mxu1 %v5306_v32  ;;  %v5685_v32 = vld [vmem:[#allocation2 + $0x528] sm:$0xff] }
0x224a   :  { %8092 = vmatprep.subr.bf16.mxu1 %v8480_v23 }
0x224b   :  { %v8416_v3 = vpop.eup %8415 }
0x224c   :  { %v5296_v5 = vsel %vm2249_vm8, %v8416_v3, 0.0 }
0x224d   :  { %5297 = vadd.xlane.f32.xlu1 %v5296_v5  ;;  %v5774_v5 = vld [vmem:[#allocation2 + $0x540] sm:$0xff] }
0x225e   :  { %5389 = vrot.lane.b32.xlu1 %v9293_v8, %s8493_s22 }
0x22da   :  { %v5298_v24 = vpop.xlane.xlu1 %5297 }
0x22db   :  { %8417 = vrcp.f32 %v5298_v24 }
0x22de   :  { %v5390_v62 = vpop.permute.xlu1 %5389 }
0x22e5   :  { %v8418_v42 = vpop.eup %8417 }
0x22e6   :  { %v5300_v34 = vmul.f32 %v8418_v42, %v8416_v3  ;;  %v8109_v3 = vpack.c.bf16 %v5685_v32, %v5684_v51  ;;  %v5896_v32 = vld [vmem:[#allocation2 + $0x600] sm:$0xff] }
0x22e8   :  { %7563 = vmatmul.mubr.msk.f32.vlgmr.msra.gmra.mrb[74].mxu1 %vm2249_vm8, %v5300_v34  ;;  %v6502_v34 = vld [vmem:[#allocation2 + $0x500] ss:$0 sm:$0xff] }
0x22e9   :  { %8095 = vmatpush3.bf16.xpose.msk.msra.mxu1 %vm8933_vm4, %v8093_v53  ;;  %7571 = vmatprep.mubr.msk.f32.mxu1 %vm8481_vm1, %v8482_v35 }
0x22ea   :  { %7569 = vmatprep.subr.mxu1 %v8482_v35 }
0x22f1   :  { %7570 = vmatpush3.xpose.msk.msra.mxu1 %vm138_vm0, %v5390_v62  ;;  %v6503_v62 = vld [vmem:[#allocation2 + $0x508] ss:$0 sm:$0xff] }
0x22f2   :  { %8105 = vmatprep.subr.bf16.mxu1 %v8480_v23 }
0x22f4   :  { %7572 = vmatmul.mubr.msk.f32.vlgmr.msra.gmra.mrb[76].mxu1 %vm138_vm0, %v5384_v39 }
0x22f5   :  { %7602 = vmatprep.mubr.msk.f32.mxu1 %vm8481_vm1, %v8482_v35  ;;  %8107 = vmatpush3.bf16.msra.mxu1 %v8106_v4  ;;  %v5895_v4 = vld [vmem:[#allocation2 + $0x5f8] sm:$0xff] }
0x22f6   :  { %8108 = vmatprep.subr.bf16.mxu1 %v8480_v23  ;;  %v8136_v51 = vpack.c.bf16 %v5895_v4, %v5894_v44 }
0x22f9   :  { %8110 = vmatpush3.bf16.msra.mxu1 %v8109_v3  ;;  %v5897_v3 = vld [vmem:[#allocation2 + $0x608] sm:$0xff] }
0x22fa   :  { %8135 = vmatprep.subr.bf16.mxu1 %v8480_v23 }
0x23bb   :  { %v5379_v26 = vpop.f32.mrb[74].mxu1 }
0x23bc   :  { %v7564_v13 = vpop.f32.mrb[75].mxu1 }
0x23bd   :  { %v5775_v13 = vld [vmem:[#allocation2 + $0x548] sm:$0xff] }
0x23c7   :  { %v5465_v63 = vpop.f32.mrb[76].mxu1 }
0x23c8   :  { %v5469_v41 = vmul.f32 0.35355338, %v5465_v63  ;;  %v7573_v38 = vpop.f32.mrb[77].mxu1  ;;  %v5776_v63 = vld [vmem:[#allocation2 + $0x550] sm:$0xff] }
0x23c9   :  { %v5777_v38 = vld [vmem:[#allocation2 + $0x558] sm:$0xff] }
0x23ca   :  { %v5470_v15 = vadd.f32 %v5469_v41, %v8956_v12  ;;  %v8115_v41 = vpack.c.bf16 %v5776_v63, %v5775_v13  ;;  %v5890_v13 = vld [vmem:[#allocation2 + $0x5d0] sm:$0xff]  ;;  %v5891_v63 = vld [vmem:[#allocation2 + $0x5d8] sm:$0xff] }
0x23cc   :  { %v5471_v17 = vsel %vm2249_vm8, %v5470_v15, -inf }
0x23cd   :  { %5472 = vmax.xlane.f32.xlu1 %v5471_v17 }
0x23de   :  { %5486 = vrot.lane.b32.xlu1 %v9293_v8, %s8492_s21 }
0x23e2   :  { %5565 = vrot.lane.b32.xlu1 %v5198_v60, %s8479_s26  ;;  %v6500_v60 = vld [vmem:[#allocation2 + $0x4f8] ss:$0 sm:$0xff]  ;;  %s8497_s26 = smov [#allocation5]  }
0x23e3   :  { %s6310_s25 = sshll.u32 %s8497_s26, 4  ;;  %s6311_s25 = int_to_ptr.vmem [resolvable:$true] %s6310_s25 }
0x23e4   :  { %s8451_s27 = scalar_lea.vmem %s6311_s25, 32  ;;  %p8456_p9 = scmp.lt.s32.totalorder %s6311_s25, %s6311_s25 }
0x23e5   :  { %p8452_p8 = scmp.ne.s32.totalorder %s6311_s25, %s8451_s27  ;;  %p8457_p10 = scmp.lt.s32.totalorder %s8451_s27, %s8451_s27 }
0x23e7   :  { %p8458_p11 = por %p8457_p10, %p8456_p9 }
0x23e9   :  { %p8459_p12 = pnand %p8458_p11, %p8452_p8 }
0x245a   :  { %v5473_v14 = vpop.xlane.xlu1 %5472 }
0x245b   :  { %v5474_v18 = vsub.f32 %v5470_v15, %v5473_v14  ;;  %v5778_v15 = vld [vmem:[#allocation2 + $0x560] sm:$0xff]  ;;  %v5779_v14 = vld [vmem:[#allocation2 + $0x568] sm:$0xff] }
0x245c   :  { %v8118_v17 = vpack.c.bf16 %v5778_v15, %v5777_v38  ;;  %v8142_v38 = vpack.c.bf16 %v5891_v63, %v5890_v13 }
0x245d   :  { %v5475_v19 = vmul.f32 1.442695, %v5474_v18  ;;  %v5780_v18 = vld [vmem:[#allocation2 + $0x570] sm:$0xff] }
0x245e   :  { %v5487_v46 = vpop.permute.xlu1 %5486 }
0x245f   :  { %8419 = vpow2.f32 %v5475_v19  ;;  %v8121_v19 = vpack.c.bf16 %v5780_v18, %v5779_v14  ;;  %v5893_v14 = vld [vmem:[#allocation2 + $0x5e8] sm:$0xff] }
0x2462   :  { %v5566_v20 = vpop.permute.xlu1 %5565 }
0x2463   :  { %v5576_v58 = vsel %vm138_vm0, %v9362_v28, %v5566_v20 }
0x2469   :  { %v8420_v9 = vpop.eup %8419 }
0x246a   :  { %v5477_v52 = vsel %vm2249_vm8, %v8420_v9, 0.0 }
0x246b   :  { %5478 = vadd.xlane.f32.xlu0 %v5477_v52  ;;  %v5782_v52 = vld [vmem:[#allocation2 + $0x580] sm:$0xff] }
0x2481   :  { %8315 = vrot.lane.b32.xlu0 %v9291_v33, %s8492_s21  ;;  %v4839_v33 = vld [vmem:[#allocation2 + $0x4d8] sm:$0xff] }
0x2482   :  { %v8100_v48 = vpack.c.bf16 %v4840_v25, %v4839_v33  ;;  %v5788_v33 = vld [vmem:[#allocation2 + $0x5b0] sm:$0xff] }
0x2485   :  { %5569 = vrot.lane.b32.xlu0 %v5379_v26, %s8495_s0 }
0x24f8   :  { %v5479_v12 = vpop.xlane.xlu0 %5478 }
0x24f9   :  { %8421 = vrcp.f32 %v5479_v12 }
0x24fc   :  { %v8316_v43 = vpop.permute.xlu0 %8315 }
0x24fd   :  { %v8318_v40 = vunpack.i.h.bf16 %v8316_v43  ;;  %v8317_v8 = vunpack.i.l.bf16 %v8316_v43  ;;  %v5783_v43 = vld [vmem:[#allocation2 + $0x588] sm:$0xff] }
0x24ff   :  { %v8097_v21 = vpack.c.bf16 %v8318_v40, %v8317_v8  ;;  %v5784_v40 = vld [vmem:[#allocation2 + $0x590] sm:$0xff] }
0x2500   :  { %v5570_v10 = vpop.permute.xlu0 %5569  ;;  %v8127_v8 = vpack.c.bf16 %v5784_v40, %v5783_v43  ;;  %v5901_v43 = vld [vmem:[#allocation2 + $0x628] sm:$0xff] }
0x2501   :  { %8098 = vmatpush3.bf16.msra.mxu0 %v8097_v21  ;;  %v5577_v59 = vsel %vm1499_vm7, %v5576_v58, %v5570_v10  ;;  %v5785_v21 = vld [vmem:[#allocation2 + $0x598] sm:$0xff] }
0x2502   :  { %7578 = vmatprep.subr.mxu0 %v8482_v35 }
0x2503   :  { %v8422_v55 = vpop.eup %8421 }
0x2504   :  { %v5481_v57 = vmul.f32 %v8422_v55, %v8420_v9  ;;  %v5781_v9 = vld [vmem:[#allocation2 + $0x578] sm:$0xff]  ;;  %v5786_v55 = vld [vmem:[#allocation2 + $0x5a0] sm:$0xff] }
0x2505   :  { %7579 = vmatpush3.msra.mxu0 %v5487_v46  ;;  %v8124_v12 = vpack.c.bf16 %v5782_v52, %v5781_v9  ;;  %v8130_v46 = vpack.c.bf16 %v5786_v55, %v5785_v21  ;;  %v5899_v9 = vld [vmem:[#allocation2 + $0x618] sm:$0xff] }
0x2506   :  { %7581 = vmatmul.mubr.msk.f32.vlgmr.msra.gmra.mrb[76].mxu0 %vm2249_vm8, %v5481_v57  ;;  %8099 = vmatprep.subr.bf16.mxu0 %v8480_v23  ;;  %v5787_v57 = vld [vmem:[#allocation2 + $0x5a8] sm:$0xff]  ;;  %v5903_v21 = vld [vmem:[#allocation2 + $0x638] sm:$0xff] }
0x2507   :  { %7591 = vmatprep.mubr.msk.f32.mxu0 %vm8481_vm1, %v8482_v35  ;;  %8101 = vmatpush3.bf16.msra.mxu0 %v8100_v48  ;;  %v8133_v25 = vpack.c.bf16 %v5788_v33, %v5787_v57  ;;  %v5904_v57 = vld [vmem:[#allocation2 + $0x640] sm:$0xff]  ;;  %v5905_v33 = vld [vmem:[#allocation2 + $0x648] sm:$0xff] }
0x2508   :  { %8102 = vmatprep.subr.bf16.mxu0 %v8480_v23 }
0x250b   :  { %8104 = vmatpush3.bf16.msra.mxu0 %v8103_v47 }
0x250c   :  { %8111 = vmatprep.subr.bf16.mxu0 %v8480_v23 }
0x25d9   :  { %v5560_v54 = vpop.f32.mrb[76].mxu0 }
0x25da   :  { %5573 = vrot.lane.b32.xlu1 %v5560_v54, %s8496_s24  ;;  %v7582_v29 = vpop.f32.mrb[77].mxu0 }
0x264c   :  { %v5574_v31 = vpop.permute.xlu1 %5573 }
0x264d   :  { %v5578_v50 = vsel %vm2249_vm8, %v5577_v59, %v5574_v31 }
0x264e   :  { %7592 = vmatmul.mubr.msk.f32.vlgmr.msra.gmra.mrb[78].mxu0 %vm1319_vm3, %v5578_v50 }
0x264f   :  { %7637 = vmatprep.mubr.msk.f32.mxu0 %vm8481_vm1, %v8482_v35 }
0x2721   :  { %v5652_v37 = vpop.f32.mrb[78].mxu0 }
0x2722   :  { %v5653_v56 = vadd.f32 %v6500_v60, %v5652_v37  ;;  %v7593_v27 = vpop.f32.mrb[79].mxu0  ;;  %v6506_v37 = vld [vmem:[#allocation2 + $0x5b8] ss:$0 sm:$0xff] }
0x2724   :  { %v5656_v30 = vadd.f32 %v5653_v56, %v9230_v11  ;;  %v5773_v11 = vld [vmem:[#allocation2 + $0x538] sm:$0xff] }
0x2725   :  { %v8112_v24 = vpack.c.bf16 %v5774_v5, %v5773_v11  ;;  %v8139_v11 = vpack.c.bf16 %v5897_v3, %v5896_v32  ;;  %v6207_v5 = vld [vmem:[#allocation2 + $0x658] sm:$0xff] }
0x2726   :  { %v5659_v2 = vsel %vm1319_vm3, %v5656_v30, 0.0 }
0x2727   :  { %5660 = vadd.xlane.f32.xlu0 %v5659_v2  ;;  %8113 = vmatpush3.bf16.msra.mxu0 %v8112_v24  ;;  %v6208_v24 = vld [vmem:[#allocation2 + $0x660] sm:$0xff] }
0x2728   :  { %8114 = vmatprep.subr.bf16.mxu0 %v8480_v23 }
0x272b   :  { %8116 = vmatpush3.bf16.msra.mxu0 %v8115_v41 }
0x272c   :  { %8117 = vmatprep.subr.bf16.mxu0 %v8480_v23 }
0x272f   :  { %8119 = vmatpush3.bf16.msra.mxu0 %v8118_v17  ;;  %v5892_v17 = vld [vmem:[#allocation2 + $0x5e0] sm:$0xff] }
0x2730   :  { %8120 = vmatprep.subr.bf16.mxu0 %v8480_v23  ;;  %v8145_v18 = vpack.c.bf16 %v5893_v14, %v5892_v17 }
0x2733   :  { %8122 = vmatpush3.bf16.msra.mxu0 %v8121_v19  ;;  %v5898_v19 = vld [vmem:[#allocation2 + $0x610] sm:$0xff] }
0x2734   :  { %8123 = vmatprep.subr.bf16.mxu0 %v8480_v23  ;;  %v8148_v52 = vpack.c.bf16 %v5899_v9, %v5898_v19 }
0x2737   :  { %8125 = vmatpush3.bf16.msra.mxu0 %v8124_v12  ;;  %v5900_v12 = vld [vmem:[#allocation2 + $0x620] sm:$0xff] }
0x2738   :  { %8126 = vmatprep.subr.bf16.mxu0 %v8480_v23  ;;  %v8151_v40 = vpack.c.bf16 %v5901_v43, %v5900_v12 }
0x273b   :  { %8128 = vmatpush3.bf16.msra.mxu0 %v8127_v8  ;;  %v5902_v8 = vld [vmem:[#allocation2 + $0x630] sm:$0xff] }
0x273c   :  { %8129 = vmatprep.subr.bf16.mxu0 %v8480_v23  ;;  %v8154_v55 = vpack.c.bf16 %v5903_v21, %v5902_v8 }
0x273f   :  { %8131 = vmatpush3.bf16.msra.mxu0 %v8130_v46 }
0x2740   :  { %8132 = vmatprep.subr.bf16.mxu0 %v8480_v23 }
0x2743   :  { %8134 = vmatpush3.bf16.msra.mxu0 %v8133_v25  ;;  %v8157_v25 = vpack.c.bf16 %v5905_v33, %v5904_v57 }
0x2744   :  { %8159 = vmatprep.subr.bf16.mxu0 %v8480_v23 }
0x27b4   :  { %v5661_v28 = vpop.xlane.xlu0 %5660 }
0x27b5   :  { %v5662_v36 = vmul.f32 0.03125, %v5661_v28 }
0x27b7   :  { %v5663_v22 = vsub.f32 %v5656_v30, %v5662_v36 }
0x27b9   :  { %v5664_v6 = vmul.f32 %v5663_v22, %v5663_v22 }
0x27bb   :  { %v5665_v61 = vsel %vm1319_vm3, %v5664_v6, 0.0 }
0x27bc   :  { %5666 = vadd.xlane.f32.xlu1 %v5665_v61 }
0x2849   :  { %v5667_v0 = vpop.xlane.xlu1 %5666 }
0x284a   :  { %v5668_v16 = vmul.f32 0.03125, %v5667_v0  ;;  %v8160_v0 = vpack.c.bf16 %v6208_v24, %v6207_v5 }
0x284c   :  { %v5669_v7 = vadd.f32 1e-05, %v5668_v16 }
0x284e   :  { %8423 = vrsqrt.f32 %v5669_v7 }
0x2858   :  { %v8424_v42 = vpop.eup %8423 }
0x2859   :  { %v5671_v53 = vmul.f32 %v8424_v42, %v5663_v22 }
0x285b   :  { %v5676_v39 = vmul.f32 %v6502_v34, %v5671_v53  ;;  %v6507_v53 = vld [vmem:[#allocation2 + $0x5c0] ss:$0 sm:$0xff] }
0x285d   :  { %v5681_v26 = vadd.f32 %v6503_v62, %v5676_v39  ;;  %v6508_v39 = vld [vmem:[#allocation2 + $0x5c8] ss:$0 sm:$0xff] }
0x285f   :  { %7603 = vmatmul.mubr.msk.f32.vlgmr.msra.gmra.mrb[78].mxu1 %vm1319_vm3, %v5681_v26 }
0x2860   :  { %7648 = vmatprep.mubr.msk.f32.mxu1 %vm8481_vm1, %v8482_v35  ;;  %8137 = vmatpush3.bf16.msra.mxu1 %v8136_v51 }
0x2861   :  { %8138 = vmatprep.subr.bf16.mxu1 %v8480_v23 }
0x2864   :  { %8140 = vmatpush3.bf16.msra.mxu1 %v8139_v11  ;;  %v6513_v11 = vld [vmem:[#allocation2 + $0x650] ss:$0 sm:$0xff] }
0x2865   :  { %8141 = vmatprep.subr.bf16.mxu1 %v8480_v23 }
0x2932   :  { %v5760_v48 = vpop.f32.mrb[78].mxu1 }
0x2933   :  { %v5761_v49 = vadd.f32 %v6504_v45, %v5760_v48  ;;  %v7604_v47 = vpop.f32.mrb[79].mxu1  ;;  %v6209_v48 = vld [vmem:[#allocation2 + $0x668] sm:$0xff] }
0x2935   :  { %v5764_v54 = vmul.f32 %v5761_v49, %v5761_v49 }
0x2937   :  { %v5765_v29 = vmul.f32 %v5764_v54, %v5761_v49  ;;  %v6211_v54 = vld [vmem:[#allocation2 + $0x678] sm:$0xff] }
0x2939   :  { %v5766_v20 = vmul.f32 0.044715, %v5765_v29  ;;  %v6212_v29 = vld [vmem:[#allocation2 + $0x680] sm:$0xff] }
0x293b   :  { %v5767_v10 = vadd.f32 %v5766_v20, %v5761_v49  ;;  %v8166_v20 = vpack.c.bf16 %v6212_v29, %v6211_v54 }
0x293d   :  { %v5768_v58 = vmul.f32 0.7978846, %v5767_v10  ;;  %v6213_v10 = vld [vmem:[#allocation2 + $0x688] sm:$0xff] }
0x293f   :  { %8425 = vtanh.f32 %v5768_v58 }
0x2949   :  { %v8426_v59 = vpop.eup %8425 }
0x294a   :  { %v5770_v31 = vadd.f32 1.0, %v8426_v59  ;;  %v6215_v59 = vld [vmem:[#allocation2 + $0x698] sm:$0xff] }
0x294c   :  { %v5771_v50 = vmul.f32 0.5, %v5770_v31  ;;  %v6216_v31 = vld [vmem:[#allocation2 + $0x6a0] sm:$0xff] }
0x294e   :  { %v5772_v60 = vmul.f32 %v5771_v50, %v5761_v49  ;;  %v6210_v49 = vld [vmem:[#allocation2 + $0x670] sm:$0xff]  ;;  %v8172_v50 = vpack.c.bf16 %v6216_v31, %v6215_v59 }
0x294f   :  { %v8163_v47 = vpack.c.bf16 %v6210_v49, %v6209_v48 }
0x2950   :  { %7638 = vmatmul.mubr.f32.vlgmr.msra.gmra.mrb[80].mxu0 %v5772_v60  ;;  %v6217_v60 = vld [vmem:[#allocation2 + $0x6a8] sm:$0xff] }
0x2951   :  { %7716 = vmatprep.mubr.msk.f32.mxu0 %vm8481_vm1, %v8482_v35  ;;  %8161 = vmatpush3.bf16.msra.mxu0 %v8160_v0 }
0x2952   :  { %8162 = vmatprep.subr.bf16.mxu0 %v8480_v23 }
0x2955   :  { %8164 = vmatpush3.bf16.msra.mxu0 %v8163_v47 }
0x2956   :  { %8165 = vmatprep.subr.bf16.mxu0 %v8480_v23 }
0x2959   :  { %8167 = vmatpush3.bf16.msra.mxu0 %v8166_v20 }
0x295a   :  { %8168 = vmatprep.subr.bf16.mxu0 %v8480_v23 }
0x2a23   :  { %v5860_v56 = vpop.f32.mrb[80].mxu0 }
0x2a24   :  { %v5861_v27 = vadd.f32 %v6506_v37, %v5860_v56  ;;  %v7639_v30 = vpop.f32.mrb[81].mxu0  ;;  %v6218_v37 = vld [vmem:[#allocation2 + $0x6b0] sm:$0xff] }
0x2a25   :  { %v8175_v56 = vpack.c.bf16 %v6218_v37, %v6217_v60  ;;  %v6220_v30 = vld [vmem:[#allocation2 + $0x6c0] sm:$0xff] }
0x2a26   :  { %v5864_v2 = vadd.f32 %v5861_v27, %v5681_v26  ;;  %v6219_v27 = vld [vmem:[#allocation2 + $0x6b8] sm:$0xff] }
0x2a28   :  { %v5867_v28 = vsel %vm1319_vm3, %v5864_v2, 0.0 }
0x2a29   :  { %5868 = vadd.xlane.f32.xlu0 %v5867_v28  ;;  %v6221_v28 = vld [vmem:[#allocation2 + $0x6c8] sm:$0xff] }
0x2ab6   :  { %v5869_v36 = vpop.xlane.xlu0 %5868 }
0x2ab7   :  { %v5870_v22 = vmul.f32 0.03125, %v5869_v36  ;;  %v6222_v36 = vld [vmem:[#allocation2 + $0x6d0] sm:$0xff] }
0x2ab9   :  { %v5871_v6 = vsub.f32 %v5864_v2, %v5870_v22  ;;  %v8178_v2 = vpack.c.bf16 %v6220_v30, %v6219_v27  ;;  %v8181_v22 = vpack.c.bf16 %v6222_v36, %v6221_v28 }
0x2abb   :  { %v5872_v61 = vmul.f32 %v5871_v6, %v5871_v6 }
0x2abd   :  { %v5873_v1 = vsel %vm1319_vm3, %v5872_v61, 0.0 }
0x2abe   :  { %5874 = vadd.xlane.f32.xlu0 %v5873_v1 }
0x2b4b   :  { %v5875_v16 = vpop.xlane.xlu0 %5874 }
0x2b4c   :  { %v5876_v7 = vmul.f32 0.03125, %v5875_v16 }
0x2b4e   :  { %v5877_v42 = vadd.f32 1e-05, %v5876_v7 }
0x2b50   :  { %8427 = vrsqrt.f32 %v5877_v42 }
0x2b5a   :  { %v8428_v34 = vpop.eup %8427 }
0x2b5b   :  { %v5879_v62 = vmul.f32 %v8428_v34, %v5871_v6 }
0x2b5d   :  { %v5884_v26 = vmul.f32 %v6507_v53, %v5879_v62 }
0x2b5f   :  { %v5889_v41 = vadd.f32 %v6508_v39, %v5884_v26 }
0x2b61   :  { %v5908_v15 = vrot.slane %v5889_v41, 2  ;;  %v6053_v46 = vrot.slane %v5889_v41, 4  ;;  %v6127_v45 = vrot.slane %v5889_v41, 6 }
0x2b63   :  { %7649 = vmatmul.mubr.msk.f32.vlgmr.msra.gmra.mrb[80].mxu1 %vm1319_vm3, %v5908_v15 }
0x2b64   :  { %8143 = vmatpush3.bf16.msra.mxu1 %v8142_v38  ;;  %7659 = vmatprep.mubr.msk.f32.mxu1 %vm8481_vm1, %v8482_v35 }
0x2b65   :  { %8144 = vmatprep.subr.bf16.mxu1 %v8480_v23 }
0x2b68   :  { %8146 = vmatpush3.bf16.msra.mxu1 %v8145_v18 }
0x2b69   :  { %8147 = vmatprep.subr.bf16.mxu1 %v8480_v23 }
0x2b6b   :  { %7660 = vmatmul.mubr.msk.f32.vlgmr.msra.gmra.mrb[82].mxu1 %vm1319_vm3, %v5889_v41 }
0x2b6c   :  { %8149 = vmatpush3.bf16.msra.mxu1 %v8148_v52  ;;  %7670 = vmatprep.mubr.msk.f32.mxu1 %vm8481_vm1, %v8482_v35 }
0x2b6d   :  { %8150 = vmatprep.subr.bf16.mxu1 %v8480_v23 }
0x2b70   :  { %8152 = vmatpush3.bf16.msra.mxu1 %v8151_v40 }
0x2b71   :  { %8153 = vmatprep.subr.bf16.mxu1 %v8480_v23 }
0x2b73   :  { %7671 = vmatmul.mubr.msk.f32.vlgmr.msra.gmra.mrb[84].mxu1 %vm1319_vm3, %v6053_v46 }
0x2b74   :  { %8155 = vmatpush3.bf16.msra.mxu1 %v8154_v55  ;;  %7681 = vmatprep.mubr.msk.f32.mxu1 %vm8481_vm1, %v8482_v35  ;;  %v6214_v35 = vld [vmem:[#allocation2 + $0x690] sm:$0xff] }
0x2b75   :  { %8156 = vmatprep.subr.bf16.mxu1 %v8480_v23  ;;  %v8169_v58 = vpack.c.bf16 %v6214_v35, %v6213_v10 }
0x2b77   :  { %8170 = vmatpush3.bf16.msra.mxu0 %v8169_v58 }
0x2b78   :  { %8158 = vmatpush3.bf16.msra.mxu1 %v8157_v25  ;;  %8171 = vmatprep.subr.bf16.mxu0 %v8480_v23 }
0x2b7b   :  { %7682 = vmatmul.mubr.msk.f32.vlgmr.msra.gmra.mrb[86].mxu1 %vm1319_vm3, %v6127_v45  ;;  %8173 = vmatpush3.bf16.msra.mxu0 %v8172_v50 }
0x2b7c   :  { %8174 = vmatprep.subr.bf16.mxu0 %v8480_v23 }
0x2b7f   :  { %8176 = vmatpush3.bf16.msra.mxu0 %v8175_v56 }
0x2b80   :  { %8177 = vmatprep.subr.bf16.mxu0 %v8480_v23 }
0x2b83   :  { %8179 = vmatpush3.bf16.msra.mxu0 %v8178_v2 }
0x2b84   :  { %8180 = vmatprep.subr.bf16.mxu0 %v8480_v23 }
0x2b87   :  { %8182 = vmatpush3.bf16.msra.mxu0 %v8181_v22 }
0x2c36   :  { %v5977_v6 = vpop.f32.mrb[80].mxu1 }
0x2c37   :  { %v7650_v61 = vpop.f32.mrb[81].mxu1 }
0x2c3e   :  { %v6049_v1 = vpop.f32.mrb[82].mxu1 }
0x2c3f   :  { %v6050_v44 = vadd.f32 %v6049_v1, %v5977_v6  ;;  %v7661_v4 = vpop.f32.mrb[83].mxu1 }
0x2c46   :  { %v6122_v51 = vpop.f32.mrb[84].mxu1 }
0x2c47   :  { %v6126_v32 = vadd.f32 %v6122_v51, %v6050_v44  ;;  %v7672_v3 = vpop.f32.mrb[85].mxu1 }
0x2c4e   :  { %v6196_v5 = vpop.f32.mrb[86].mxu1 }
0x2c4f   :  { %v6200_v24 = vadd.f32 %v6196_v5, %v6126_v32  ;;  %v7683_v0 = vpop.f32.mrb[87].mxu1 }
0x2c51   :  { %v6205_v16 = vadd.f32 %v6513_v11, %v6200_v24 }
0x2c53   :  { %v6206_v7 = vmax.f32 %v6205_v16, 0.0 }
0x2c55   :  { %7717 = vmatmul.mubr.f32.vlgmr.msra.gmra.mrb[82].mxu0 %v6206_v7 }
0x2c56   :  { %8462 = shalt.err (!%p8459_p12)
}
0x2c57   :  { %s8463_s30 = scalar_lea.hbm %s9475_s4, 32 }
0x2c58   :  { %p8464_p13 = scmp.ne.s32.totalorder %s9475_s4, %s8463_s30  ;;  %p8467_p0 = scmp.lt.u32.totalorder %s8463_s30, %s9475_s4 }
0x2c5a   :  { %p8469_p1 = pnand %p8467_p0, %p8464_p13 }
0x2c5c   :  { %8472 = shalt.err (!%p8469_p1)
}
0x2c5d   :  { %6313 = dma.vmem_to_hbm [thread:$0]  %s6311_s25, 32, %s9475_s4, [#allocation4]   ;;  %v6514_v23 = vld [vmem:[#allocation2 + $0x6d8] ss:$0 sm:$0xff]  ;;  %vm6298_vm10 = vcmask 320512  }
0x2d28   :  { %v6294_v42 = vpop.f32.mrb[82].mxu0 }
0x2d29   :  { %v6295_v34 = vadd.f32 %v6514_v23, %v6294_v42  ;;  %v7718_v53 = vpop.f32.mrb[83].mxu0 }
0x2d2b   :  { %6299 = vst.msk [vmem:[%s9474_s3] sm:$0x3] %vm6298_vm10, %v6295_v34 }
0x2d2c   :  { %8475 = dma.done.wait [#allocation4], 32  }
0x2d2d   :  { %8476 = vsyncadd [#allocation4], 4294967264 }
0x2d2e   :  { %6319 = vsyncpa [#allocation3], 1 }
0x2d2f   :  { %6320 = vsyncpa [#allocation4], 1 }

</bundles_post_ra>
